<compile_context>
chip_gen: v7x
topology: tpu7x:2x2x1
jax: 0.10.0
libtpu: 0.0.40
codegen_flags: <defaults>
</compile_context>

<pallas_src>
import functools

import jax
import jax.numpy as jnp
from jax.experimental import pallas as pl
from jax.experimental.pallas import tpu as pltpu

BN_EPS = 1e-5
C_PAD = 8  # channel pad 3 -> 8 (zeros are a no-op in the conv); NOT 128.


def _pick_pixel_tile(num_pixels):
    """Largest 8-aligned tile that divides the pixel count (prefer >= 2 grid steps)."""
    for tp in (512, 256, 128, 64, 32, 16, 8):
        if num_pixels % tp == 0 and num_pixels // tp >= 2:
            return tp
    return num_pixels


def encoder_kernel(x_ref, wb_ref, bb_ref, wf_ref, bf_ref, gamma_ref, beta_ref,
                   out_ref, acc_ref, *, batch, inv_pixels):
    """Per pixel tile: 1x1-conv stand-in + ReLU + GAP accumulate; fc + BN at the end."""
    p = pl.program_id(0)

    @pl.when(p == 0)
    def _init():
        acc_ref[...] = jnp.zeros_like(acc_ref)

    wb = wb_ref[...]            # (C_PAD, F) bf16, VMEM-resident
    bb = bb_ref[...]            # (1, F)    f32, VMEM-resident
    for b in range(batch):      # static unroll; batch is small
        feat = jnp.dot(x_ref[b], wb, preferred_element_type=jnp.float32) + bb
        feat = jnp.maximum(feat, 0.0)                                   # (TP, F) f32
        acc_ref[b:b + 1, :] = (acc_ref[b:b + 1, :]
                               + jnp.sum(feat, axis=0, keepdims=True))  # GAP partial sum

    @pl.when(p == pl.num_programs(0) - 1)
    def _finalize():
        pooled = (acc_ref[...] * inv_pixels).astype(jnp.bfloat16)       # (B, F)
        emb = jnp.dot(pooled, wf_ref[...],
                      preferred_element_type=jnp.float32) + bf_ref[...]  # (B, E) f32
        # BatchNorm1d, training-mode batch statistics (biased variance), eps=1e-5.
        mu = jnp.mean(emb, axis=0, keepdims=True)
        var = jnp.mean(jnp.square(emb - mu), axis=0, keepdims=True)
        out_ref[...] = ((emb - mu) * jax.lax.rsqrt(var + BN_EPS)
                        * gamma_ref[...] + beta_ref[...])


@functools.partial(jax.jit, static_argnames=("embed_size",))
def encoder_forward(images, params, *, embed_size=256):
    """images: (B, 3, H, W) float32, NCHW. Returns (B, embed_size) float32."""
    B, C, H, W = images.shape
    P = H * W

    # NCHW -> NHWC -> (B, P, C_PAD); transpose fused with the zero-pad + bf16 cast.
    x3 = jnp.transpose(images, (0, 2, 3, 1)).reshape(B, P, C)
    x3 = jnp.pad(x3, ((0, 0), (0, 0), (0, C_PAD - C))).astype(jnp.bfloat16)

    wb, bb, wf, bf, gamma, beta = (params["wb"], params["bb"], params["wf"],
                                   params["bf"], params["gamma"], params["beta"])
    F = wb.shape[1]

    TP = _pick_pixel_tile(P)
    NP = P // TP

    kernel = functools.partial(encoder_kernel, batch=B, inv_pixels=1.0 / float(P))

    flops = 2 * B * P * C_PAD * F + 2 * B * F * embed_size
    bytes_accessed = (B * P * C_PAD * 2           # x3 (bf16)
                      + C_PAD * F * 2             # wb (bf16)
                      + F * embed_size * 2        # wf (bf16)
                      + (F + 3 * embed_size) * 4  # bb, bf, gamma, beta (f32)
                      + B * embed_size * 4)       # output (f32)

    resident = lambda shape: pl.BlockSpec(shape, lambda p: (0, 0))

    return pl.pallas_call(
        kernel,
        out_shape=jax.ShapeDtypeStruct((B, embed_size), jnp.float32),
        grid=(NP,),
        in_specs=[
            pl.BlockSpec((B, TP, C_PAD), lambda p: (0, p, 0)),  # pixel tiles (pipelined)
            resident((C_PAD, F)),                               # backbone weight
            resident((1, F)),                                   # backbone bias
            resident((F, embed_size)),                          # fc weight
            resident((1, embed_size)),                          # fc bias
            resident((1, embed_size)),                          # bn gamma
            resident((1, embed_size)),                          # bn beta
        ],
        out_specs=pl.BlockSpec((B, embed_size), lambda p: (0, 0)),
        scratch_shapes=[pltpu.VMEM((B, F), jnp.float32)],       # GAP accumulator
        compiler_params=pltpu.CompilerParams(
            dimension_semantics=("arbitrary",),                 # pixel axis is a reduction
        ),
        cost_estimate=pl.CostEstimate(flops=flops, transcendentals=0,
                                      bytes_accessed=bytes_accessed),
    )(x3, wb, bb, wf, bf, gamma, beta)


def init_params(key, *, in_ch=3, c_pad=C_PAD, feat_dim=2048, embed_size=256):
    """Deterministic synthetic parameters (shapes implied by the module)."""
    k1, k2, k3, k4 = jax.random.split(key, 4)
    # Backbone stand-in 1x1 conv: real rows for the 3 input channels, zero pad rows.
    wb_real = jax.random.normal(k1, (in_ch, feat_dim), jnp.float32) * 0.05
    wb = jnp.zeros((c_pad, feat_dim), jnp.float32).at[:in_ch].set(wb_real)
    wb = wb.astype(jnp.bfloat16)
    bb = jax.random.normal(k2, (1, feat_dim), jnp.float32) * 0.01
    # Replaced fc layer: Linear(2048, embed_size).
    wf = (jax.random.normal(k3, (feat_dim, embed_size), jnp.float32) * 0.02
          ).astype(jnp.bfloat16)
    bf = jax.random.normal(k4, (1, embed_size), jnp.float32) * 0.01
    # BatchNorm1d init: gamma=1, beta=0 (PyTorch default).
    gamma = jnp.ones((1, embed_size), jnp.float32)
    beta = jnp.zeros((1, embed_size), jnp.float32)
    return dict(wb=wb, bb=bb, wf=wf, bf=bf, gamma=gamma, beta=beta)


def reference_forward(images, params):
    """Pure-JAX reference of the same synthetic pipeline (for correctness check)."""
    B, C, H, W = images.shape
    P = H * W
    x = jnp.transpose(images, (0, 2, 3, 1)).reshape(B, P, C)
    x = jnp.pad(x, ((0, 0), (0, 0), (0, C_PAD - C))).astype(jnp.bfloat16)
    feat = jnp.dot(x.reshape(B * P, C_PAD), params["wb"],
                   preferred_element_type=jnp.float32).reshape(B, P, -1)
    feat = jnp.maximum(feat + params["bb"], 0.0)
    pooled = jnp.mean(feat, axis=1).astype(jnp.bfloat16)
    emb = jnp.dot(pooled, params["wf"],
                  preferred_element_type=jnp.float32) + params["bf"]
    mu = jnp.mean(emb, axis=0, keepdims=True)
    var = jnp.mean(jnp.square(emb - mu), axis=0, keepdims=True)
    return (emb - mu) * jax.lax.rsqrt(var + BN_EPS) * params["gamma"] + params["beta"]


if __name__ == "__main__":
    key = jax.random.PRNGKey(0)
    k_img, k_par = jax.random.split(key)

    B, C, H, W = 2, 3, 16, 16
    embed_size = 256
    images = jax.random.normal(k_img, (B, C, H, W), jnp.float32)
    params = init_params(k_par, in_ch=C, embed_size=embed_size)

    out = encoder_forward(images, params, embed_size=embed_size)
    out = jax.block_until_ready(out)

    assert out.shape == (B, embed_size), out.shape
    assert out.dtype == jnp.float32
    assert bool(jnp.all(jnp.isfinite(out)))
    # Training-mode BatchNorm1d with beta=0: per-feature batch mean ~ 0.
    assert bool(jnp.allclose(jnp.mean(out, axis=0), 0.0, atol=1e-3))
    # Match the pure-JAX reference of the same pipeline.
    ref = reference_forward(images, params)
    assert bool(jnp.allclose(out, ref, atol=2e-3, rtol=2e-3))

    print("KERNEL_OK")
</pallas_src>

<mosaic_0001>
module attributes {stable_mosaic.version = 11 : i64} {
  func.func @encoder_kernel(%arg0: i32, %arg1: memref<2x128x8xbf16, #tpu.memory_space<vmem>>, %arg2: memref<8x2048xbf16, #tpu.memory_space<vmem>>, %arg3: memref<1x2048xf32, #tpu.memory_space<vmem>>, %arg4: memref<2048x256xbf16, #tpu.memory_space<vmem>>, %arg5: memref<1x256xf32, #tpu.memory_space<vmem>>, %arg6: memref<1x256xf32, #tpu.memory_space<vmem>>, %arg7: memref<1x256xf32, #tpu.memory_space<vmem>>, %arg8: memref<2x256xf32, #tpu.memory_space<vmem>>, %arg9: memref<2x2048xf32, #tpu.memory_space<vmem>>) attributes {dimension_semantics = [#tpu.dimension_semantics<arbitrary>], iteration_bounds = array<i64: 2>, scalar_prefetch = 0 : i64, scratch_operands = 1 : i64, tpu.core_type = #tpu.core_type<tc>, window_params = [{transform_indices = @transform_0, window_bounds = array<i64: 2, 128, 8>}, {pipeline_mode = #tpu.pipeline_mode<synchronous>, transform_indices = @transform_1, window_bounds = array<i64: 8, 2048>}, {pipeline_mode = #tpu.pipeline_mode<synchronous>, transform_indices = @transform_2, window_bounds = array<i64: 1, 2048>}, {pipeline_mode = #tpu.pipeline_mode<synchronous>, transform_indices = @transform_3, window_bounds = array<i64: 2048, 256>}, {pipeline_mode = #tpu.pipeline_mode<synchronous>, transform_indices = @transform_4, window_bounds = array<i64: 1, 256>}, {pipeline_mode = #tpu.pipeline_mode<synchronous>, transform_indices = @transform_5, window_bounds = array<i64: 1, 256>}, {pipeline_mode = #tpu.pipeline_mode<synchronous>, transform_indices = @transform_6, window_bounds = array<i64: 1, 256>}, {pipeline_mode = #tpu.pipeline_mode<synchronous>, transform_indices = @transform_7, window_bounds = array<i64: 2, 256>}]} {
    %c0_i32 = arith.constant 0 : i32
    %0 = arith.cmpi eq, %arg0, %c0_i32 : i32
    %1 = arith.extui %0 : i1 to i32
    %c0_i32_0 = arith.constant 0 : i32
    %2 = arith.cmpi ne, %1, %c0_i32_0 : i32
    scf.if %2 {
      %cst_23 = arith.constant 0.000000e+00 : f32
      %32 = vector.broadcast %cst_23 : f32 to vector<2x2048xf32>
      %c0_24 = arith.constant 0 : index
      %c0_25 = arith.constant 0 : index
      %33 = vector.load %arg9[%c0_24, %c0_25] : memref<2x2048xf32, #tpu.memory_space<vmem>>, vector<2x2048xf32>
      tpu.vector_store %arg9[%c0_24, %c0_25], %32 {strides = array<i32>} : memref<2x2048xf32, #tpu.memory_space<vmem>>, vector<2x2048xf32>,
    } else {
    }
    %c0 = arith.constant 0 : index
    %c0_1 = arith.constant 0 : index
    %3 = vector.load %arg2[%c0, %c0_1] : memref<8x2048xbf16, #tpu.memory_space<vmem>>, vector<8x2048xbf16>
    %c0_2 = arith.constant 0 : index
    %c0_3 = arith.constant 0 : index
    %4 = vector.load %arg3[%c0_2, %c0_3] : memref<1x2048xf32, #tpu.memory_space<vmem>>, vector<1x2048xf32>
    %c0_4 = arith.constant 0 : index
    %c0_5 = arith.constant 0 : index
    %c0_6 = arith.constant 0 : index
    %5 = vector.load %arg1[%c0_4, %c0_5, %c0_6] : memref<2x128x8xbf16, #tpu.memory_space<vmem>>, vector<1x128x8xbf16>
    %6 = vector.shape_cast %5 : vector<1x128x8xbf16> to vector<128x8xbf16>
    %cst = arith.constant dense<0.000000e+00> : vector<128x2048xf32>
    %7 = tpu.matmul %6, %3, %cst {dimension_numbers = #tpu.dot_dimension_numbers<[1], [0], [0], [1], [0, 0, 1, 1], [], []>} : vector<128x8xbf16>, vector<8x2048xbf16>, vector<128x2048xf32> -> vector<128x2048xf32>
    %8 = vector.broadcast %4 : vector<1x2048xf32> to vector<128x2048xf32>
    %9 = arith.addf %7, %8 : vector<128x2048xf32>
    %cst_7 = arith.constant 0.000000e+00 : f32
    %10 = vector.broadcast %cst_7 : f32 to vector<128x2048xf32>
    %11 = arith.maximumf %9, %10 : vector<128x2048xf32>
    %c0_8 = arith.constant 0 : index
    %c0_9 = arith.constant 0 : index
    %12 = vector.load %arg9[%c0_8, %c0_9] : memref<2x2048xf32, #tpu.memory_space<vmem>>, vector<1x2048xf32>
    %cst_10 = arith.constant dense<0.000000e+00> : vector<2048xf32>
    %13 = vector.multi_reduction <add>, %11, %cst_10 [0] : vector<128x2048xf32> to vector<2048xf32>
    %14 = vector.shape_cast %13 : vector<2048xf32> to vector<1x2048xf32>
    %15 = arith.addf %12, %14 : vector<1x2048xf32>
    %c0_11 = arith.constant 0 : index
    %c0_12 = arith.constant 0 : index
    %16 = vector.load %arg9[%c0_11, %c0_12] : memref<2x2048xf32, #tpu.memory_space<vmem>>, vector<1x2048xf32>
    tpu.vector_store %arg9[%c0_11, %c0_12], %15 {strides = array<i32>} : memref<2x2048xf32, #tpu.memory_space<vmem>>, vector<1x2048xf32>,
    %c1 = arith.constant 1 : index
    %c0_13 = arith.constant 0 : index
    %c0_14 = arith.constant 0 : index
    %17 = vector.load %arg1[%c1, %c0_13, %c0_14] : memref<2x128x8xbf16, #tpu.memory_space<vmem>>, vector<1x128x8xbf16>
    %18 = vector.shape_cast %17 : vector<1x128x8xbf16> to vector<128x8xbf16>
    %cst_15 = arith.constant dense<0.000000e+00> : vector<128x2048xf32>
    %19 = tpu.matmul %18, %3, %cst_15 {dimension_numbers = #tpu.dot_dimension_numbers<[1], [0], [0], [1], [0, 0, 1, 1], [], []>} : vector<128x8xbf16>, vector<8x2048xbf16>, vector<128x2048xf32> -> vector<128x2048xf32>
    %20 = vector.broadcast %4 : vector<1x2048xf32> to vector<128x2048xf32>
    %21 = arith.addf %19, %20 : vector<128x2048xf32>
    %cst_16 = arith.constant 0.000000e+00 : f32
    %22 = vector.broadcast %cst_16 : f32 to vector<128x2048xf32>
    %23 = arith.maximumf %21, %22 : vector<128x2048xf32>
    %c1_17 = arith.constant 1 : index
    %c0_18 = arith.constant 0 : index
    %24 = vector.load %arg9[%c1_17, %c0_18] : memref<2x2048xf32, #tpu.memory_space<vmem>>, vector<1x2048xf32>
    %cst_19 = arith.constant dense<0.000000e+00> : vector<2048xf32>
    %25 = vector.multi_reduction <add>, %23, %cst_19 [0] : vector<128x2048xf32> to vector<2048xf32>
    %26 = vector.shape_cast %25 : vector<2048xf32> to vector<1x2048xf32>
    %27 = arith.addf %24, %26 : vector<1x2048xf32>
    %c1_20 = arith.constant 1 : index
    %c0_21 = arith.constant 0 : index
    %28 = vector.load %arg9[%c1_20, %c0_21] : memref<2x2048xf32, #tpu.memory_space<vmem>>, vector<1x2048xf32>
    tpu.vector_store %arg9[%c1_20, %c0_21], %27 {strides = array<i32>} : memref<2x2048xf32, #tpu.memory_space<vmem>>, vector<1x2048xf32>,
    %c1_i32 = arith.constant 1 : i32
    %29 = arith.cmpi eq, %arg0, %c1_i32 : i32
    %30 = arith.extui %29 : i1 to i32
    %c0_i32_22 = arith.constant 0 : i32
    %31 = arith.cmpi ne, %30, %c0_i32_22 : i32
    scf.if %31 {
      %c0_23 = arith.constant 0 : index
      %c0_24 = arith.constant 0 : index
      %32 = vector.load %arg9[%c0_23, %c0_24] : memref<2x2048xf32, #tpu.memory_space<vmem>>, vector<2x2048xf32>
      %cst_25 = arith.constant 3.906250e-03 : f32
      %33 = vector.broadcast %cst_25 : f32 to vector<2x2048xf32>
      %34 = arith.mulf %32, %33 : vector<2x2048xf32>
      %35 = arith.truncf %34 : vector<2x2048xf32> to vector<2x2048xbf16>
      %c0_26 = arith.constant 0 : index
      %c0_27 = arith.constant 0 : index
      %36 = vector.load %arg4[%c0_26, %c0_27] : memref<2048x256xbf16, #tpu.memory_space<vmem>>, vector<2048x256xbf16>
      %cst_28 = arith.constant dense<0.000000e+00> : vector<2x256xf32>
      %37 = tpu.matmul %35, %36, %cst_28 {dimension_numbers = #tpu.dot_dimension_numbers<[1], [0], [0], [1], [0, 0, 1, 1], [], []>} : vector<2x2048xbf16>, vector<2048x256xbf16>, vector<2x256xf32> -> vector<2x256xf32>
      %c0_29 = arith.constant 0 : index
      %c0_30 = arith.constant 0 : index
      %38 = vector.load %arg5[%c0_29, %c0_30] : memref<1x256xf32, #tpu.memory_space<vmem>>, vector<1x256xf32>
      %39 = vector.broadcast %38 : vector<1x256xf32> to vector<2x256xf32>
      %40 = arith.addf %37, %39 : vector<2x256xf32>
      %cst_31 = arith.constant dense<0.000000e+00> : vector<256xf32>
      %41 = vector.multi_reduction <add>, %40, %cst_31 [0] : vector<2x256xf32> to vector<256xf32>
      %42 = vector.shape_cast %41 : vector<256xf32> to vector<1x256xf32>
      %cst_32 = arith.constant 2.000000e+00 : f32
      %43 = vector.broadcast %cst_32 : f32 to vector<1x256xf32>
      %44 = arith.divf %42, %43 : vector<1x256xf32>
      %45 = vector.broadcast %44 : vector<1x256xf32> to vector<2x256xf32>
      %46 = arith.subf %40, %45 : vector<2x256xf32>
      %47 = arith.mulf %46, %46 : vector<2x256xf32>
      %cst_33 = arith.constant dense<0.000000e+00> : vector<256xf32>
      %48 = vector.multi_reduction <add>, %47, %cst_33 [0] : vector<2x256xf32> to vector<256xf32>
      %49 = vector.shape_cast %48 : vector<256xf32> to vector<1x256xf32>
      %cst_34 = arith.constant 2.000000e+00 : f32
      %50 = vector.broadcast %cst_34 : f32 to vector<1x256xf32>
      %51 = arith.divf %49, %50 : vector<1x256xf32>
      %52 = vector.broadcast %44 : vector<1x256xf32> to vector<2x256xf32>
      %53 = arith.subf %40, %52 : vector<2x256xf32>
      %cst_35 = arith.constant 9.99999974E-6 : f32
      %54 = vector.broadcast %cst_35 : f32 to vector<1x256xf32>
      %55 = arith.addf %51, %54 : vector<1x256xf32>
      %56 = math.rsqrt %55 : vector<1x256xf32>
      %57 = vector.broadcast %56 : vector<1x256xf32> to vector<2x256xf32>
      %58 = arith.mulf %53, %57 : vector<2x256xf32>
      %c0_36 = arith.constant 0 : index
      %c0_37 = arith.constant 0 : index
      %59 = vector.load %arg6[%c0_36, %c0_37] : memref<1x256xf32, #tpu.memory_space<vmem>>, vector<1x256xf32>
      %60 = vector.broadcast %59 : vector<1x256xf32> to vector<2x256xf32>
      %61 = arith.mulf %58, %60 : vector<2x256xf32>
      %c0_38 = arith.constant 0 : index
      %c0_39 = arith.constant 0 : index
      %62 = vector.load %arg7[%c0_38, %c0_39] : memref<1x256xf32, #tpu.memory_space<vmem>>, vector<1x256xf32>
      %63 = vector.broadcast %62 : vector<1x256xf32> to vector<2x256xf32>
      %64 = arith.addf %61, %63 : vector<2x256xf32>
      %c0_40 = arith.constant 0 : index
      %c0_41 = arith.constant 0 : index
      %65 = vector.load %arg8[%c0_40, %c0_41] : memref<2x256xf32, #tpu.memory_space<vmem>>, vector<2x256xf32>
      tpu.vector_store %arg8[%c0_40, %c0_41], %64 {strides = array<i32>} : memref<2x256xf32, #tpu.memory_space<vmem>>, vector<2x256xf32>,
    } else {
    }
    return
  }
  func.func @transform_0(%arg0: i32) -> (i32, i32, i32) {
    %c0_i32 = arith.constant 0 : i32
    %c0_i32_0 = arith.constant 0 : i32
    %c0_i32_1 = arith.constant 0 : i32
    return %c0_i32, %arg0, %c0_i32_0 : i32, i32, i32
  }
  func.func @transform_1(%arg0: i32) -> (i32, i32) {
    %c0_i32 = arith.constant 0 : i32
    %c0_i32_0 = arith.constant 0 : i32
    %c0_i32_1 = arith.constant 0 : i32
    return %c0_i32, %c0_i32_0 : i32, i32
  }
  func.func @transform_2(%arg0: i32) -> (i32, i32) {
    %c0_i32 = arith.constant 0 : i32
    %c0_i32_0 = arith.constant 0 : i32
    %c0_i32_1 = arith.constant 0 : i32
    return %c0_i32, %c0_i32_0 : i32, i32
  }
  func.func @transform_3(%arg0: i32) -> (i32, i32) {
    %c0_i32 = arith.constant 0 : i32
    %c0_i32_0 = arith.constant 0 : i32
    %c0_i32_1 = arith.constant 0 : i32
    return %c0_i32, %c0_i32_0 : i32, i32
  }
  func.func @transform_4(%arg0: i32) -> (i32, i32) {
    %c0_i32 = arith.constant 0 : i32
    %c0_i32_0 = arith.constant 0 : i32
    %c0_i32_1 = arith.constant 0 : i32
    return %c0_i32, %c0_i32_0 : i32, i32
  }
  func.func @transform_5(%arg0: i32) -> (i32, i32) {
    %c0_i32 = arith.constant 0 : i32
    %c0_i32_0 = arith.constant 0 : i32
    %c0_i32_1 = arith.constant 0 : i32
    return %c0_i32, %c0_i32_0 : i32, i32
  }
  func.func @transform_6(%arg0: i32) -> (i32, i32) {
    %c0_i32 = arith.constant 0 : i32
    %c0_i32_0 = arith.constant 0 : i32
    %c0_i32_1 = arith.constant 0 : i32
    return %c0_i32, %c0_i32_0 : i32, i32
  }
  func.func @transform_7(%arg0: i32) -> (i32, i32) {
    %c0_i32 = arith.constant 0 : i32
    %c0_i32_0 = arith.constant 0 : i32
    %c0_i32_1 = arith.constant 0 : i32
    return %c0_i32, %c0_i32_0 : i32, i32
  }
}

</mosaic_0001>

<bundles_post_ra>
// kernel: encoder_forward.1
= control target key start
LH: loop header
LB: loop body
LE: loop exit
PB: predicated region body
PF: predicated region fallthrough
CT: control target
= control target key end

     0   :  { %12 = vsyncpa [#allocation5], 0  ;;  %s8750_s0 = inlined_call_operand.vmem [shape: bf16[2,256,8], index: 0, kind: input, shape index: {}]   ;;  %s8751_s1 = inlined_call_operand.vmem [shape: bf16[8,2048], index: 1, kind: input, shape index: {}]   ;;  %s8752_s2 = inlined_call_operand.vmem [shape: f32[1,2048], index: 2, kind: input, shape index: {}]   ;;  %s8753_s3 = inlined_call_operand.hbm [shape: bf16[2048,256], index: 3, kind: input, shape index: {}]   ;;  %s8754_s4 = inlined_call_operand.vmem [shape: f32[1,256], index: 4, kind: input, shape index: {}]   ;;  %s8755_s5 = inlined_call_operand.vmem [shape: f32[1,256], index: 5, kind: input, shape index: {}]   ;;  %s8756_s6 = inlined_call_operand.vmem [shape: f32[1,256], index: 6, kind: input, shape index: {}]   ;;  %s8757_s7 = inlined_call_operand.hbm [shape: f32[2,256], index: 7, kind: output, shape index: {}]  }
   0x1   :  { %13 = vsyncpa [#allocation6], 0  ;;  %s7282_s24 = smov 0   ;;  %s7284_s25 = smov 0  }
   0x2   :  { %s7286_s26 = smov 0  }
   0x3 LB: > { %s7298_s27 = sadd.s32 4294967295, %s7232_s26   ;;  %s7301_s28 = sadd.s32 1, %s7232_s26   ;;  %s7232_s26 = sphi %s7286_s26, %s8772_s26   ;;  %s7228_s25 = sphi %s7284_s25, %s8771_s25   ;;  %s7224_s24 = sphi %s7282_s24, %s8770_s24  }
   0x4   : > { %s23_s29 = ssub.s32 %s7232_s26, %s7301_s28  ;;  %s26_s30 = sadd.s32 1, %s7228_s25 }
   0x5   : > { %p24_p0 = scmp.eq.s32.totalorder %s23_s29, 0  ;;  %p33_p1 = scmp.ne.s32.totalorder %s7228_s25, %s7224_s24 }
   0x6   : > { %p34_p2 = scmp.eq.s32.totalorder %s7232_s26, 0  ;;  %p6179_p3 = scmp.ge.s32.totalorder %s7232_s26, 1 }
   0x7   : > { %s7311_s8 = scalar_select %p24_p0, %s7228_s25, %s26_s30  }
   0x8   : > { %p7313_p4 = por %p34_p2, %p33_p1  ;;  %p197_p5 = scmp.lt.s32.totalorder %s7232_s26, 3 }
   0x9   : > { %p8758_p7 = scmp.eq.s32.totalorder %s7298_s27, 0  ;;  %s7234_s11 = smov [#allocation4]  }
   0xa   : > { %s8761_s9 = scalar_select %p7313_p4, 1, 0 }
   0xb   : > { %p7320_p8 = pnand %p6179_p3, %p197_p5  ;;  %s215_s12 = sshll.u32 %s7234_s11, 4  ;;  %s216_s12 = int_to_ptr.vmem [resolvable:$true] %s215_s12 }
   0xc   : > { %s7148_s16 = scalar_lea.hbm %s8753_s3, 32768 }
   0xd   : > { %s8762_s10 = scalar_select %p7320_p8, 1, 0 }
   0xe   : > { %p6680_p9 = pneg %p7320_p8  ;;  %p7149_p11 = scmp.ne.s32.totalorder %s8753_s3, %s7148_s16 }
   0xf   : > { %p7155_p1 = scmp.lt.u32.totalorder %s7148_s16, %s8753_s3 }
  0x10   : > { %p7328_p10 = pnand %p8758_p7, %p6680_p9 }
  0x12   : > { %p7150_p12 = pneg %p7328_p10 }
  0x14   : > { %p7151_p13 = pnand %p7150_p12, %p7149_p11 }
  0x16   : > { %p7152_p0 = pneg %p7151_p13 }
  0x18   : > { %p7157_p2 = pnand %p7155_p1, %p7152_p0 }
  0x1a   : > { %7160 = shalt.err (!%p7157_p2)
}
  0x1b   : > { %s7161_s21 = scalar_lea.vmem %s216_s12, 32768  ;;  %p7169_p6 = scmp.lt.s32.totalorder %s216_s12, %s216_s12 }
  0x1c   : > { %p7162_p3 = scmp.ne.s32.totalorder %s216_s12, %s7161_s21  ;;  %p7170_p7 = scmp.lt.s32.totalorder %s7161_s21, %s7161_s21 }
  0x1e   : > { %p7164_p5 = pnand %p7162_p3, %p7150_p12  ;;  %p7171_p8 = por %p7170_p7, %p7169_p6 }
  0x20   : > { %p7165_p9 = pneg %p7164_p5 }
  0x22   : > { %p7172_p4 = pnand %p7171_p8, %p7165_p9 }
  0x24   : > { %7175 = shalt.err (!%p7172_p4)
}
  0x25   : > { %s7235_s22 = smov 128   ;;  %s7236_s23 = smov 8  }
  0x26   : > { %6683 = dma.hbm_to_vmem [thread:$0]  (!%p7328_p10), %s8753_s3, 32768, %s216_s12, [#allocation5], %s7235_s22, %s7235_s22, %s7236_s23  }
  0x27   : > { %p6181_p11 = scmp.ge.s32.totalorder %s7232_s26, 2 }
  0x28   : > { %p8764_p13 = scmp.ne.s32.totalorder (!%p6181_p11), %s8761_s9, 0 }
  0x29   : > { %234 = sbr.rel (%p6181_p11) target bundleno = 60 (0x3c), region = 40 }
  0x30   : > { %237 = sbr.rel (!%p8764_p13) target bundleno = 60 (0x3c), region = 44  ;;  %s239_s11 = sand.u32 (%p8764_p13), 1, %s7228_s25  }
  0x31   : > { %s6643_s14 = sshll.u32 (%p8764_p13), %s7232_s26, 6  ;;  %s6182_s15 = sshll.u32 (%p8764_p13), %s239_s11, 7 }
  0x32   : > { %s7356_s18 = scalar_lea.vmem (%p8764_p13), %s8750_s0, %s6643_s14  ;;  %s241_s9 = scalar_lea.vmem (%p8764_p13), [#allocation3], %s6182_s15 }
  0x33   : > { %v260_v0 = vld [vmem:[%s7356_s18] sm:$0xff] (%p8764_p13)   ;;  %v264_v1 = vld [vmem:[%s7356_s18 + $0x8] sm:$0xff] (%p8764_p13)   ;;  %v268_v2 = vld [vmem:[%s7356_s18 + $0x10] sm:$0xff] (%p8764_p13)  }
  0x34   : > { %261 = vst [vmem:[%s241_s9] sm:$0xff] (%p8764_p13), %v260_v0   ;;  %265 = vst [vmem:[%s241_s9 + $0x8] sm:$0xff] (%p8764_p13), %v264_v1   ;;  %v272_v3 = vld [vmem:[%s7356_s18 + $0x18] sm:$0xff] (%p8764_p13)   ;;  %v276_v4 = vld [vmem:[%s7356_s18 + $0x20] sm:$0xff] (%p8764_p13)  }
  0x35   : > { %269 = vst [vmem:[%s241_s9 + $0x10] sm:$0xff] (%p8764_p13), %v268_v2   ;;  %v280_v5 = vld [vmem:[%s7356_s18 + $0x28] sm:$0xff] (%p8764_p13)   ;;  %273 = vst [vmem:[%s241_s9 + $0x18] sm:$0xff] (%p8764_p13), %v272_v3   ;;  %v284_v6 = vld [vmem:[%s7356_s18 + $0x30] sm:$0xff] (%p8764_p13)  }
  0x36   : > { %277 = vst [vmem:[%s241_s9 + $0x20] sm:$0xff] (%p8764_p13), %v276_v4   ;;  %281 = vst [vmem:[%s241_s9 + $0x28] sm:$0xff] (%p8764_p13), %v280_v5   ;;  %v288_v7 = vld [vmem:[%s7356_s18 + $0x38] sm:$0xff] (%p8764_p13)   ;;  %v292_v8 = vld [vmem:[%s7356_s18 + $0x80] sm:$0xff] (%p8764_p13)  }
  0x37   : > { %285 = vst [vmem:[%s241_s9 + $0x30] sm:$0xff] %v284_v6   ;;  %289 = vst [vmem:[%s241_s9 + $0x38] sm:$0xff] %v288_v7   ;;  %v296_v9 = vld [vmem:[%s7356_s18 + $0x88] sm:$0xff]   ;;  %v300_v10 = vld [vmem:[%s7356_s18 + $0x90] sm:$0xff]  }
  0x38   : > { %293 = vst [vmem:[%s241_s9 + $0x40] sm:$0xff] %v292_v8   ;;  %v304_v11 = vld [vmem:[%s7356_s18 + $0x98] sm:$0xff]   ;;  %297 = vst [vmem:[%s241_s9 + $0x48] sm:$0xff] %v296_v9   ;;  %v308_v12 = vld [vmem:[%s7356_s18 + $0xa0] sm:$0xff]  }
  0x39   : > { %301 = vst [vmem:[%s241_s9 + $0x50] sm:$0xff] %v300_v10   ;;  %305 = vst [vmem:[%s241_s9 + $0x58] sm:$0xff] %v304_v11   ;;  %v312_v13 = vld [vmem:[%s7356_s18 + $0xa8] sm:$0xff]   ;;  %v316_v14 = vld [vmem:[%s7356_s18 + $0xb0] sm:$0xff]  }
  0x3a   : > { %309 = vst [vmem:[%s241_s9 + $0x60] sm:$0xff] %v308_v12   ;;  %313 = vst [vmem:[%s241_s9 + $0x68] sm:$0xff] %v312_v13   ;;  %v320_v15 = vld [vmem:[%s7356_s18 + $0xb8] sm:$0xff]  }
  0x3b   : > { %317 = vst [vmem:[%s241_s9 + $0x70] sm:$0xff] %v316_v14   ;;  %321 = vst [vmem:[%s241_s9 + $0x78] sm:$0xff] %v320_v15  }
  0x3c PF: > { %p8765_p4 = scmp.ne.s32.totalorder %s8762_s10, 0 }
  0x3d   : > { %s416_s26 = sand.u32 (!%p8765_p4), 1, %s7224_s24   ;;  %p8766_p6 = scmp.eq.s32.totalorder (!%p8765_p4), %s7298_s27, 0 }
  0x3e   : > { %413 = sbr.rel (%p8765_p4) target bundleno = 1378 (0x562), region = 85  ;;  %s6186_s12 = sshll.u32 (!%p8765_p4), %s416_s26, 7 }
  0x3f   : > { %s7377_s13 = scalar_lea.vmem (!%p8765_p4), [#allocation3], %s6186_s12 }
  0x45   : > { %7215 = dma.done.wait (%p8766_p6), [#allocation5], 32768   ;;  %p8767_p7 = pmov %p8766_p6 }
  0x46   : > { %p8768_p8 = scmp.ne.s32.totalorder %s7298_s27, 0 }
  0x47   : > { %7217 = vsyncadd (%p8767_p7), [#allocation5], 4294934528  ;;  %v7237_v16 = vmov (!%p8768_p8), 0.0  }
  0x48   : > { %451 = sbr.rel (%p8768_p8) target bundleno = 79 (0x4f), region = 97  ;;  %452 = vst [vmem:[#allocation2] sm:$0xff] (!%p8768_p8), %v7237_v16  ;;  %453 = vst [vmem:[#allocation2 + $0x8] sm:$0xff] (!%p8768_p8), %v7237_v16 }
  0x49   : > { %454 = vst [vmem:[#allocation2 + $0x10] sm:$0xff] (!%p8768_p8), %v7237_v16  ;;  %455 = vst [vmem:[#allocation2 + $0x18] sm:$0xff] (!%p8768_p8), %v7237_v16 }
  0x4f PF: > { %v456_v17 = vld [vmem:[%s8751_s1] sm:$0xff]  ;;  %vm669_vm0 = vcmask 1043456   ;;  %v457_v18 = vld [vmem:[%s8751_s1 + $0x8] sm:$0xff]  ;;  %v7238_v23 = vmov 0   ;;  %v458_v24 = vld [vmem:[%s8751_s1 + $0x10] sm:$0xff]  ;;  %vm644_vm1 = vcmask 64512   ;;  %v484_v58 = vlaneseq }
  0x50   : > { %v7391_v19 = vcombine.high %v456_v17, %v456_v17  ;;  %v7393_v20 = vcombine.high %v457_v18, %v457_v18  ;;  %v6197_v21 = vcombine.low %v456_v17, %v456_v17  ;;  %v6199_v22 = vcombine.low %v457_v18, %v457_v18  ;;  %750 = vmatprep.mubr.bf16.mxu0 %v7238_v23  ;;  %v459_v26 = vld [vmem:[%s8751_s1 + $0x18] sm:$0xff]  ;;  %v7416_v30 = vld [vmem:[%s7377_s13] sm:$0xff]   ;;  %v461_v36 = vld [vmem:[%s8751_s1 + $0x28] sm:$0xff]  ;;  %p6381_p10 = scmp.ne.s32.totalorder %s7298_s27, 1 }
  0x51   : > { %863 = vmatprep.mubr.bf16.mxu1 %v7238_v23  ;;  %v7400_v25 = vcombine.high %v458_v24, %v458_v24  ;;  %v6201_v27 = vcombine.low %v458_v24, %v458_v24  ;;  %v7418_v31 = vcombine.high %v459_v26, %v459_v26  ;;  %v6203_v32 = vcombine.low %v459_v26, %v459_v26  ;;  %v460_v35 = vld [vmem:[%s8751_s1 + $0x20] sm:$0xff]  ;;  %v7447_v37 = vld [vmem:[%s7377_s13 + $0x8] sm:$0xff]   ;;  %v7464_v40 = vld [vmem:[%s7377_s13 + $0x10] sm:$0xff]  }
  0x52   : > { %6213 = vmatprep.subr.msk.bf16.mxu0 %vm669_vm0, %v7391_v19  ;;  %6222 = vmatprep.subr.msk.bf16.mxu1 %vm669_vm0, %v7393_v20  ;;  %v7410_v28 = vsel %vm669_vm0, %v6197_v21, 0  ;;  %v7413_v29 = vsel %vm669_vm0, %v6199_v22, 0  ;;  %v7449_v38 = vcombine.high %v460_v35, %v460_v35  ;;  %v7451_v39 = vcombine.high %v461_v36, %v461_v36  ;;  %v7473_v41 = vld [vmem:[%s7377_s13 + $0x18] sm:$0xff]   ;;  %v7482_v42 = vld [vmem:[%s7377_s13 + $0x20] sm:$0xff]   ;;  %v7491_v43 = vld [vmem:[%s7377_s13 + $0x28] sm:$0xff]  }
  0x53   : > { %719 = vmatpush1.bf16.msra.mxu0 %v7410_v28  ;;  %832 = vmatpush1.bf16.msra.mxu1 %v7413_v29  ;;  %v7427_v33 = vsel %vm669_vm0, %v6201_v27, 0  ;;  %v7430_v34 = vsel %vm669_vm0, %v6203_v32, 0  ;;  %v7500_v44 = vld [vmem:[%s7377_s13 + $0x30] sm:$0xff]   ;;  %v7509_v45 = vld [vmem:[%s7377_s13 + $0x38] sm:$0xff]   ;;  %v6205_v46 = vcombine.low %v460_v35, %v460_v35  ;;  %v6207_v47 = vcombine.low %v461_v36, %v461_v36  ;;  %v7674_v62 = vld [vmem:[%s8752_s2] sm:$0xff] }
  0x54   : > { %6231 = vmatprep.subr.msk.bf16.mxu0 %vm669_vm0, %v7400_v25  ;;  %6240 = vmatprep.subr.msk.bf16.mxu1 %vm669_vm0, %v7418_v31  ;;  %v462_v48 = vld [vmem:[%s8751_s1 + $0x30] sm:$0xff]  ;;  %v463_v49 = vld [vmem:[%s8751_s1 + $0x38] sm:$0xff]  ;;  %v7663_v59 = vshrl.u32 %v484_v58, 7  ;;  %vm6030_vm2 = vcmask (!%p6381_p10), 1041408  }
  0x55   : > { %v7524_v50 = vsel %vm669_vm0, %v6205_v46, 0  ;;  %v7527_v51 = vsel %vm669_vm0, %v6207_v47, 0  ;;  %v7529_v52 = vcombine.high %v462_v48, %v462_v48  ;;  %v7531_v53 = vcombine.high %v463_v49, %v463_v49 }
  0x56   : > { %6214 = vmatmul.mubr.msk.bf16.vlgmr.msra.gmra.mrb[0].mxu0 %vm644_vm1, %v7416_v30  ;;  %6223 = vmatmul.mubr.msk.bf16.vlgmr.msra.gmra.mrb[0].mxu1 %vm644_vm1, %v7416_v30  ;;  %v6209_v54 = vcombine.low %v462_v48, %v462_v48  ;;  %v6211_v55 = vcombine.low %v463_v49, %v463_v49  ;;  %v7668_v60 = vsub.s32 0, %v7663_v59  ;;  %v494_v61 = vsub.s32 2, %v7663_v59 }
  0x57   : > { %945 = vmatpush1.bf16.msra.mxu0 %v7427_v33  ;;  %1058 = vmatpush1.bf16.msra.mxu1 %v7430_v34  ;;  %v7677_v63 = vsub.s32 1, %v7663_v59  ;;  %v498_v0 = vsub.s32 3, %v7663_v59 }
  0x58   : > { %760 = vmatprep.mubr.bf16.mxu0 %v7238_v23  ;;  %873 = vmatprep.mubr.bf16.mxu1 %v7238_v23  ;;  %v7588_v56 = vsel %vm669_vm0, %v6209_v54, 0  ;;  %v7591_v57 = vsel %vm669_vm0, %v6211_v55, 0  ;;  %v7686_v1 = vrot.slane %v7674_v62, %v7668_v60  ;;  %v7691_v2 = vrot.slane %v7674_v62, %v494_v61 }
  0x59   : > { %6249 = vmatprep.subr.msk.bf16.mxu0 %vm669_vm0, %v7449_v38  ;;  %6258 = vmatprep.subr.msk.bf16.mxu1 %vm669_vm0, %v7451_v39  ;;  %v7695_v3 = vrot.slane %v7674_v62, %v7677_v63  ;;  %v7700_v4 = vrot.slane %v7674_v62, %v498_v0 }
  0x5e   : > { %6215 = vmatmul.mubr.msk.bf16.gmra.mrb[4].mxu0 %vm644_vm1, %v7447_v37  ;;  %6224 = vmatmul.mubr.msk.bf16.gmra.mrb[4].mxu1 %vm644_vm1, %v7447_v37 }
  0x5f   : > { %770 = vmatprep.mubr.bf16.mxu0 %v7238_v23  ;;  %883 = vmatprep.mubr.bf16.mxu1 %v7238_v23 }
  0x66   : > { %6216 = vmatmul.mubr.msk.bf16.gmra.mrb[8].mxu0 %vm644_vm1, %v7464_v40  ;;  %6225 = vmatmul.mubr.msk.bf16.gmra.mrb[8].mxu1 %vm644_vm1, %v7464_v40 }
  0x67   : > { %780 = vmatprep.mubr.bf16.mxu0 %v7238_v23  ;;  %893 = vmatprep.mubr.bf16.mxu1 %v7238_v23 }
  0x6e   : > { %6217 = vmatmul.mubr.msk.bf16.gmra.mrb[12].mxu0 %vm644_vm1, %v7473_v41  ;;  %6226 = vmatmul.mubr.msk.bf16.gmra.mrb[12].mxu1 %vm644_vm1, %v7473_v41 }
  0x6f   : > { %790 = vmatprep.mubr.bf16.mxu0 %v7238_v23  ;;  %903 = vmatprep.mubr.bf16.mxu1 %v7238_v23 }
  0x76   : > { %6218 = vmatmul.mubr.msk.bf16.gmra.mrb[16].mxu0 %vm644_vm1, %v7482_v42  ;;  %6227 = vmatmul.mubr.msk.bf16.gmra.mrb[16].mxu1 %vm644_vm1, %v7482_v42 }
  0x77   : > { %800 = vmatprep.mubr.bf16.mxu0 %v7238_v23  ;;  %913 = vmatprep.mubr.bf16.mxu1 %v7238_v23 }
  0x7e   : > { %6219 = vmatmul.mubr.msk.bf16.gmra.mrb[20].mxu0 %vm644_vm1, %v7491_v43  ;;  %6228 = vmatmul.mubr.msk.bf16.gmra.mrb[20].mxu1 %vm644_vm1, %v7491_v43 }
  0x7f   : > { %810 = vmatprep.mubr.bf16.mxu0 %v7238_v23  ;;  %923 = vmatprep.mubr.bf16.mxu1 %v7238_v23 }
  0x86   : > { %6220 = vmatmul.mubr.msk.bf16.gmra.mrb[24].mxu0 %vm644_vm1, %v7500_v44  ;;  %6229 = vmatmul.mubr.msk.bf16.gmra.mrb[24].mxu1 %vm644_vm1, %v7500_v44 }
  0x87   : > { %820 = vmatprep.mubr.bf16.mxu0 %v7238_v23  ;;  %933 = vmatprep.mubr.bf16.mxu1 %v7238_v23 }
  0x8e   : > { %6221 = vmatmul.mubr.msk.bf16.gmra.mrb[28].mxu0 %vm644_vm1, %v7509_v45  ;;  %6230 = vmatmul.mubr.msk.bf16.gmra.mrb[28].mxu1 %vm644_vm1, %v7509_v45 }
  0x8f   : > { %976 = vmatprep.mubr.bf16.mxu0 %v7238_v23  ;;  %1089 = vmatprep.mubr.bf16.mxu1 %v7238_v23 }
  0x96   : > { %6232 = vmatmul.mubr.msk.bf16.vlgmr.msra.gmra.mrb[32].mxu0 %vm644_vm1, %v7416_v30  ;;  %6241 = vmatmul.mubr.msk.bf16.vlgmr.msra.gmra.mrb[32].mxu1 %vm644_vm1, %v7416_v30 }
  0x97   : > { %1171 = vmatpush1.bf16.msra.mxu0 %v7524_v50  ;;  %1284 = vmatpush1.bf16.msra.mxu1 %v7527_v51 }
  0x98   : > { %986 = vmatprep.mubr.bf16.mxu0 %v7238_v23  ;;  %1099 = vmatprep.mubr.bf16.mxu1 %v7238_v23 }
  0x99   : > { %6267 = vmatprep.subr.msk.bf16.mxu0 %vm669_vm0, %v7529_v52  ;;  %6276 = vmatprep.subr.msk.bf16.mxu1 %vm669_vm0, %v7531_v53 }
  0x9e   : > { %6233 = vmatmul.mubr.msk.bf16.gmra.mrb[36].mxu0 %vm644_vm1, %v7447_v37  ;;  %6242 = vmatmul.mubr.msk.bf16.gmra.mrb[36].mxu1 %vm644_vm1, %v7447_v37 }
  0x9f   : > { %996 = vmatprep.mubr.bf16.mxu0 %v7238_v23  ;;  %1109 = vmatprep.mubr.bf16.mxu1 %v7238_v23 }
  0xa6   : > { %6234 = vmatmul.mubr.msk.bf16.gmra.mrb[40].mxu0 %vm644_vm1, %v7464_v40  ;;  %6243 = vmatmul.mubr.msk.bf16.gmra.mrb[40].mxu1 %vm644_vm1, %v7464_v40 }
  0xa7   : > { %1006 = vmatprep.mubr.bf16.mxu0 %v7238_v23  ;;  %1119 = vmatprep.mubr.bf16.mxu1 %v7238_v23 }
  0xae   : > { %6235 = vmatmul.mubr.msk.bf16.gmra.mrb[44].mxu0 %vm644_vm1, %v7473_v41  ;;  %6244 = vmatmul.mubr.msk.bf16.gmra.mrb[44].mxu1 %vm644_vm1, %v7473_v41 }
  0xaf   : > { %1016 = vmatprep.mubr.bf16.mxu0 %v7238_v23  ;;  %1129 = vmatprep.mubr.bf16.mxu1 %v7238_v23 }
  0xb6   : > { %6236 = vmatmul.mubr.msk.bf16.gmra.mrb[48].mxu0 %vm644_vm1, %v7482_v42  ;;  %6245 = vmatmul.mubr.msk.bf16.gmra.mrb[48].mxu1 %vm644_vm1, %v7482_v42 }
  0xb7   : > { %1026 = vmatprep.mubr.bf16.mxu0 %v7238_v23  ;;  %1139 = vmatprep.mubr.bf16.mxu1 %v7238_v23 }
  0xbe   : > { %6237 = vmatmul.mubr.msk.bf16.gmra.mrb[52].mxu0 %vm644_vm1, %v7491_v43  ;;  %6246 = vmatmul.mubr.msk.bf16.gmra.mrb[52].mxu1 %vm644_vm1, %v7491_v43 }
  0xbf   : > { %1036 = vmatprep.mubr.bf16.mxu0 %v7238_v23  ;;  %1149 = vmatprep.mubr.bf16.mxu1 %v7238_v23 }
  0xc6   : > { %6238 = vmatmul.mubr.msk.bf16.gmra.mrb[56].mxu0 %vm644_vm1, %v7500_v44  ;;  %6247 = vmatmul.mubr.msk.bf16.gmra.mrb[56].mxu1 %vm644_vm1, %v7500_v44 }
  0xc7   : > { %1046 = vmatprep.mubr.bf16.mxu0 %v7238_v23  ;;  %1159 = vmatprep.mubr.bf16.mxu1 %v7238_v23 }
  0xce   : > { %6239 = vmatmul.mubr.msk.bf16.gmra.mrb[60].mxu0 %vm644_vm1, %v7509_v45  ;;  %6248 = vmatmul.mubr.msk.bf16.gmra.mrb[60].mxu1 %vm644_vm1, %v7509_v45 }
  0xcf   : > { %1202 = vmatprep.mubr.bf16.mxu0 %v7238_v23  ;;  %1315 = vmatprep.mubr.bf16.mxu1 %v7238_v23 }
  0xd6   : > { %6250 = vmatmul.mubr.msk.bf16.vlgmr.msra.gmra.mrb[64].mxu0 %vm644_vm1, %v7416_v30  ;;  %6259 = vmatmul.mubr.msk.bf16.vlgmr.msra.gmra.mrb[64].mxu1 %vm644_vm1, %v7416_v30 }
  0xd7   : > { %1397 = vmatpush1.bf16.msra.mxu0 %v7588_v56  ;;  %1510 = vmatpush1.bf16.msra.mxu1 %v7591_v57 }
  0xd8   : > { %1212 = vmatprep.mubr.bf16.mxu0 %v7238_v23  ;;  %1325 = vmatprep.mubr.bf16.mxu1 %v7238_v23 }
  0xd9   : > { %6309 = vmatprep.subr.msk.bf16.mxu0 %vm669_vm0, %v7391_v19  ;;  %6318 = vmatprep.subr.msk.bf16.mxu1 %vm669_vm0, %v7393_v20 }
  0xde   : > { %6251 = vmatmul.mubr.msk.bf16.gmra.mrb[68].mxu0 %vm644_vm1, %v7447_v37  ;;  %6260 = vmatmul.mubr.msk.bf16.gmra.mrb[68].mxu1 %vm644_vm1, %v7447_v37 }
  0xdf   : > { %1222 = vmatprep.mubr.bf16.mxu0 %v7238_v23  ;;  %1335 = vmatprep.mubr.bf16.mxu1 %v7238_v23 }
  0xe6   : > { %6252 = vmatmul.mubr.msk.bf16.gmra.mrb[72].mxu0 %vm644_vm1, %v7464_v40  ;;  %6261 = vmatmul.mubr.msk.bf16.gmra.mrb[72].mxu1 %vm644_vm1, %v7464_v40 }
  0xe7   : > { %1232 = vmatprep.mubr.bf16.mxu0 %v7238_v23  ;;  %1345 = vmatprep.mubr.bf16.mxu1 %v7238_v23 }
  0xee   : > { %6253 = vmatmul.mubr.msk.bf16.gmra.mrb[76].mxu0 %vm644_vm1, %v7473_v41  ;;  %6262 = vmatmul.mubr.msk.bf16.gmra.mrb[76].mxu1 %vm644_vm1, %v7473_v41 }
  0xef   : > { %1242 = vmatprep.mubr.bf16.mxu0 %v7238_v23  ;;  %1355 = vmatprep.mubr.bf16.mxu1 %v7238_v23 }
  0xf6   : > { %6254 = vmatmul.mubr.msk.bf16.gmra.mrb[80].mxu0 %vm644_vm1, %v7482_v42  ;;  %6263 = vmatmul.mubr.msk.bf16.gmra.mrb[80].mxu1 %vm644_vm1, %v7482_v42 }
  0xf7   : > { %1252 = vmatprep.mubr.bf16.mxu0 %v7238_v23  ;;  %1365 = vmatprep.mubr.bf16.mxu1 %v7238_v23 }
  0xfe   : > { %6255 = vmatmul.mubr.msk.bf16.gmra.mrb[84].mxu0 %vm644_vm1, %v7491_v43  ;;  %6264 = vmatmul.mubr.msk.bf16.gmra.mrb[84].mxu1 %vm644_vm1, %v7491_v43 }
  0xff   : > { %1262 = vmatprep.mubr.bf16.mxu0 %v7238_v23  ;;  %1375 = vmatprep.mubr.bf16.mxu1 %v7238_v23 }
 0x106   : > { %6256 = vmatmul.mubr.msk.bf16.gmra.mrb[88].mxu0 %vm644_vm1, %v7500_v44  ;;  %6265 = vmatmul.mubr.msk.bf16.gmra.mrb[88].mxu1 %vm644_vm1, %v7500_v44 }
 0x107   : > { %1272 = vmatprep.mubr.bf16.mxu0 %v7238_v23  ;;  %1385 = vmatprep.mubr.bf16.mxu1 %v7238_v23 }
 0x10e   : > { %6257 = vmatmul.mubr.msk.bf16.gmra.mrb[92].mxu0 %vm644_vm1, %v7509_v45  ;;  %6266 = vmatmul.mubr.msk.bf16.gmra.mrb[92].mxu1 %vm644_vm1, %v7509_v45 }
 0x10f   : > { %1428 = vmatprep.mubr.bf16.mxu0 %v7238_v23  ;;  %1541 = vmatprep.mubr.bf16.mxu1 %v7238_v23 }
 0x116   : > { %6268 = vmatmul.mubr.msk.bf16.vlgmr.msra.gmra.mrb[96].mxu0 %vm644_vm1, %v7416_v30  ;;  %6277 = vmatmul.mubr.msk.bf16.vlgmr.msra.gmra.mrb[96].mxu1 %vm644_vm1, %v7416_v30 }
 0x117   : > { %2419 = vmatpush1.bf16.msra.mxu0 %v7410_v28  ;;  %2532 = vmatpush1.bf16.msra.mxu1 %v7413_v29 }
 0x118   : > { %1438 = vmatprep.mubr.bf16.mxu0 %v7238_v23  ;;  %1551 = vmatprep.mubr.bf16.mxu1 %v7238_v23 }
 0x119   : > { %6327 = vmatprep.subr.msk.bf16.mxu0 %vm669_vm0, %v7400_v25  ;;  %6336 = vmatprep.subr.msk.bf16.mxu1 %vm669_vm0, %v7418_v31 }
 0x11e   : > { %6269 = vmatmul.mubr.msk.bf16.gmra.mrb[100].mxu0 %vm644_vm1, %v7447_v37  ;;  %6278 = vmatmul.mubr.msk.bf16.gmra.mrb[100].mxu1 %vm644_vm1, %v7447_v37 }
 0x11f   : > { %1448 = vmatprep.mubr.bf16.mxu0 %v7238_v23  ;;  %1561 = vmatprep.mubr.bf16.mxu1 %v7238_v23 }
 0x126   : > { %6270 = vmatmul.mubr.msk.bf16.gmra.mrb[104].mxu0 %vm644_vm1, %v7464_v40  ;;  %6279 = vmatmul.mubr.msk.bf16.gmra.mrb[104].mxu1 %vm644_vm1, %v7464_v40 }
 0x127   : > { %1458 = vmatprep.mubr.bf16.mxu0 %v7238_v23  ;;  %1571 = vmatprep.mubr.bf16.mxu1 %v7238_v23 }
 0x129   : > { %v752_v5 = vpop.f32.mrb[0].mxu0  ;;  %v865_v6 = vpop.f32.mrb[0].mxu1 }
 0x12a   : > { %v753_v7 = vadd.f32 %v752_v5, %v7686_v1  ;;  %v866_v8 = vadd.f32 %v865_v6, %v7691_v2  ;;  %v754_v9 = vpop.f32.mrb[1].mxu0  ;;  %v867_v10 = vpop.f32.mrb[1].mxu1 }
 0x12b   : > { %v755_v11 = vadd.f32 %v754_v9, %v7695_v3  ;;  %v868_v12 = vadd.f32 %v867_v10, %v7700_v4  ;;  %v756_v13 = vpop.f32.mrb[2].mxu0  ;;  %v869_v14 = vpop.f32.mrb[2].mxu1 }
 0x12c   : > { %v757_v15 = vadd.f32 %v756_v13, %v7686_v1  ;;  %v870_v16 = vadd.f32 %v869_v14, %v7691_v2  ;;  %v758_v17 = vpop.f32.mrb[3].mxu0  ;;  %v871_v18 = vpop.f32.mrb[3].mxu1  ;;  %v1622_v21 = vmax.f32 %v753_v7, 0.0  ;;  %v1624_v22 = vmax.f32 %v866_v8, 0.0 }
 0x12d   : > { %v759_v19 = vadd.f32 %v758_v17, %v7695_v3  ;;  %v872_v20 = vadd.f32 %v871_v18, %v7700_v4  ;;  %v1623_v26 = vmax.f32 %v755_v11, 0.0  ;;  %v1625_v27 = vmax.f32 %v868_v12, 0.0 }
 0x12e   : > { %v1638_v24 = vmax.f32 %v757_v15, 0.0  ;;  %v1640_v25 = vmax.f32 %v870_v16, 0.0  ;;  %6271 = vmatmul.mubr.msk.bf16.gmra.mrb[108].mxu0 %vm644_vm1, %v7473_v41  ;;  %6280 = vmatmul.mubr.msk.bf16.gmra.mrb[108].mxu1 %vm644_vm1, %v7473_v41 }
 0x12f   : > { %v1639_v28 = vmax.f32 %v759_v19, 0.0  ;;  %v1641_v29 = vmax.f32 %v872_v20, 0.0  ;;  %1468 = vmatprep.mubr.bf16.mxu0 %v7238_v23  ;;  %1581 = vmatprep.mubr.bf16.mxu1 %v7238_v23 }
 0x130   : > { %v1881_v30 = vadd.f32 %v1638_v24, %v1622_v21  ;;  %v1923_v31 = vadd.f32 %v1640_v25, %v1624_v22 }
 0x131   : > { %v1902_v32 = vadd.f32 %v1639_v28, %v1623_v26  ;;  %v1944_v35 = vadd.f32 %v1641_v29, %v1625_v27  ;;  %v762_v36 = vpop.f32.mrb[4].mxu0  ;;  %v875_v37 = vpop.f32.mrb[4].mxu1 }
 0x132   : > { %v763_v40 = vadd.f32 %v762_v36, %v7686_v1  ;;  %v876_v46 = vadd.f32 %v875_v37, %v7691_v2  ;;  %v764_v47 = vpop.f32.mrb[5].mxu0  ;;  %v877_v41 = vpop.f32.mrb[5].mxu1 }
 0x133   : > { %v765_v48 = vadd.f32 %v764_v47, %v7695_v3  ;;  %v878_v49 = vadd.f32 %v877_v41, %v7700_v4  ;;  %v766_v54 = vpop.f32.mrb[6].mxu0  ;;  %v879_v55 = vpop.f32.mrb[6].mxu1 }
 0x134   : > { %v1654_v58 = vmax.f32 %v763_v40, 0.0  ;;  %v1656_v5 = vmax.f32 %v876_v46, 0.0  ;;  %v767_v6 = vadd.f32 %v766_v54, %v7686_v1  ;;  %v880_v7 = vadd.f32 %v879_v55, %v7691_v2  ;;  %v768_v8 = vpop.f32.mrb[7].mxu0  ;;  %v881_v9 = vpop.f32.mrb[7].mxu1 }
 0x135   : > { %v1655_v10 = vmax.f32 %v765_v48, 0.0  ;;  %v1657_v11 = vmax.f32 %v878_v49, 0.0  ;;  %v769_v12 = vadd.f32 %v768_v8, %v7695_v3  ;;  %v882_v13 = vadd.f32 %v881_v9, %v7700_v4 }
 0x136   : > { %v1882_v14 = vadd.f32 %v1881_v30, %v1654_v58  ;;  %v1924_v15 = vadd.f32 %v1923_v31, %v1656_v5  ;;  %v1670_v16 = vmax.f32 %v767_v6, 0.0  ;;  %v1672_v17 = vmax.f32 %v880_v7, 0.0  ;;  %6272 = vmatmul.mubr.msk.bf16.gmra.mrb[112].mxu0 %vm644_vm1, %v7482_v42  ;;  %6281 = vmatmul.mubr.msk.bf16.gmra.mrb[112].mxu1 %vm644_vm1, %v7482_v42 }
 0x137   : > { %v1903_v18 = vadd.f32 %v1902_v32, %v1655_v10  ;;  %v1945_v19 = vadd.f32 %v1944_v35, %v1657_v11  ;;  %v1671_v20 = vmax.f32 %v769_v12, 0.0  ;;  %v1673_v21 = vmax.f32 %v882_v13, 0.0  ;;  %1478 = vmatprep.mubr.bf16.mxu0 %v7238_v23  ;;  %1591 = vmatprep.mubr.bf16.mxu1 %v7238_v23 }
 0x138   : > { %v1883_v22 = vadd.f32 %v1882_v14, %v1670_v16  ;;  %v1925_v24 = vadd.f32 %v1924_v15, %v1672_v17 }
 0x139   : > { %v1904_v25 = vadd.f32 %v1903_v18, %v1671_v20  ;;  %v1946_v26 = vadd.f32 %v1945_v19, %v1673_v21  ;;  %v772_v27 = vpop.f32.mrb[8].mxu0  ;;  %v885_v28 = vpop.f32.mrb[8].mxu1 }
 0x13a   : > { %v773_v29 = vadd.f32 %v772_v27, %v7686_v1  ;;  %v886_v30 = vadd.f32 %v885_v28, %v7691_v2  ;;  %v774_v31 = vpop.f32.mrb[9].mxu0  ;;  %v887_v42 = vpop.f32.mrb[9].mxu1 }
 0x13b   : > { %v775_v32 = vadd.f32 %v774_v31, %v7695_v3  ;;  %v888_v35 = vadd.f32 %v887_v42, %v7700_v4  ;;  %v776_v36 = vpop.f32.mrb[10].mxu0  ;;  %v889_v37 = vpop.f32.mrb[10].mxu1 }
 0x13c   : > { %v1686_v40 = vmax.f32 %v773_v29, 0.0  ;;  %v1688_v46 = vmax.f32 %v886_v30, 0.0  ;;  %v777_v47 = vadd.f32 %v776_v36, %v7686_v1  ;;  %v890_v41 = vadd.f32 %v889_v37, %v7691_v2  ;;  %v778_v48 = vpop.f32.mrb[11].mxu0  ;;  %v891_v49 = vpop.f32.mrb[11].mxu1 }
 0x13d   : > { %v1687_v54 = vmax.f32 %v775_v32, 0.0  ;;  %v1689_v55 = vmax.f32 %v888_v35, 0.0  ;;  %v779_v58 = vadd.f32 %v778_v48, %v7695_v3  ;;  %v892_v5 = vadd.f32 %v891_v49, %v7700_v4 }
 0x13e   : > { %v1884_v6 = vadd.f32 %v1883_v22, %v1686_v40  ;;  %v1926_v7 = vadd.f32 %v1925_v24, %v1688_v46  ;;  %v1702_v8 = vmax.f32 %v777_v47, 0.0  ;;  %v1704_v9 = vmax.f32 %v890_v41, 0.0  ;;  %6273 = vmatmul.mubr.msk.bf16.gmra.mrb[116].mxu0 %vm644_vm1, %v7491_v43  ;;  %6282 = vmatmul.mubr.msk.bf16.gmra.mrb[116].mxu1 %vm644_vm1, %v7491_v43 }
 0x13f   : > { %v1905_v10 = vadd.f32 %v1904_v25, %v1687_v54  ;;  %v1947_v11 = vadd.f32 %v1946_v26, %v1689_v55  ;;  %v1703_v12 = vmax.f32 %v779_v58, 0.0  ;;  %v1705_v13 = vmax.f32 %v892_v5, 0.0  ;;  %1488 = vmatprep.mubr.bf16.mxu0 %v7238_v23  ;;  %1601 = vmatprep.mubr.bf16.mxu1 %v7238_v23 }
 0x140   : > { %v1885_v14 = vadd.f32 %v1884_v6, %v1702_v8  ;;  %v1927_v15 = vadd.f32 %v1926_v7, %v1704_v9 }
 0x141   : > { %v1906_v16 = vadd.f32 %v1905_v10, %v1703_v12  ;;  %v1948_v17 = vadd.f32 %v1947_v11, %v1705_v13  ;;  %v782_v18 = vpop.f32.mrb[12].mxu0  ;;  %v895_v19 = vpop.f32.mrb[12].mxu1 }
 0x142   : > { %v783_v20 = vadd.f32 %v782_v18, %v7686_v1  ;;  %v896_v21 = vadd.f32 %v895_v19, %v7691_v2  ;;  %v784_v22 = vpop.f32.mrb[13].mxu0  ;;  %v897_v43 = vpop.f32.mrb[13].mxu1 }
 0x143   : > { %v785_v24 = vadd.f32 %v784_v22, %v7695_v3  ;;  %v898_v25 = vadd.f32 %v897_v43, %v7700_v4  ;;  %v786_v26 = vpop.f32.mrb[14].mxu0  ;;  %v899_v27 = vpop.f32.mrb[14].mxu1 }
 0x144   : > { %v1718_v28 = vmax.f32 %v783_v20, 0.0  ;;  %v1720_v29 = vmax.f32 %v896_v21, 0.0  ;;  %v787_v30 = vadd.f32 %v786_v26, %v7686_v1  ;;  %v900_v31 = vadd.f32 %v899_v27, %v7691_v2  ;;  %v788_v42 = vpop.f32.mrb[15].mxu0  ;;  %v901_v32 = vpop.f32.mrb[15].mxu1 }
 0x145   : > { %v1719_v35 = vmax.f32 %v785_v24, 0.0  ;;  %v1721_v36 = vmax.f32 %v898_v25, 0.0  ;;  %v789_v37 = vadd.f32 %v788_v42, %v7695_v3  ;;  %v902_v40 = vadd.f32 %v901_v32, %v7700_v4 }
 0x146   : > { %v1886_v46 = vadd.f32 %v1885_v14, %v1718_v28  ;;  %v1928_v47 = vadd.f32 %v1927_v15, %v1720_v29  ;;  %v1734_v41 = vmax.f32 %v787_v30, 0.0  ;;  %v1736_v48 = vmax.f32 %v900_v31, 0.0  ;;  %6274 = vmatmul.mubr.msk.bf16.gmra.mrb[120].mxu0 %vm644_vm1, %v7500_v44  ;;  %6283 = vmatmul.mubr.msk.bf16.gmra.mrb[120].mxu1 %vm644_vm1, %v7500_v44 }
 0x147   : > { %v1907_v49 = vadd.f32 %v1906_v16, %v1719_v35  ;;  %v1949_v54 = vadd.f32 %v1948_v17, %v1721_v36  ;;  %v1735_v55 = vmax.f32 %v789_v37, 0.0  ;;  %v1737_v58 = vmax.f32 %v902_v40, 0.0  ;;  %1498 = vmatprep.mubr.bf16.mxu0 %v7238_v23  ;;  %1611 = vmatprep.mubr.bf16.mxu1 %v7238_v23 }
 0x148   : > { %v1887_v5 = vadd.f32 %v1886_v46, %v1734_v41  ;;  %v1929_v6 = vadd.f32 %v1928_v47, %v1736_v48 }
 0x149   : > { %v1908_v7 = vadd.f32 %v1907_v49, %v1735_v55  ;;  %v1950_v8 = vadd.f32 %v1949_v54, %v1737_v58  ;;  %v792_v9 = vpop.f32.mrb[16].mxu0  ;;  %v905_v10 = vpop.f32.mrb[16].mxu1  ;;  %v7777_v58 = vld [vmem:[%s7377_s13 + $0x40] sm:$0xff]  }
 0x14a   : > { %v793_v11 = vadd.f32 %v792_v9, %v7686_v1  ;;  %v906_v12 = vadd.f32 %v905_v10, %v7691_v2  ;;  %v794_v13 = vpop.f32.mrb[17].mxu0  ;;  %v907_v44 = vpop.f32.mrb[17].mxu1 }
 0x14b   : > { %v795_v14 = vadd.f32 %v794_v13, %v7695_v3  ;;  %v908_v15 = vadd.f32 %v907_v44, %v7700_v4  ;;  %v796_v16 = vpop.f32.mrb[18].mxu0  ;;  %v909_v17 = vpop.f32.mrb[18].mxu1 }
 0x14c   : > { %v1750_v18 = vmax.f32 %v793_v11, 0.0  ;;  %v1752_v19 = vmax.f32 %v906_v12, 0.0  ;;  %v797_v20 = vadd.f32 %v796_v16, %v7686_v1  ;;  %v910_v21 = vadd.f32 %v909_v17, %v7691_v2  ;;  %v798_v22 = vpop.f32.mrb[19].mxu0  ;;  %v911_v43 = vpop.f32.mrb[19].mxu1 }
 0x14d   : > { %v1751_v24 = vmax.f32 %v795_v14, 0.0  ;;  %v1753_v25 = vmax.f32 %v908_v15, 0.0  ;;  %v799_v26 = vadd.f32 %v798_v22, %v7695_v3  ;;  %v912_v27 = vadd.f32 %v911_v43, %v7700_v4 }
 0x14e   : > { %v1888_v28 = vadd.f32 %v1887_v5, %v1750_v18  ;;  %v1930_v29 = vadd.f32 %v1929_v6, %v1752_v19  ;;  %v1766_v30 = vmax.f32 %v797_v20, 0.0  ;;  %v1768_v31 = vmax.f32 %v910_v21, 0.0  ;;  %6275 = vmatmul.mubr.msk.bf16.gmra.mrb[124].mxu0 %vm644_vm1, %v7509_v45  ;;  %6284 = vmatmul.mubr.msk.bf16.gmra.mrb[124].mxu1 %vm644_vm1, %v7509_v45 }
 0x14f   : > { %v1909_v42 = vadd.f32 %v1908_v7, %v1751_v24  ;;  %v1951_v32 = vadd.f32 %v1950_v8, %v1753_v25  ;;  %v1767_v35 = vmax.f32 %v799_v26, 0.0  ;;  %v1769_v36 = vmax.f32 %v912_v27, 0.0  ;;  %2450 = vmatprep.mubr.bf16.mxu0 %v7238_v23  ;;  %2563 = vmatprep.mubr.bf16.mxu1 %v7238_v23 }
 0x150   : > { %v1889_v37 = vadd.f32 %v1888_v28, %v1766_v30  ;;  %v1931_v40 = vadd.f32 %v1930_v29, %v1768_v31 }
 0x151   : > { %v1910_v46 = vadd.f32 %v1909_v42, %v1767_v35  ;;  %v1952_v47 = vadd.f32 %v1951_v32, %v1769_v36  ;;  %v802_v41 = vpop.f32.mrb[20].mxu0  ;;  %v915_v48 = vpop.f32.mrb[20].mxu1  ;;  %v502_v42 = vsub.s32 4, %v7663_v59  ;;  %v7801_v36 = vld [vmem:[%s7377_s13 + $0x48] sm:$0xff]  }
 0x152   : > { %v803_v49 = vadd.f32 %v802_v41, %v7686_v1  ;;  %v916_v54 = vadd.f32 %v915_v48, %v7691_v2  ;;  %v804_v45 = vpop.f32.mrb[21].mxu0  ;;  %v917_v55 = vpop.f32.mrb[21].mxu1  ;;  %v7239_v48 = vmov 1966171168  }
 0x153   : > { %v805_v5 = vadd.f32 %v804_v45, %v7695_v3  ;;  %v918_v6 = vadd.f32 %v917_v55, %v7700_v4  ;;  %v806_v7 = vpop.f32.mrb[22].mxu0  ;;  %v919_v8 = vpop.f32.mrb[22].mxu1 }
 0x154   : > { %v1782_v9 = vmax.f32 %v803_v49, 0.0  ;;  %v1784_v10 = vmax.f32 %v916_v54, 0.0  ;;  %v807_v11 = vadd.f32 %v806_v7, %v7686_v1  ;;  %v920_v12 = vadd.f32 %v919_v8, %v7691_v2  ;;  %v808_v13 = vpop.f32.mrb[23].mxu0  ;;  %v921_v44 = vpop.f32.mrb[23].mxu1 }
 0x155   : > { %v1783_v14 = vmax.f32 %v805_v5, 0.0  ;;  %v1785_v15 = vmax.f32 %v918_v6, 0.0  ;;  %v809_v16 = vadd.f32 %v808_v13, %v7695_v3  ;;  %v922_v17 = vadd.f32 %v921_v44, %v7700_v4 }
 0x156   : > { %v1890_v18 = vadd.f32 %v1889_v37, %v1782_v9  ;;  %v1932_v19 = vadd.f32 %v1931_v40, %v1784_v10  ;;  %v1798_v20 = vmax.f32 %v807_v11, 0.0  ;;  %v1800_v21 = vmax.f32 %v920_v12, 0.0  ;;  %6310 = vmatmul.mubr.msk.bf16.vlgmr.msra.gmra.mrb[128].mxu0 %vm644_vm1, %v7777_v58  ;;  %6319 = vmatmul.mubr.msk.bf16.vlgmr.msra.gmra.mrb[128].mxu1 %vm644_vm1, %v7777_v58 }
 0x157   : > { %v1911_v22 = vadd.f32 %v1910_v46, %v1783_v14  ;;  %v1953_v43 = vadd.f32 %v1952_v47, %v1785_v15  ;;  %v1799_v24 = vmax.f32 %v809_v16, 0.0  ;;  %v1801_v25 = vmax.f32 %v922_v17, 0.0  ;;  %2645 = vmatpush1.bf16.msra.mxu0 %v7427_v33  ;;  %2758 = vmatpush1.bf16.msra.mxu1 %v7430_v34 }
 0x158   : > { %v1891_v26 = vadd.f32 %v1890_v18, %v1798_v20  ;;  %v1933_v27 = vadd.f32 %v1932_v19, %v1800_v21  ;;  %2460 = vmatprep.mubr.bf16.mxu0 %v7238_v23  ;;  %2573 = vmatprep.mubr.bf16.mxu1 %v7238_v23  ;;  %v510_v37 = vsub.s32 6, %v7663_v59  ;;  %v506_v40 = vsub.s32 5, %v7663_v59 }
 0x159   : > { %v1912_v28 = vadd.f32 %v1911_v22, %v1799_v24  ;;  %v1954_v29 = vadd.f32 %v1953_v43, %v1801_v25  ;;  %v812_v30 = vpop.f32.mrb[24].mxu0  ;;  %v925_v31 = vpop.f32.mrb[24].mxu1  ;;  %6345 = vmatprep.subr.msk.bf16.mxu0 %vm669_vm0, %v7449_v38  ;;  %6354 = vmatprep.subr.msk.bf16.mxu1 %vm669_vm0, %v7451_v39  ;;  %v7807_v39 = vunpack.c.l.s4 %v7239_v48  ;;  %v8760_v49 = vsub.s32 7, %v7663_v59 }
 0x15a   : > { %v813_v33 = vadd.f32 %v812_v30, %v7686_v1  ;;  %v926_v34 = vadd.f32 %v925_v31, %v7691_v2  ;;  %v814_v32 = vpop.f32.mrb[25].mxu0  ;;  %v927_v35 = vpop.f32.mrb[25].mxu1  ;;  %v7823_v25 = vrot.slane %v7674_v62, %v502_v42  ;;  %v7828_v30 = vld [vmem:[%s7377_s13 + $0x50] sm:$0xff]   ;;  %v7833_v31 = vrot.slane %v7674_v62, %v510_v37 }
 0x15b   : > { %v815_v46 = vadd.f32 %v814_v32, %v7695_v3  ;;  %v928_v47 = vadd.f32 %v927_v35, %v7700_v4  ;;  %v816_v38 = vpop.f32.mrb[26].mxu0  ;;  %v929_v41 = vpop.f32.mrb[26].mxu1 }
 0x15c   : > { %v1814_v54 = vmax.f32 %v813_v33, 0.0  ;;  %v1816_v45 = vmax.f32 %v926_v34, 0.0  ;;  %v817_v55 = vadd.f32 %v816_v38, %v7686_v1  ;;  %v930_v5 = vadd.f32 %v929_v41, %v7691_v2  ;;  %v818_v6 = vpop.f32.mrb[27].mxu0  ;;  %v931_v7 = vpop.f32.mrb[27].mxu1 }
 0x15d   : > { %v1815_v8 = vmax.f32 %v815_v46, 0.0  ;;  %v1817_v9 = vmax.f32 %v928_v47, 0.0  ;;  %v819_v10 = vadd.f32 %v818_v6, %v7695_v3  ;;  %v932_v11 = vadd.f32 %v931_v7, %v7700_v4 }
 0x15e   : > { %v1892_v12 = vadd.f32 %v1891_v26, %v1814_v54  ;;  %v1934_v13 = vadd.f32 %v1933_v27, %v1816_v45  ;;  %v1830_v44 = vmax.f32 %v817_v55, 0.0  ;;  %v1832_v14 = vmax.f32 %v930_v5, 0.0  ;;  %6311 = vmatmul.mubr.msk.bf16.gmra.mrb[132].mxu0 %vm644_vm1, %v7801_v36  ;;  %6320 = vmatmul.mubr.msk.bf16.gmra.mrb[132].mxu1 %vm644_vm1, %v7801_v36 }
 0x15f   : > { %v1913_v15 = vadd.f32 %v1912_v28, %v1815_v8  ;;  %v1955_v16 = vadd.f32 %v1954_v29, %v1817_v9  ;;  %v1831_v17 = vmax.f32 %v819_v10, 0.0  ;;  %v1833_v18 = vmax.f32 %v932_v11, 0.0  ;;  %2470 = vmatprep.mubr.bf16.mxu0 %v7238_v23  ;;  %2583 = vmatprep.mubr.bf16.mxu1 %v7238_v23 }
 0x160   : > { %v1893_v19 = vadd.f32 %v1892_v12, %v1830_v44  ;;  %v1935_v20 = vadd.f32 %v1934_v13, %v1832_v14  ;;  %v7838_v33 = vrot.slane %v7674_v62, %v506_v40  ;;  %v2239_v47 = vunpack.c.0.s8 %v7807_v39 }
 0x161   : > { %v1914_v21 = vadd.f32 %v1913_v15, %v1831_v17  ;;  %v1956_v22 = vadd.f32 %v1955_v16, %v1833_v18  ;;  %v822_v43 = vpop.f32.mrb[28].mxu0  ;;  %v935_v24 = vpop.f32.mrb[28].mxu1  ;;  %v7846_v38 = vrot.slane %v7674_v62, %v8760_v49 }
 0x162   : > { %v823_v26 = vadd.f32 %v822_v43, %v7686_v1  ;;  %v936_v27 = vadd.f32 %v935_v24, %v7691_v2  ;;  %v824_v28 = vpop.f32.mrb[29].mxu0  ;;  %v937_v29 = vpop.f32.mrb[29].mxu1  ;;  %v7859_v18 = vsub.s32 %v2239_v47, %v7663_v59 }
 0x163   : > { %v825_v34 = vadd.f32 %v824_v28, %v7695_v3  ;;  %v938_v32 = vadd.f32 %v937_v29, %v7700_v4  ;;  %v826_v35 = vpop.f32.mrb[30].mxu0  ;;  %v939_v46 = vpop.f32.mrb[30].mxu1  ;;  %v7864_v29 = vld [vmem:[%s7377_s13 + $0x58] sm:$0xff]  }
 0x164   : > { %v1846_v41 = vmax.f32 %v823_v26, 0.0  ;;  %v1848_v48 = vmax.f32 %v936_v27, 0.0  ;;  %v827_v54 = vadd.f32 %v826_v35, %v7686_v1  ;;  %v940_v45 = vadd.f32 %v939_v46, %v7691_v2  ;;  %v828_v55 = vpop.f32.mrb[31].mxu0  ;;  %v941_v5 = vpop.f32.mrb[31].mxu1 }
 0x165   : > { %v1847_v6 = vmax.f32 %v825_v34, 0.0  ;;  %v1849_v7 = vmax.f32 %v938_v32, 0.0  ;;  %v829_v8 = vadd.f32 %v828_v55, %v7695_v3  ;;  %v942_v9 = vadd.f32 %v941_v5, %v7700_v4 }
 0x166   : > { %v1894_v39 = vadd.f32 %v1893_v19, %v1846_v41  ;;  %v1936_v10 = vadd.f32 %v1935_v20, %v1848_v48  ;;  %v1862_v11 = vmax.f32 %v827_v54, 0.0  ;;  %v1864_v12 = vmax.f32 %v940_v45, 0.0  ;;  %6312 = vmatmul.mubr.msk.bf16.gmra.mrb[136].mxu0 %vm644_vm1, %v7828_v30  ;;  %6321 = vmatmul.mubr.msk.bf16.gmra.mrb[136].mxu1 %vm644_vm1, %v7828_v30 }
 0x167   : > { %v1915_v62 = vadd.f32 %v1914_v21, %v1847_v6  ;;  %v1957_v13 = vadd.f32 %v1956_v22, %v1849_v7  ;;  %v1863_v44 = vmax.f32 %v829_v8, 0.0  ;;  %v1865_v14 = vmax.f32 %v942_v9, 0.0  ;;  %2480 = vmatprep.mubr.bf16.mxu0 %v7238_v23  ;;  %2593 = vmatprep.mubr.bf16.mxu1 %v7238_v23 }
 0x168   : > { %v1895_v15 = vadd.f32 %v1894_v39, %v1862_v11  ;;  %v1937_v16 = vadd.f32 %v1936_v10, %v1864_v12 }
 0x169   : > { %v1916_v17 = vadd.f32 %v1915_v62, %v1863_v44  ;;  %v1958_v19 = vadd.f32 %v1957_v13, %v1865_v14  ;;  %v978_v20 = vpop.f32.mrb[32].mxu0  ;;  %v1091_v43 = vpop.f32.mrb[32].mxu1 }
 0x16a   : > { %v1896_v24 = vrot.slane %v1895_v15, 4  ;;  %v1938_v26 = vrot.slane %v1937_v16, 4  ;;  %v979_v21 = vadd.f32 %v978_v20, %v7823_v25  ;;  %v1092_v22 = vadd.f32 %v1091_v43, %v7833_v31  ;;  %v980_v27 = vpop.f32.mrb[33].mxu0  ;;  %v1093_v28 = vpop.f32.mrb[33].mxu1 }
 0x16b   : > { %v1917_v34 = vrot.slane %v1916_v17, 4  ;;  %v1959_v32 = vrot.slane %v1958_v19, 4  ;;  %v981_v35 = vadd.f32 %v980_v27, %v7838_v33  ;;  %v1094_v46 = vadd.f32 %v1093_v28, %v7846_v38  ;;  %v982_v47 = vpop.f32.mrb[34].mxu0  ;;  %v1095_v41 = vpop.f32.mrb[34].mxu1 }
 0x16c   : > { %v1897_v48 = vadd.f32 %v1896_v24, %v1895_v15  ;;  %v1939_v54 = vadd.f32 %v1938_v26, %v1937_v16  ;;  %v1626_v45 = vmax.f32 %v979_v21, 0.0  ;;  %v1628_v55 = vmax.f32 %v1092_v22, 0.0  ;;  %v984_v5 = vpop.f32.mrb[35].mxu0  ;;  %v1097_v6 = vpop.f32.mrb[35].mxu1 }
 0x16d   : > { %v1918_v7 = vadd.f32 %v1917_v34, %v1916_v17  ;;  %v1960_v8 = vadd.f32 %v1959_v32, %v1958_v19  ;;  %v1627_v9 = vmax.f32 %v981_v35, 0.0  ;;  %v1629_v39 = vmax.f32 %v1094_v46, 0.0 }
 0x16e   : > { %v1898_v10 = vrot.slane %v1897_v48, 2  ;;  %v1940_v11 = vrot.slane %v1939_v54, 2  ;;  %v983_v12 = vadd.f32 %v982_v47, %v7823_v25  ;;  %v1096_v62 = vadd.f32 %v1095_v41, %v7833_v31  ;;  %6313 = vmatmul.mubr.msk.bf16.gmra.mrb[140].mxu0 %vm644_vm1, %v7864_v29  ;;  %6322 = vmatmul.mubr.msk.bf16.gmra.mrb[140].mxu1 %vm644_vm1, %v7864_v29  ;;  %v7879_v41 = vld [vmem:[%s7377_s13 + $0x60] sm:$0xff]  }
 0x16f   : > { %v1919_v13 = vrot.slane %v1918_v7, 2  ;;  %v1961_v44 = vrot.slane %v1960_v8, 2  ;;  %v985_v14 = vadd.f32 %v984_v5, %v7838_v33  ;;  %v1098_v15 = vadd.f32 %v1097_v6, %v7846_v38  ;;  %2490 = vmatprep.mubr.bf16.mxu0 %v7238_v23  ;;  %2603 = vmatprep.mubr.bf16.mxu1 %v7238_v23 }
 0x170   : > { %v1899_v16 = vadd.f32 %v1898_v10, %v1897_v48  ;;  %v1941_v17 = vadd.f32 %v1940_v11, %v1939_v54  ;;  %v1642_v19 = vmax.f32 %v983_v12, 0.0  ;;  %v1644_v20 = vmax.f32 %v1096_v62, 0.0 }
 0x171   : > { %v1920_v43 = vadd.f32 %v1919_v13, %v1918_v7  ;;  %v1962_v24 = vadd.f32 %v1961_v44, %v1960_v8  ;;  %v1643_v26 = vmax.f32 %v985_v14, 0.0  ;;  %v1645_v21 = vmax.f32 %v1098_v15, 0.0  ;;  %v988_v22 = vpop.f32.mrb[36].mxu0  ;;  %v1101_v27 = vpop.f32.mrb[36].mxu1 }
 0x172   : > { %v1900_v28 = vrot.slane %v1899_v16, 1  ;;  %v1942_v34 = vrot.slane %v1941_v17, 1  ;;  %v1965_v32 = vadd.f32 %v1642_v19, %v1626_v45  ;;  %v2007_v35 = vadd.f32 %v1644_v20, %v1628_v55  ;;  %v990_v46 = vpop.f32.mrb[37].mxu0  ;;  %v1103_v47 = vpop.f32.mrb[37].mxu1 }
 0x173   : > { %v1921_v5 = vrot.slane %v1920_v43, 1  ;;  %v1963_v48 = vrot.slane %v1962_v24, 1  ;;  %v1986_v6 = vadd.f32 %v1643_v26, %v1627_v9  ;;  %v2028_v54 = vadd.f32 %v1645_v21, %v1629_v39  ;;  %v992_v10 = vpop.f32.mrb[38].mxu0  ;;  %v1105_v11 = vpop.f32.mrb[38].mxu1 }
 0x174   : > { %v1901_v7 = vadd.f32 %v1900_v28, %v1899_v16  ;;  %v1943_v8 = vadd.f32 %v1942_v34, %v1941_v17  ;;  %v989_v12 = vadd.f32 %v988_v22, %v7823_v25  ;;  %v1102_v62 = vadd.f32 %v1101_v27, %v7833_v31  ;;  %v994_v13 = vpop.f32.mrb[39].mxu0  ;;  %v1107_v44 = vpop.f32.mrb[39].mxu1 }
 0x175   : > { %v1922_v45 = vadd.f32 %v1921_v5, %v1920_v43  ;;  %v1964_v55 = vadd.f32 %v1963_v48, %v1962_v24  ;;  %v991_v14 = vadd.f32 %v990_v46, %v7838_v33  ;;  %v1104_v15 = vadd.f32 %v1103_v47, %v7846_v38 }
 0x176   : > { %v1658_v19 = vmax.f32 %v989_v12, 0.0  ;;  %v1660_v20 = vmax.f32 %v1102_v62, 0.0  ;;  %v993_v9 = vadd.f32 %v992_v10, %v7823_v25  ;;  %v1106_v39 = vadd.f32 %v1105_v11, %v7833_v31  ;;  %6314 = vmatmul.mubr.msk.bf16.gmra.mrb[144].mxu0 %vm644_vm1, %v7879_v41  ;;  %6323 = vmatmul.mubr.msk.bf16.gmra.mrb[144].mxu1 %vm644_vm1, %v7879_v41  ;;  %v7902_v12 = vld [vmem:[%s7377_s13 + $0x68] sm:$0xff]  }
 0x177   : > { %v2233_v16 = vcombine.low %v1901_v7, %v1922_v45  ;;  %v2234_v17 = vcombine.low %v1943_v8, %v1964_v55  ;;  %v1659_v43 = vmax.f32 %v991_v14, 0.0  ;;  %v1661_v24 = vmax.f32 %v1104_v15, 0.0  ;;  %2500 = vmatprep.mubr.bf16.mxu0 %v7238_v23  ;;  %2613 = vmatprep.mubr.bf16.mxu1 %v7238_v23 }
 0x178   : > { %v1966_v26 = vadd.f32 %v1965_v32, %v1658_v19  ;;  %v2008_v21 = vadd.f32 %v2007_v35, %v1660_v20  ;;  %v1674_v22 = vmax.f32 %v993_v9, 0.0  ;;  %v1676_v27 = vmax.f32 %v1106_v39, 0.0 }
 0x179   : > { %v7894_v28 = vrot.slane %v2233_v16, %v7859_v18  ;;  %v7897_v34 = vrot.slane %v2234_v17, %v7859_v18  ;;  %v1987_v46 = vadd.f32 %v1986_v6, %v1659_v43  ;;  %v2029_v47 = vadd.f32 %v2028_v54, %v1661_v24  ;;  %v998_v5 = vpop.f32.mrb[40].mxu0  ;;  %v1111_v48 = vpop.f32.mrb[40].mxu1 }
 0x17a   : > { %v1967_v10 = vadd.f32 %v1966_v26, %v1674_v22  ;;  %v2009_v11 = vadd.f32 %v2008_v21, %v1676_v27  ;;  %v995_v7 = vadd.f32 %v994_v13, %v7838_v33  ;;  %v1108_v32 = vadd.f32 %v1107_v44, %v7846_v38  ;;  %v1000_v8 = vpop.f32.mrb[41].mxu0  ;;  %v1113_v35 = vpop.f32.mrb[41].mxu1 }
 0x17b   : > { %v2265_v62 = vcombine.low %v7894_v28, %v7897_v34  ;;  %v999_v45 = vadd.f32 %v998_v5, %v7823_v25  ;;  %v1112_v6 = vadd.f32 %v1111_v48, %v7833_v31  ;;  %v1001_v54 = vadd.f32 %v1000_v8, %v7838_v33  ;;  %v1002_v55 = vpop.f32.mrb[42].mxu0  ;;  %v1115_v14 = vpop.f32.mrb[42].mxu1 }
 0x17c   : > { %v1675_v15 = vmax.f32 %v995_v7, 0.0  ;;  %v1677_v19 = vmax.f32 %v1108_v32, 0.0  ;;  %v1114_v13 = vadd.f32 %v1113_v35, %v7846_v38  ;;  %v1003_v44 = vadd.f32 %v1002_v55, %v7823_v25  ;;  %v1004_v20 = vpop.f32.mrb[43].mxu0  ;;  %v1117_v9 = vpop.f32.mrb[43].mxu1 }
 0x17d   : > { %v1690_v39 = vmax.f32 %v999_v45, 0.0  ;;  %v1692_v16 = vmax.f32 %v1112_v6, 0.0  ;;  %v1691_v17 = vmax.f32 %v1001_v54, 0.0  ;;  %v1116_v5 = vadd.f32 %v1115_v14, %v7833_v31 }
 0x17e   : > { %v1988_v43 = vadd.f32 %v1987_v46, %v1675_v15  ;;  %v2030_v24 = vadd.f32 %v2029_v47, %v1677_v19  ;;  %v1693_v26 = vmax.f32 %v1114_v13, 0.0  ;;  %v1706_v21 = vmax.f32 %v1003_v44, 0.0  ;;  %6315 = vmatmul.mubr.msk.bf16.gmra.mrb[148].mxu0 %vm644_vm1, %v7902_v12  ;;  %6324 = vmatmul.mubr.msk.bf16.gmra.mrb[148].mxu1 %vm644_vm1, %v7902_v12  ;;  %v7923_v15 = vld [vmem:[%s7377_s13 + $0x70] sm:$0xff]  }
 0x17f   : > { %v1968_v22 = vadd.f32 %v1967_v10, %v1690_v39  ;;  %v2010_v27 = vadd.f32 %v2009_v11, %v1692_v16  ;;  %v1005_v48 = vadd.f32 %v1004_v20, %v7838_v33  ;;  %2510 = vmatprep.mubr.bf16.mxu0 %v7238_v23  ;;  %v1118_v47 = vadd.f32 %v1117_v9, %v7846_v38 }
 0x180   : > { %v1989_v7 = vadd.f32 %v1988_v43, %v1691_v17  ;;  %v2031_v46 = vadd.f32 %v2030_v24, %v1693_v26  ;;  %2623 = vmatprep.mubr.bf16.mxu1 %v7238_v23  ;;  %v1708_v8 = vmax.f32 %v1116_v5, 0.0 }
 0x181   : > { %v1969_v32 = vadd.f32 %v1968_v22, %v1706_v21  ;;  %v1707_v35 = vmax.f32 %v1005_v48, 0.0  ;;  %v1008_v45 = vpop.f32.mrb[44].mxu0  ;;  %v1121_v6 = vpop.f32.mrb[44].mxu1  ;;  %v1709_v10 = vmax.f32 %v1118_v47, 0.0 }
 0x182   : > { %v1009_v11 = vadd.f32 %v1008_v45, %v7823_v25  ;;  %v1122_v54 = vadd.f32 %v1121_v6, %v7833_v31  ;;  %v1010_v55 = vpop.f32.mrb[45].mxu0  ;;  %v1123_v14 = vpop.f32.mrb[45].mxu1  ;;  %v2011_v19 = vadd.f32 %v2010_v27, %v1708_v8 }
 0x183   : > { %v1990_v13 = vadd.f32 %v1989_v7, %v1707_v35  ;;  %v1011_v44 = vadd.f32 %v1010_v55, %v7838_v33  ;;  %v1124_v20 = vadd.f32 %v1123_v14, %v7846_v38  ;;  %v1012_v9 = vpop.f32.mrb[46].mxu0  ;;  %v1125_v39 = vpop.f32.mrb[46].mxu1  ;;  %v2032_v16 = vadd.f32 %v2031_v46, %v1709_v10 }
 0x184   : > { %v1722_v17 = vmax.f32 %v1009_v11, 0.0  ;;  %v1724_v43 = vmax.f32 %v1122_v54, 0.0  ;;  %v1013_v24 = vadd.f32 %v1012_v9, %v7823_v25  ;;  %v1014_v26 = vpop.f32.mrb[47].mxu0  ;;  %v1127_v21 = vpop.f32.mrb[47].mxu1  ;;  %v1126_v48 = vadd.f32 %v1125_v39, %v7833_v31 }
 0x185   : > { %v1723_v22 = vmax.f32 %v1011_v44, 0.0  ;;  %v1725_v5 = vmax.f32 %v1124_v20, 0.0  ;;  %v1015_v27 = vadd.f32 %v1014_v26, %v7838_v33  ;;  %v1128_v35 = vadd.f32 %v1127_v21, %v7846_v38 }
 0x186   : > { %v1970_v7 = vadd.f32 %v1969_v32, %v1722_v17  ;;  %v2012_v47 = vadd.f32 %v2011_v19, %v1724_v43  ;;  %v1738_v8 = vmax.f32 %v1013_v24, 0.0  ;;  %6316 = vmatmul.mubr.msk.bf16.gmra.mrb[152].mxu0 %vm644_vm1, %v7923_v15  ;;  %6325 = vmatmul.mubr.msk.bf16.gmra.mrb[152].mxu1 %vm644_vm1, %v7923_v15  ;;  %v1740_v6 = vmax.f32 %v1126_v48, 0.0 }
 0x187   : > { %v1991_v46 = vadd.f32 %v1990_v13, %v1723_v22  ;;  %v2033_v45 = vadd.f32 %v2032_v16, %v1725_v5  ;;  %v1739_v10 = vmax.f32 %v1015_v27, 0.0  ;;  %2520 = vmatprep.mubr.bf16.mxu0 %v7238_v23  ;;  %2633 = vmatprep.mubr.bf16.mxu1 %v7238_v23  ;;  %v1741_v11 = vmax.f32 %v1128_v35, 0.0  ;;  %v7940_v16 = vld [vmem:[%s7377_s13 + $0x78] sm:$0xff]  }
 0x188   : > { %v1971_v32 = vadd.f32 %v1970_v7, %v1738_v8  ;;  %v2013_v54 = vadd.f32 %v2012_v47, %v1740_v6 }
 0x189   : > { %v1992_v55 = vadd.f32 %v1991_v46, %v1739_v10  ;;  %v1018_v14 = vpop.f32.mrb[48].mxu0  ;;  %v1131_v19 = vpop.f32.mrb[48].mxu1  ;;  %v2034_v44 = vadd.f32 %v2033_v45, %v1741_v11 }
 0x18a   : > { %v1019_v20 = vadd.f32 %v1018_v14, %v7823_v25  ;;  %v1132_v9 = vadd.f32 %v1131_v19, %v7833_v31  ;;  %v1020_v13 = vpop.f32.mrb[49].mxu0  ;;  %v1133_v39 = vpop.f32.mrb[49].mxu1 }
 0x18b   : > { %v1021_v17 = vadd.f32 %v1020_v13, %v7838_v33  ;;  %v1134_v43 = vadd.f32 %v1133_v39, %v7846_v38  ;;  %v1022_v24 = vpop.f32.mrb[50].mxu0  ;;  %v1135_v26 = vpop.f32.mrb[50].mxu1 }
 0x18c   : > { %v1754_v21 = vmax.f32 %v1019_v20, 0.0  ;;  %v1756_v22 = vmax.f32 %v1132_v9, 0.0  ;;  %v1023_v5 = vadd.f32 %v1022_v24, %v7823_v25  ;;  %v1136_v48 = vadd.f32 %v1135_v26, %v7833_v31  ;;  %v1024_v27 = vpop.f32.mrb[51].mxu0  ;;  %v1137_v7 = vpop.f32.mrb[51].mxu1 }
 0x18d   : > { %v1755_v47 = vmax.f32 %v1021_v17, 0.0  ;;  %v1757_v8 = vmax.f32 %v1134_v43, 0.0  ;;  %v1025_v35 = vadd.f32 %v1024_v27, %v7838_v33  ;;  %v1138_v46 = vadd.f32 %v1137_v7, %v7846_v38 }
 0x18e   : > { %v1972_v45 = vadd.f32 %v1971_v32, %v1754_v21  ;;  %v2014_v6 = vadd.f32 %v2013_v54, %v1756_v22  ;;  %v1770_v10 = vmax.f32 %v1023_v5, 0.0  ;;  %v1772_v11 = vmax.f32 %v1136_v48, 0.0  ;;  %6317 = vmatmul.mubr.msk.bf16.gmra.mrb[156].mxu0 %vm644_vm1, %v7940_v16  ;;  %6326 = vmatmul.mubr.msk.bf16.gmra.mrb[156].mxu1 %vm644_vm1, %v7940_v16 }
 0x18f   : > { %v1993_v14 = vadd.f32 %v1992_v55, %v1755_v47  ;;  %v2035_v19 = vadd.f32 %v2034_v44, %v1757_v8  ;;  %v1771_v20 = vmax.f32 %v1025_v35, 0.0  ;;  %v1773_v9 = vmax.f32 %v1138_v46, 0.0  ;;  %2676 = vmatprep.mubr.bf16.mxu0 %v7238_v23  ;;  %2789 = vmatprep.mubr.bf16.mxu1 %v7238_v23 }
 0x190   : > { %v1973_v13 = vadd.f32 %v1972_v45, %v1770_v10  ;;  %v2015_v39 = vadd.f32 %v2014_v6, %v1772_v11 }
 0x191   : > { %v1994_v32 = vadd.f32 %v1993_v14, %v1771_v20  ;;  %v2036_v54 = vadd.f32 %v2035_v19, %v1773_v9  ;;  %v1028_v17 = vpop.f32.mrb[52].mxu0  ;;  %v1141_v43 = vpop.f32.mrb[52].mxu1 }
 0x192   : > { %v1029_v24 = vadd.f32 %v1028_v17, %v7823_v25  ;;  %v1142_v26 = vadd.f32 %v1141_v43, %v7833_v31  ;;  %v1030_v21 = vpop.f32.mrb[53].mxu0  ;;  %v1143_v22 = vpop.f32.mrb[53].mxu1 }
 0x193   : > { %v1031_v55 = vadd.f32 %v1030_v21, %v7838_v33  ;;  %v1144_v44 = vadd.f32 %v1143_v22, %v7846_v38  ;;  %v1032_v5 = vpop.f32.mrb[54].mxu0  ;;  %v1145_v48 = vpop.f32.mrb[54].mxu1 }
 0x194   : > { %v1786_v27 = vmax.f32 %v1029_v24, 0.0  ;;  %v1788_v7 = vmax.f32 %v1142_v26, 0.0  ;;  %v1033_v47 = vadd.f32 %v1032_v5, %v7823_v25  ;;  %v1146_v8 = vadd.f32 %v1145_v48, %v7833_v31  ;;  %v1034_v35 = vpop.f32.mrb[55].mxu0  ;;  %v1147_v46 = vpop.f32.mrb[55].mxu1 }
 0x195   : > { %v1787_v45 = vmax.f32 %v1031_v55, 0.0  ;;  %v1789_v6 = vmax.f32 %v1144_v44, 0.0  ;;  %v1035_v10 = vadd.f32 %v1034_v35, %v7838_v33  ;;  %v1148_v11 = vadd.f32 %v1147_v46, %v7846_v38 }
 0x196   : > { %v1974_v14 = vadd.f32 %v1973_v13, %v1786_v27  ;;  %v2016_v19 = vadd.f32 %v2015_v39, %v1788_v7  ;;  %v1802_v20 = vmax.f32 %v1033_v47, 0.0  ;;  %v1804_v9 = vmax.f32 %v1146_v8, 0.0  ;;  %6328 = vmatmul.mubr.msk.bf16.vlgmr.msra.gmra.mrb[160].mxu0 %vm644_vm1, %v7777_v58  ;;  %6337 = vmatmul.mubr.msk.bf16.vlgmr.msra.gmra.mrb[160].mxu1 %vm644_vm1, %v7777_v58 }
 0x197   : > { %v1995_v17 = vadd.f32 %v1994_v32, %v1787_v45  ;;  %v2037_v43 = vadd.f32 %v2036_v54, %v1789_v6  ;;  %v1803_v24 = vmax.f32 %v1035_v10, 0.0  ;;  %v1805_v26 = vmax.f32 %v1148_v11, 0.0  ;;  %2871 = vmatpush1.bf16.msra.mxu0 %v7524_v50  ;;  %2984 = vmatpush1.bf16.msra.mxu1 %v7527_v51 }
 0x198   : > { %v1975_v21 = vadd.f32 %v1974_v14, %v1802_v20  ;;  %v2017_v22 = vadd.f32 %v2016_v19, %v1804_v9  ;;  %2686 = vmatprep.mubr.bf16.mxu0 %v7238_v23  ;;  %2799 = vmatprep.mubr.bf16.mxu1 %v7238_v23 }
 0x199   : > { %v1996_v13 = vadd.f32 %v1995_v17, %v1803_v24  ;;  %v2038_v39 = vadd.f32 %v2037_v43, %v1805_v26  ;;  %v1038_v55 = vpop.f32.mrb[56].mxu0  ;;  %v1151_v44 = vpop.f32.mrb[56].mxu1  ;;  %6363 = vmatprep.subr.msk.bf16.mxu0 %vm669_vm0, %v7529_v52  ;;  %6372 = vmatprep.subr.msk.bf16.mxu1 %vm669_vm0, %v7531_v53  ;;  %v7991_v26 = vld [vmem:[%s8752_s2 + $0x8] sm:$0xff] }
 0x19a   : > { %v1039_v50 = vadd.f32 %v1038_v55, %v7823_v25  ;;  %v1152_v51 = vadd.f32 %v1151_v44, %v7833_v31  ;;  %v1040_v58 = vpop.f32.mrb[57].mxu0  ;;  %v1153_v32 = vpop.f32.mrb[57].mxu1 }
 0x19b   : > { %v1041_v54 = vadd.f32 %v1040_v58, %v7838_v33  ;;  %v1154_v5 = vadd.f32 %v1153_v32, %v7846_v38  ;;  %v1042_v48 = vpop.f32.mrb[58].mxu0  ;;  %v1155_v27 = vpop.f32.mrb[58].mxu1  ;;  %v7997_v32 = vrot.slane %v7991_v26, %v7668_v60 }
 0x19c   : > { %v1818_v7 = vmax.f32 %v1039_v50, 0.0  ;;  %v1820_v47 = vmax.f32 %v1152_v51, 0.0  ;;  %v1043_v8 = vadd.f32 %v1042_v48, %v7823_v25  ;;  %v1156_v52 = vadd.f32 %v1155_v27, %v7833_v31  ;;  %v1044_v35 = vpop.f32.mrb[59].mxu0  ;;  %v1157_v53 = vpop.f32.mrb[59].mxu1 }
 0x19d   : > { %v1819_v46 = vmax.f32 %v1041_v54, 0.0  ;;  %v1821_v45 = vmax.f32 %v1154_v5, 0.0  ;;  %v1045_v6 = vadd.f32 %v1044_v35, %v7838_v33  ;;  %v1158_v10 = vadd.f32 %v1157_v53, %v7846_v38 }
 0x19e   : > { %v1976_v11 = vadd.f32 %v1975_v21, %v1818_v7  ;;  %v2018_v14 = vadd.f32 %v2017_v22, %v1820_v47  ;;  %v1834_v19 = vmax.f32 %v1043_v8, 0.0  ;;  %v1836_v20 = vmax.f32 %v1156_v52, 0.0  ;;  %6329 = vmatmul.mubr.msk.bf16.gmra.mrb[164].mxu0 %vm644_vm1, %v7801_v36  ;;  %6338 = vmatmul.mubr.msk.bf16.gmra.mrb[164].mxu1 %vm644_vm1, %v7801_v36 }
 0x19f   : > { %v1997_v9 = vadd.f32 %v1996_v13, %v1819_v46  ;;  %v2039_v17 = vadd.f32 %v2038_v39, %v1821_v45  ;;  %v1835_v43 = vmax.f32 %v1045_v6, 0.0  ;;  %v1837_v24 = vmax.f32 %v1158_v10, 0.0  ;;  %2696 = vmatprep.mubr.bf16.mxu0 %v7238_v23  ;;  %2809 = vmatprep.mubr.bf16.mxu1 %v7238_v23 }
 0x1a0   : > { %v1977_v21 = vadd.f32 %v1976_v11, %v1834_v19  ;;  %v2019_v22 = vadd.f32 %v2018_v14, %v1836_v20  ;;  %v8002_v54 = vrot.slane %v7991_v26, %v494_v61  ;;  %v8008_v47 = vrot.slane %v7991_v26, %v7677_v63 }
 0x1a1   : > { %v1998_v55 = vadd.f32 %v1997_v9, %v1835_v43  ;;  %v2040_v44 = vadd.f32 %v2039_v17, %v1837_v24  ;;  %v1048_v50 = vpop.f32.mrb[60].mxu0  ;;  %v1161_v51 = vpop.f32.mrb[60].mxu1  ;;  %v8013_v8 = vrot.slane %v7991_v26, %v498_v0 }
 0x1a2   : > { %v1049_v36 = vadd.f32 %v1048_v50, %v7823_v25  ;;  %v1162_v13 = vadd.f32 %v1161_v51, %v7833_v31  ;;  %v1050_v39 = vpop.f32.mrb[61].mxu0  ;;  %v1163_v58 = vpop.f32.mrb[61].mxu1 }
 0x1a3   : > { %v1051_v5 = vadd.f32 %v1050_v39, %v7838_v33  ;;  %v1164_v48 = vadd.f32 %v1163_v58, %v7846_v38  ;;  %v1052_v27 = vpop.f32.mrb[62].mxu0  ;;  %v1165_v7 = vpop.f32.mrb[62].mxu1 }
 0x1a4   : > { %v1850_v52 = vmax.f32 %v1049_v36, 0.0  ;;  %v1852_v35 = vmax.f32 %v1162_v13, 0.0  ;;  %v1053_v61 = vadd.f32 %v1052_v27, %v7823_v25  ;;  %v1166_v53 = vadd.f32 %v1165_v7, %v7833_v31  ;;  %v1054_v46 = vpop.f32.mrb[63].mxu0  ;;  %v1167_v45 = vpop.f32.mrb[63].mxu1 }
 0x1a5   : > { %v1851_v6 = vmax.f32 %v1051_v5, 0.0  ;;  %v1853_v10 = vmax.f32 %v1164_v48, 0.0  ;;  %v1055_v11 = vadd.f32 %v1054_v46, %v7838_v33  ;;  %v1168_v14 = vadd.f32 %v1167_v45, %v7846_v38 }
 0x1a6   : > { %v1978_v19 = vadd.f32 %v1977_v21, %v1850_v52  ;;  %v2020_v20 = vadd.f32 %v2019_v22, %v1852_v35  ;;  %v1866_v9 = vmax.f32 %v1053_v61, 0.0  ;;  %v1868_v17 = vmax.f32 %v1166_v53, 0.0  ;;  %6330 = vmatmul.mubr.msk.bf16.gmra.mrb[168].mxu0 %vm644_vm1, %v7828_v30  ;;  %6339 = vmatmul.mubr.msk.bf16.gmra.mrb[168].mxu1 %vm644_vm1, %v7828_v30 }
 0x1a7   : > { %v1999_v0 = vadd.f32 %v1998_v55, %v1851_v6  ;;  %v2041_v43 = vadd.f32 %v2040_v44, %v1853_v10  ;;  %v1867_v24 = vmax.f32 %v1055_v11, 0.0  ;;  %v1869_v50 = vmax.f32 %v1168_v14, 0.0  ;;  %2706 = vmatprep.mubr.bf16.mxu0 %v7238_v23  ;;  %2819 = vmatprep.mubr.bf16.mxu1 %v7238_v23 }
 0x1a8   : > { %v1979_v51 = vadd.f32 %v1978_v19, %v1866_v9  ;;  %v2021_v36 = vadd.f32 %v2020_v20, %v1868_v17  ;;  %v8029_v21 = vrot.slane %v2265_v62, %v7859_v18 }
 0x1a9   : > { %v2000_v22 = vadd.f32 %v1999_v0, %v1867_v24  ;;  %v2042_v13 = vadd.f32 %v2041_v43, %v1869_v50  ;;  %v1204_v39 = vpop.f32.mrb[64].mxu0  ;;  %v1317_v30 = vpop.f32.mrb[64].mxu1 }
 0x1aa   : > { %v1980_v55 = vrot.slane %v1979_v51, 4  ;;  %v2022_v44 = vrot.slane %v2021_v36, 4  ;;  %v1205_v58 = vadd.f32 %v1204_v39, %v7997_v32  ;;  %v1318_v5 = vadd.f32 %v1317_v30, %v8002_v54  ;;  %v1206_v48 = vpop.f32.mrb[65].mxu0  ;;  %v1319_v27 = vpop.f32.mrb[65].mxu1 }
 0x1ab   : > { %v2001_v7 = vrot.slane %v2000_v22, 4  ;;  %v2043_v52 = vrot.slane %v2042_v13, 4  ;;  %v1207_v35 = vadd.f32 %v1206_v48, %v8008_v47  ;;  %v1320_v28 = vadd.f32 %v1319_v27, %v8013_v8  ;;  %v1208_v34 = vpop.f32.mrb[66].mxu0  ;;  %v1321_v62 = vpop.f32.mrb[66].mxu1 }
 0x1ac   : > { %v1981_v61 = vadd.f32 %v1980_v55, %v1979_v51  ;;  %v2023_v53 = vadd.f32 %v2022_v44, %v2021_v36  ;;  %v1630_v46 = vmax.f32 %v1205_v58, 0.0  ;;  %v1632_v45 = vmax.f32 %v1318_v5, 0.0  ;;  %v1210_v6 = vpop.f32.mrb[67].mxu0  ;;  %v1323_v10 = vpop.f32.mrb[67].mxu1 }
 0x1ad   : > { %v2002_v11 = vadd.f32 %v2001_v7, %v2000_v22  ;;  %v2044_v14 = vadd.f32 %v2043_v52, %v2042_v13  ;;  %v1631_v19 = vmax.f32 %v1207_v35, 0.0  ;;  %v1633_v20 = vmax.f32 %v1320_v28, 0.0 }
 0x1ae   : > { %v1982_v9 = vrot.slane %v1981_v61, 2  ;;  %v2024_v17 = vrot.slane %v2023_v53, 2  ;;  %v1209_v0 = vadd.f32 %v1208_v34, %v7997_v32  ;;  %v1322_v43 = vadd.f32 %v1321_v62, %v8002_v54  ;;  %6331 = vmatmul.mubr.msk.bf16.gmra.mrb[172].mxu0 %vm644_vm1, %v7864_v29  ;;  %6340 = vmatmul.mubr.msk.bf16.gmra.mrb[172].mxu1 %vm644_vm1, %v7864_v29 }
 0x1af   : > { %v2003_v24 = vrot.slane %v2002_v11, 2  ;;  %v2045_v50 = vrot.slane %v2044_v14, 2  ;;  %v1211_v51 = vadd.f32 %v1210_v6, %v8008_v47  ;;  %v1324_v36 = vadd.f32 %v1323_v10, %v8013_v8  ;;  %2716 = vmatprep.mubr.bf16.mxu0 %v7238_v23  ;;  %2829 = vmatprep.mubr.bf16.mxu1 %v7238_v23 }
 0x1b0   : > { %v1983_v22 = vadd.f32 %v1982_v9, %v1981_v61  ;;  %v2025_v13 = vadd.f32 %v2024_v17, %v2023_v53  ;;  %v1646_v39 = vmax.f32 %v1209_v0, 0.0  ;;  %v1648_v30 = vmax.f32 %v1322_v43, 0.0 }
 0x1b1   : > { %v2004_v55 = vadd.f32 %v2003_v24, %v2002_v11  ;;  %v2046_v44 = vadd.f32 %v2045_v50, %v2044_v14  ;;  %v1647_v58 = vmax.f32 %v1211_v51, 0.0  ;;  %v1649_v5 = vmax.f32 %v1324_v36, 0.0  ;;  %v1214_v48 = vpop.f32.mrb[68].mxu0  ;;  %v1327_v29 = vpop.f32.mrb[68].mxu1 }
 0x1b2   : > { %v1984_v27 = vrot.slane %v1983_v22, 1  ;;  %v2026_v7 = vrot.slane %v2025_v13, 1  ;;  %v2049_v52 = vadd.f32 %v1646_v39, %v1630_v46  ;;  %v2091_v35 = vadd.f32 %v1648_v30, %v1632_v45  ;;  %v1216_v28 = vpop.f32.mrb[69].mxu0  ;;  %v1329_v34 = vpop.f32.mrb[69].mxu1 }
 0x1b3   : > { %v2005_v62 = vrot.slane %v2004_v55, 1  ;;  %v2047_v6 = vrot.slane %v2046_v44, 1  ;;  %v2070_v10 = vadd.f32 %v1647_v58, %v1631_v19  ;;  %v2112_v49 = vadd.f32 %v1649_v5, %v1633_v20  ;;  %v1218_v61 = vpop.f32.mrb[70].mxu0  ;;  %v1331_v53 = vpop.f32.mrb[70].mxu1 }
 0x1b4   : > { %v1985_v9 = vadd.f32 %v1984_v27, %v1983_v22  ;;  %v2027_v17 = vadd.f32 %v2026_v7, %v2025_v13  ;;  %v1215_v11 = vadd.f32 %v1214_v48, %v7997_v32  ;;  %v1328_v14 = vadd.f32 %v1327_v29, %v8002_v54  ;;  %v1220_v0 = vpop.f32.mrb[71].mxu0  ;;  %v1333_v43 = vpop.f32.mrb[71].mxu1 }
 0x1b5   : > { %v2006_v24 = vadd.f32 %v2005_v62, %v2004_v55  ;;  %v2048_v50 = vadd.f32 %v2047_v6, %v2046_v44  ;;  %v1217_v46 = vadd.f32 %v1216_v28, %v8008_v47  ;;  %v1330_v45 = vadd.f32 %v1329_v34, %v8013_v8 }
 0x1b6   : > { %v1662_v51 = vmax.f32 %v1215_v11, 0.0  ;;  %v1664_v36 = vmax.f32 %v1328_v14, 0.0  ;;  %v1219_v19 = vadd.f32 %v1218_v61, %v7997_v32  ;;  %v1332_v20 = vadd.f32 %v1331_v53, %v8002_v54  ;;  %6332 = vmatmul.mubr.msk.bf16.gmra.mrb[176].mxu0 %vm644_vm1, %v7879_v41  ;;  %6341 = vmatmul.mubr.msk.bf16.gmra.mrb[176].mxu1 %vm644_vm1, %v7879_v41 }
 0x1b7   : > { %v2235_v22 = vcombine.low %v1985_v9, %v2006_v24  ;;  %v2236_v13 = vcombine.low %v2027_v17, %v2048_v50  ;;  %v1663_v39 = vmax.f32 %v1217_v46, 0.0  ;;  %v1665_v30 = vmax.f32 %v1330_v45, 0.0  ;;  %2726 = vmatprep.mubr.bf16.mxu0 %v7238_v23  ;;  %2839 = vmatprep.mubr.bf16.mxu1 %v7238_v23 }
 0x1b8   : > { %v2050_v55 = vadd.f32 %v2049_v52, %v1662_v51  ;;  %v2092_v44 = vadd.f32 %v2091_v35, %v1664_v36  ;;  %v1678_v58 = vmax.f32 %v1219_v19, 0.0  ;;  %v1680_v5 = vmax.f32 %v1332_v20, 0.0  ;;  %v1878_v20 = vld [vmem:[#allocation2] ss:$2 sm:$0xff] }
 0x1b9   : > { %v2257_v48 = vrot.slane %v2235_v22, %v7859_v18  ;;  %v2264_v29 = vrot.slane %v2236_v13, %v7859_v18  ;;  %v2071_v27 = vadd.f32 %v2070_v10, %v1663_v39  ;;  %v2113_v7 = vadd.f32 %v2112_v49, %v1665_v30  ;;  %v1224_v28 = vpop.f32.mrb[72].mxu0  ;;  %v1337_v41 = vpop.f32.mrb[72].mxu1 }
 0x1ba   : > { %v2051_v34 = vadd.f32 %v2050_v55, %v1678_v58  ;;  %v2093_v62 = vadd.f32 %v2092_v44, %v1680_v5  ;;  %v1221_v6 = vadd.f32 %v1220_v0, %v8008_v47  ;;  %v1334_v61 = vadd.f32 %v1333_v43, %v8013_v8  ;;  %v1226_v53 = vpop.f32.mrb[73].mxu0  ;;  %v1339_v9 = vpop.f32.mrb[73].mxu1 }
 0x1bb   : > { %v2266_v52 = vcombine.low %v2257_v48, %v2264_v29  ;;  %v1225_v35 = vadd.f32 %v1224_v28, %v7997_v32  ;;  %v1338_v17 = vadd.f32 %v1337_v41, %v8002_v54  ;;  %v1227_v11 = vadd.f32 %v1226_v53, %v8008_v47  ;;  %v1228_v14 = vpop.f32.mrb[74].mxu0  ;;  %v1341_v10 = vpop.f32.mrb[74].mxu1 }
 0x1bc   : > { %v1679_v49 = vmax.f32 %v1221_v6, 0.0  ;;  %v1681_v24 = vmax.f32 %v1334_v61, 0.0  ;;  %v1340_v50 = vadd.f32 %v1339_v9, %v8013_v8  ;;  %v1229_v46 = vadd.f32 %v1228_v14, %v7997_v32  ;;  %v1230_v0 = vpop.f32.mrb[75].mxu0  ;;  %v1343_v45 = vpop.f32.mrb[75].mxu1 }
 0x1bd   : > { %v2280_v43 = vrot.slane %v2266_v52, %v7859_v18  ;;  %v1694_v51 = vmax.f32 %v1225_v35, 0.0  ;;  %v1696_v36 = vmax.f32 %v1338_v17, 0.0  ;;  %v1695_v19 = vmax.f32 %v1227_v11, 0.0 }
 0x1be   : > { %v2072_v22 = vadd.f32 %v2071_v27, %v1679_v49  ;;  %v2114_v13 = vadd.f32 %v2113_v7, %v1681_v24  ;;  %v1697_v39 = vmax.f32 %v1340_v50, 0.0  ;;  %v1710_v30 = vmax.f32 %v1229_v46, 0.0  ;;  %6333 = vmatmul.mubr.msk.bf16.gmra.mrb[180].mxu0 %vm644_vm1, %v7902_v12  ;;  %6342 = vmatmul.mubr.msk.bf16.gmra.mrb[180].mxu1 %vm644_vm1, %v7902_v12 }
 0x1bf   : > { %v2281_v55 = vcombine.low %v8029_v21, %v2280_v43  ;;  %v2052_v44 = vadd.f32 %v2051_v34, %v1694_v51  ;;  %v2094_v58 = vadd.f32 %v2093_v62, %v1696_v36  ;;  %v1342_v5 = vadd.f32 %v1341_v10, %v8002_v54  ;;  %2736 = vmatprep.mubr.bf16.mxu0 %v7238_v23 }
 0x1c0   : > { %v2073_v48 = vadd.f32 %v2072_v22, %v1695_v19  ;;  %v2115_v29 = vadd.f32 %v2114_v13, %v1697_v39  ;;  %v1231_v27 = vadd.f32 %v1230_v0, %v8008_v47  ;;  %v1344_v7 = vadd.f32 %v1343_v45, %v8013_v8  ;;  %2849 = vmatprep.mubr.bf16.mxu1 %v7238_v23 }
 0x1c1   : > { %v2333_v28 = vadd.f32 %v2281_v55, %v1878_v20  ;;  %v2053_v41 = vadd.f32 %v2052_v44, %v1710_v30  ;;  %v1712_v6 = vmax.f32 %v1342_v5, 0.0  ;;  %v1234_v12 = vpop.f32.mrb[76].mxu0  ;;  %v1347_v61 = vpop.f32.mrb[76].mxu1 }
 0x1c2   : > { %v1711_v21 = vmax.f32 %v1231_v27, 0.0  ;;  %v1713_v34 = vmax.f32 %v1344_v7, 0.0  ;;  %v1235_v62 = vadd.f32 %v1234_v12, %v7997_v32  ;;  %v1348_v53 = vadd.f32 %v1347_v61, %v8002_v54  ;;  %v1236_v9 = vpop.f32.mrb[77].mxu0  ;;  %v1349_v52 = vpop.f32.mrb[77].mxu1 }
 0x1c3   : > { %2335 = vst [vmem:[#allocation2] ss:$2 sm:$0xff] %v2333_v28  ;;  %v2095_v35 = vadd.f32 %v2094_v58, %v1712_v6  ;;  %v1237_v17 = vadd.f32 %v1236_v9, %v8008_v47  ;;  %v1350_v11 = vadd.f32 %v1349_v52, %v8013_v8  ;;  %v1238_v14 = vpop.f32.mrb[78].mxu0  ;;  %v1351_v10 = vpop.f32.mrb[78].mxu1 }
 0x1c4   : > { %v2074_v49 = vadd.f32 %v2073_v48, %v1711_v21  ;;  %v2116_v24 = vadd.f32 %v2115_v29, %v1713_v34  ;;  %v1726_v50 = vmax.f32 %v1235_v62, 0.0  ;;  %v1728_v46 = vmax.f32 %v1348_v53, 0.0  ;;  %v1240_v0 = vpop.f32.mrb[79].mxu0  ;;  %v1353_v45 = vpop.f32.mrb[79].mxu1 }
 0x1c5   : > { %v1727_v43 = vmax.f32 %v1237_v17, 0.0  ;;  %v1729_v51 = vmax.f32 %v1350_v11, 0.0  ;;  %v1239_v36 = vadd.f32 %v1238_v14, %v7997_v32  ;;  %v1352_v19 = vadd.f32 %v1351_v10, %v8002_v54 }
 0x1c6   : > { %v2054_v20 = vadd.f32 %v2053_v41, %v1726_v50  ;;  %v2096_v22 = vadd.f32 %v2095_v35, %v1728_v46  ;;  %v1241_v13 = vadd.f32 %v1240_v0, %v8008_v47  ;;  %v1354_v39 = vadd.f32 %v1353_v45, %v8013_v8  ;;  %6334 = vmatmul.mubr.msk.bf16.gmra.mrb[184].mxu0 %vm644_vm1, %v7923_v15 }
 0x1c7   : > { %v2075_v30 = vadd.f32 %v2074_v49, %v1727_v43  ;;  %v2117_v55 = vadd.f32 %v2116_v24, %v1729_v51  ;;  %v1742_v44 = vmax.f32 %v1239_v36, 0.0  ;;  %v1744_v58 = vmax.f32 %v1352_v19, 0.0  ;;  %6343 = vmatmul.mubr.msk.bf16.gmra.mrb[184].mxu1 %vm644_vm1, %v7923_v15  ;;  %2746 = vmatprep.mubr.bf16.mxu0 %v7238_v23 }
 0x1c8   : > { %v1743_v5 = vmax.f32 %v1241_v13, 0.0  ;;  %v1745_v48 = vmax.f32 %v1354_v39, 0.0  ;;  %2859 = vmatprep.mubr.bf16.mxu1 %v7238_v23 }
 0x1c9   : > { %v2055_v29 = vadd.f32 %v2054_v20, %v1742_v44  ;;  %v2097_v27 = vadd.f32 %v2096_v22, %v1744_v58  ;;  %v1244_v7 = vpop.f32.mrb[80].mxu0  ;;  %v1357_v28 = vpop.f32.mrb[80].mxu1 }
 0x1ca   : > { %v2076_v41 = vadd.f32 %v2075_v30, %v1743_v5  ;;  %v2118_v6 = vadd.f32 %v2117_v55, %v1745_v48  ;;  %v1245_v12 = vadd.f32 %v1244_v7, %v7997_v32  ;;  %v1358_v61 = vadd.f32 %v1357_v28, %v8002_v54  ;;  %v1246_v21 = vpop.f32.mrb[81].mxu0  ;;  %v1359_v34 = vpop.f32.mrb[81].mxu1 }
 0x1cb   : > { %v1247_v15 = vadd.f32 %v1246_v21, %v8008_v47  ;;  %v1360_v62 = vadd.f32 %v1359_v34, %v8013_v8  ;;  %v1248_v53 = vpop.f32.mrb[82].mxu0  ;;  %v1361_v9 = vpop.f32.mrb[82].mxu1 }
 0x1cc   : > { %v1758_v52 = vmax.f32 %v1245_v12, 0.0  ;;  %v1760_v35 = vmax.f32 %v1358_v61, 0.0  ;;  %v1249_v17 = vadd.f32 %v1248_v53, %v7997_v32  ;;  %v1362_v11 = vadd.f32 %v1361_v9, %v8002_v54  ;;  %v1250_v14 = vpop.f32.mrb[83].mxu0  ;;  %v1363_v10 = vpop.f32.mrb[83].mxu1 }
 0x1cd   : > { %v1759_v49 = vmax.f32 %v1247_v15, 0.0  ;;  %v1761_v24 = vmax.f32 %v1360_v62, 0.0  ;;  %v1251_v50 = vadd.f32 %v1250_v14, %v8008_v47  ;;  %v1364_v46 = vadd.f32 %v1363_v10, %v8013_v8  ;;  %v8114_v10 = vld [vmem:[%s7377_s13 + $0x40] sm:$0xff]  }
 0x1ce   : > { %v2056_v0 = vadd.f32 %v2055_v29, %v1758_v52  ;;  %v2098_v45 = vadd.f32 %v2097_v27, %v1760_v35  ;;  %v1774_v43 = vmax.f32 %v1249_v17, 0.0  ;;  %v1776_v51 = vmax.f32 %v1362_v11, 0.0  ;;  %6335 = vmatmul.mubr.msk.bf16.gmra.mrb[188].mxu0 %vm644_vm1, %v7940_v16 }
 0x1cf   : > { %v2077_v36 = vadd.f32 %v2076_v41, %v1759_v49  ;;  %v2119_v19 = vadd.f32 %v2118_v6, %v1761_v24  ;;  %v1775_v20 = vmax.f32 %v1251_v50, 0.0  ;;  %v1777_v22 = vmax.f32 %v1364_v46, 0.0  ;;  %6344 = vmatmul.mubr.msk.bf16.gmra.mrb[188].mxu1 %vm644_vm1, %v7940_v16  ;;  %2902 = vmatprep.mubr.bf16.mxu0 %v7238_v23 }
 0x1d0   : > { %v2057_v13 = vadd.f32 %v2056_v0, %v1774_v43  ;;  %v2099_v39 = vadd.f32 %v2098_v45, %v1776_v51  ;;  %3015 = vmatprep.mubr.bf16.mxu1 %v7238_v23 }
 0x1d1   : > { %v2078_v30 = vadd.f32 %v2077_v36, %v1775_v20  ;;  %v2120_v55 = vadd.f32 %v2119_v19, %v1777_v22  ;;  %v1254_v44 = vpop.f32.mrb[84].mxu0  ;;  %v1367_v58 = vpop.f32.mrb[84].mxu1 }
 0x1d2   : > { %v1255_v5 = vadd.f32 %v1254_v44, %v7997_v32  ;;  %v1368_v48 = vadd.f32 %v1367_v58, %v8002_v54  ;;  %v1256_v29 = vpop.f32.mrb[85].mxu0  ;;  %v1369_v27 = vpop.f32.mrb[85].mxu1 }
 0x1d3   : > { %v1257_v7 = vadd.f32 %v1256_v29, %v8008_v47  ;;  %v1370_v16 = vadd.f32 %v1369_v27, %v8013_v8  ;;  %v1258_v28 = vpop.f32.mrb[86].mxu0  ;;  %v1371_v41 = vpop.f32.mrb[86].mxu1 }
 0x1d4   : > { %v1790_v6 = vmax.f32 %v1255_v5, 0.0  ;;  %v1792_v12 = vmax.f32 %v1368_v48, 0.0  ;;  %v1259_v61 = vadd.f32 %v1258_v28, %v7997_v32  ;;  %v1372_v21 = vadd.f32 %v1371_v41, %v8002_v54  ;;  %v1260_v34 = vpop.f32.mrb[87].mxu0  ;;  %v1373_v15 = vpop.f32.mrb[87].mxu1 }
 0x1d5   : > { %v1791_v62 = vmax.f32 %v1257_v7, 0.0  ;;  %v1793_v53 = vmax.f32 %v1370_v16, 0.0  ;;  %v1261_v9 = vadd.f32 %v1260_v34, %v8008_v47  ;;  %v1374_v52 = vadd.f32 %v1373_v15, %v8013_v8  ;;  %v8133_v34 = vld [vmem:[%s7377_s13 + $0x48] sm:$0xff]  }
 0x1d6   : > { %v2058_v35 = vadd.f32 %v2057_v13, %v1790_v6  ;;  %v2100_v17 = vadd.f32 %v2099_v39, %v1792_v12  ;;  %v1806_v11 = vmax.f32 %v1259_v61, 0.0  ;;  %v1808_v14 = vmax.f32 %v1372_v21, 0.0  ;;  %6346 = vmatmul.mubr.msk.bf16.vlgmr.msra.gmra.mrb[192].mxu0 %vm644_vm1, %v8114_v10 }
 0x1d7   : > { %v2079_v49 = vadd.f32 %v2078_v30, %v1791_v62  ;;  %v2121_v24 = vadd.f32 %v2120_v55, %v1793_v53  ;;  %v1807_v50 = vmax.f32 %v1261_v9, 0.0  ;;  %v1809_v46 = vmax.f32 %v1374_v52, 0.0  ;;  %6355 = vmatmul.mubr.msk.bf16.vlgmr.msra.gmra.mrb[192].mxu1 %vm644_vm1, %v8114_v10  ;;  %3097 = vmatpush1.bf16.msra.mxu0 %v7588_v56 }
 0x1d8   : > { %v2059_v0 = vadd.f32 %v2058_v35, %v1806_v11  ;;  %v2101_v45 = vadd.f32 %v2100_v17, %v1808_v14  ;;  %3210 = vmatpush1.bf16.msra.mxu1 %v7591_v57  ;;  %2912 = vmatprep.mubr.bf16.mxu0 %v7238_v23 }
 0x1d9   : > { %v2080_v43 = vadd.f32 %v2079_v49, %v1807_v50  ;;  %v2122_v51 = vadd.f32 %v2121_v24, %v1809_v46  ;;  %v1264_v36 = vpop.f32.mrb[88].mxu0  ;;  %v1377_v19 = vpop.f32.mrb[88].mxu1  ;;  %3025 = vmatprep.mubr.bf16.mxu1 %v7238_v23 }
 0x1da   : > { %v1265_v20 = vadd.f32 %v1264_v36, %v7997_v32  ;;  %v1378_v22 = vadd.f32 %v1377_v19, %v8002_v54  ;;  %v1266_v13 = vpop.f32.mrb[89].mxu0  ;;  %v1379_v39 = vpop.f32.mrb[89].mxu1 }
 0x1db   : > { %v1267_v56 = vadd.f32 %v1266_v13, %v8008_v47  ;;  %v1380_v30 = vadd.f32 %v1379_v39, %v8013_v8  ;;  %v1268_v55 = vpop.f32.mrb[90].mxu0  ;;  %v1381_v57 = vpop.f32.mrb[90].mxu1  ;;  %v8769_v13 = vsub.s32 7, %v7663_v59 }
 0x1dc   : > { %v1822_v44 = vmax.f32 %v1265_v20, 0.0  ;;  %v1824_v58 = vmax.f32 %v1378_v22, 0.0  ;;  %v1269_v5 = vadd.f32 %v1268_v55, %v7997_v32  ;;  %v1382_v48 = vadd.f32 %v1381_v57, %v8002_v54  ;;  %v1270_v29 = vpop.f32.mrb[91].mxu0  ;;  %v1383_v27 = vpop.f32.mrb[91].mxu1 }
 0x1dd   : > { %v1823_v7 = vmax.f32 %v1267_v56, 0.0  ;;  %v1825_v16 = vmax.f32 %v1380_v30, 0.0  ;;  %v1271_v28 = vadd.f32 %v1270_v29, %v8008_v47  ;;  %v1384_v41 = vadd.f32 %v1383_v27, %v8013_v8 }
 0x1de   : > { %v2060_v6 = vadd.f32 %v2059_v0, %v1822_v44  ;;  %v2102_v12 = vadd.f32 %v2101_v45, %v1824_v58  ;;  %v1838_v61 = vmax.f32 %v1269_v5, 0.0  ;;  %v1840_v21 = vmax.f32 %v1382_v48, 0.0  ;;  %6347 = vmatmul.mubr.msk.bf16.gmra.mrb[196].mxu0 %vm644_vm1, %v8133_v34 }
 0x1df   : > { %v2081_v15 = vadd.f32 %v2080_v43, %v1823_v7  ;;  %v2123_v62 = vadd.f32 %v2122_v51, %v1825_v16  ;;  %v1839_v53 = vmax.f32 %v1271_v28, 0.0  ;;  %v1841_v9 = vmax.f32 %v1384_v41, 0.0  ;;  %6356 = vmatmul.mubr.msk.bf16.gmra.mrb[196].mxu1 %vm644_vm1, %v8133_v34  ;;  %2922 = vmatprep.mubr.bf16.mxu0 %v7238_v23 }
 0x1e0   : > { %v2061_v52 = vadd.f32 %v2060_v6, %v1838_v61  ;;  %v2103_v35 = vadd.f32 %v2102_v12, %v1840_v21  ;;  %3035 = vmatprep.mubr.bf16.mxu1 %v7238_v23  ;;  %v8146_v45 = vrot.slane %v7991_v26, %v502_v42  ;;  %v8151_v43 = vrot.slane %v7991_v26, %v510_v37 }
 0x1e1   : > { %v2082_v17 = vadd.f32 %v2081_v15, %v1839_v53  ;;  %v2124_v11 = vadd.f32 %v2123_v62, %v1841_v9  ;;  %v1274_v14 = vpop.f32.mrb[92].mxu0  ;;  %v1387_v49 = vpop.f32.mrb[92].mxu1  ;;  %v8158_v22 = vrot.slane %v7991_v26, %v506_v40  ;;  %v8163_v42 = vrot.slane %v7991_v26, %v8769_v13  ;;  %v8170_v26 = vld [vmem:[%s7377_s13 + $0x50] sm:$0xff]  }
 0x1e2   : > { %v1275_v24 = vadd.f32 %v1274_v14, %v7997_v32  ;;  %v1388_v50 = vadd.f32 %v1387_v49, %v8002_v54  ;;  %v1276_v46 = vpop.f32.mrb[93].mxu0  ;;  %v1389_v0 = vpop.f32.mrb[93].mxu1 }
 0x1e3   : > { %v1277_v51 = vadd.f32 %v1276_v46, %v8008_v47  ;;  %v1390_v36 = vadd.f32 %v1389_v0, %v8013_v8  ;;  %v1278_v19 = vpop.f32.mrb[94].mxu0  ;;  %v1391_v20 = vpop.f32.mrb[94].mxu1 }
 0x1e4   : > { %v1854_v39 = vmax.f32 %v1275_v24, 0.0  ;;  %v1856_v37 = vmax.f32 %v1388_v50, 0.0  ;;  %v1279_v56 = vadd.f32 %v1278_v19, %v7997_v32  ;;  %v1392_v30 = vadd.f32 %v1391_v20, %v8002_v54  ;;  %v1280_v55 = vpop.f32.mrb[95].mxu0  ;;  %v1393_v57 = vpop.f32.mrb[95].mxu1 }
 0x1e5   : > { %v1855_v44 = vmax.f32 %v1277_v51, 0.0  ;;  %v1857_v58 = vmax.f32 %v1390_v36, 0.0  ;;  %v1281_v5 = vadd.f32 %v1280_v55, %v8008_v47  ;;  %v1394_v40 = vadd.f32 %v1393_v57, %v8013_v8 }
 0x1e6   : > { %v2062_v48 = vadd.f32 %v2061_v52, %v1854_v39  ;;  %v2104_v29 = vadd.f32 %v2103_v35, %v1856_v37  ;;  %v1870_v27 = vmax.f32 %v1279_v56, 0.0  ;;  %v1872_v7 = vmax.f32 %v1392_v30, 0.0  ;;  %6348 = vmatmul.mubr.msk.bf16.gmra.mrb[200].mxu0 %vm644_vm1, %v8170_v26 }
 0x1e7   : > { %v2083_v16 = vadd.f32 %v2082_v17, %v1855_v44  ;;  %v2125_v28 = vadd.f32 %v2124_v11, %v1857_v58  ;;  %v1871_v41 = vmax.f32 %v1281_v5, 0.0  ;;  %v1873_v6 = vmax.f32 %v1394_v40, 0.0  ;;  %6357 = vmatmul.mubr.msk.bf16.gmra.mrb[200].mxu1 %vm644_vm1, %v8170_v26  ;;  %2932 = vmatprep.mubr.bf16.mxu0 %v7238_v23 }
 0x1e8   : > { %v2063_v12 = vadd.f32 %v2062_v48, %v1870_v27  ;;  %v2105_v61 = vadd.f32 %v2104_v29, %v1872_v7  ;;  %3045 = vmatprep.mubr.bf16.mxu1 %v7238_v23  ;;  %v8185_v48 = vld [vmem:[%s7377_s13 + $0x58] sm:$0xff]  }
 0x1e9   : > { %v2084_v21 = vadd.f32 %v2083_v16, %v1871_v41  ;;  %v2126_v15 = vadd.f32 %v2125_v28, %v1873_v6  ;;  %v1430_v62 = vpop.f32.mrb[96].mxu0  ;;  %v1543_v53 = vpop.f32.mrb[96].mxu1 }
 0x1ea   : > { %v2064_v9 = vrot.slane %v2063_v12, 4  ;;  %v2106_v52 = vrot.slane %v2105_v61, 4  ;;  %v1431_v35 = vadd.f32 %v1430_v62, %v8146_v45  ;;  %v1544_v17 = vadd.f32 %v1543_v53, %v8151_v43  ;;  %v1432_v11 = vpop.f32.mrb[97].mxu0  ;;  %v1545_v14 = vpop.f32.mrb[97].mxu1 }
 0x1eb   : > { %v2085_v49 = vrot.slane %v2084_v21, 4  ;;  %v2127_v24 = vrot.slane %v2126_v15, 4  ;;  %v1433_v50 = vadd.f32 %v1432_v11, %v8158_v22  ;;  %v1546_v46 = vadd.f32 %v1545_v14, %v8163_v42  ;;  %v1434_v0 = vpop.f32.mrb[98].mxu0  ;;  %v1547_v51 = vpop.f32.mrb[98].mxu1 }
 0x1ec   : > { %v2065_v36 = vadd.f32 %v2064_v9, %v2063_v12  ;;  %v2107_v19 = vadd.f32 %v2106_v52, %v2105_v61  ;;  %v1634_v20 = vmax.f32 %v1431_v35, 0.0  ;;  %v1636_v13 = vmax.f32 %v1544_v17, 0.0  ;;  %v1436_v39 = vpop.f32.mrb[99].mxu0  ;;  %v1549_v37 = vpop.f32.mrb[99].mxu1 }
 0x1ed   : > { %v2086_v56 = vadd.f32 %v2085_v49, %v2084_v21  ;;  %v2128_v30 = vadd.f32 %v2127_v24, %v2126_v15  ;;  %v1635_v55 = vmax.f32 %v1433_v50, 0.0  ;;  %v1637_v57 = vmax.f32 %v1546_v46, 0.0 }
 0x1ee   : > { %v2066_v44 = vrot.slane %v2065_v36, 2  ;;  %v2108_v58 = vrot.slane %v2107_v19, 2  ;;  %v1435_v5 = vadd.f32 %v1434_v0, %v8146_v45  ;;  %v1548_v40 = vadd.f32 %v1547_v51, %v8151_v43  ;;  %6349 = vmatmul.mubr.msk.bf16.gmra.mrb[204].mxu0 %vm644_vm1, %v8185_v48 }
 0x1ef   : > { %v2087_v29 = vrot.slane %v2086_v56, 2  ;;  %v2129_v27 = vrot.slane %v2128_v30, 2  ;;  %v1437_v7 = vadd.f32 %v1436_v39, %v8158_v22  ;;  %v1550_v16 = vadd.f32 %v1549_v37, %v8163_v42  ;;  %6358 = vmatmul.mubr.msk.bf16.gmra.mrb[204].mxu1 %vm644_vm1, %v8185_v48  ;;  %2942 = vmatprep.mubr.bf16.mxu0 %v7238_v23 }
 0x1f0   : > { %v2067_v28 = vadd.f32 %v2066_v44, %v2065_v36  ;;  %v2109_v41 = vadd.f32 %v2108_v58, %v2107_v19  ;;  %v1650_v6 = vmax.f32 %v1435_v5, 0.0  ;;  %v1652_v12 = vmax.f32 %v1548_v40, 0.0  ;;  %3055 = vmatprep.mubr.bf16.mxu1 %v7238_v23 }
 0x1f1   : > { %v2088_v61 = vadd.f32 %v2087_v29, %v2086_v56  ;;  %v2130_v21 = vadd.f32 %v2129_v27, %v2128_v30  ;;  %v1651_v15 = vmax.f32 %v1437_v7, 0.0  ;;  %v1653_v62 = vmax.f32 %v1550_v16, 0.0  ;;  %v1440_v53 = vpop.f32.mrb[100].mxu0  ;;  %v1553_v9 = vpop.f32.mrb[100].mxu1  ;;  %v8202_v27 = vld [vmem:[%s7377_s13 + $0x60] sm:$0xff]  }
 0x1f2   : > { %v2068_v52 = vrot.slane %v2067_v28, 1  ;;  %v2110_v35 = vrot.slane %v2109_v41, 1  ;;  %v2133_v17 = vadd.f32 %v1650_v6, %v1634_v20  ;;  %v2175_v11 = vadd.f32 %v1652_v12, %v1636_v13  ;;  %v1442_v14 = vpop.f32.mrb[101].mxu0  ;;  %v1555_v49 = vpop.f32.mrb[101].mxu1 }
 0x1f3   : > { %v2089_v24 = vrot.slane %v2088_v61, 1  ;;  %v2131_v50 = vrot.slane %v2130_v21, 1  ;;  %v2154_v46 = vadd.f32 %v1651_v15, %v1635_v55  ;;  %v2196_v0 = vadd.f32 %v1653_v62, %v1637_v57  ;;  %v1444_v51 = vpop.f32.mrb[102].mxu0  ;;  %v1557_v36 = vpop.f32.mrb[102].mxu1 }
 0x1f4   : > { %v2069_v19 = vadd.f32 %v2068_v52, %v2067_v28  ;;  %v2111_v39 = vadd.f32 %v2110_v35, %v2109_v41  ;;  %v1441_v37 = vadd.f32 %v1440_v53, %v8146_v45  ;;  %v1554_v56 = vadd.f32 %v1553_v9, %v8151_v43  ;;  %v1446_v30 = vpop.f32.mrb[103].mxu0  ;;  %v1559_v44 = vpop.f32.mrb[103].mxu1 }
 0x1f5   : > { %v2090_v58 = vadd.f32 %v2089_v24, %v2088_v61  ;;  %v2132_v20 = vadd.f32 %v2131_v50, %v2130_v21  ;;  %v1443_v13 = vadd.f32 %v1442_v14, %v8158_v22  ;;  %v1556_v5 = vadd.f32 %v1555_v49, %v8163_v42 }
 0x1f6   : > { %v1666_v40 = vmax.f32 %v1441_v37, 0.0  ;;  %v1668_v55 = vmax.f32 %v1554_v56, 0.0  ;;  %v1445_v57 = vadd.f32 %v1444_v51, %v8146_v45  ;;  %v1558_v29 = vadd.f32 %v1557_v36, %v8151_v43  ;;  %6350 = vmatmul.mubr.msk.bf16.gmra.mrb[208].mxu0 %vm644_vm1, %v8202_v27 }
 0x1f7   : > { %v2282_v7 = vcombine.low %v2069_v19, %v2090_v58  ;;  %v2283_v16 = vcombine.low %v2111_v39, %v2132_v20  ;;  %v1667_v28 = vmax.f32 %v1443_v13, 0.0  ;;  %v1669_v41 = vmax.f32 %v1556_v5, 0.0  ;;  %6359 = vmatmul.mubr.msk.bf16.gmra.mrb[208].mxu1 %vm644_vm1, %v8202_v27  ;;  %2952 = vmatprep.mubr.bf16.mxu0 %v7238_v23 }
 0x1f8   : > { %v2134_v6 = vadd.f32 %v2133_v17, %v1666_v40  ;;  %v2176_v12 = vadd.f32 %v2175_v11, %v1668_v55  ;;  %v1682_v61 = vmax.f32 %v1445_v57, 0.0  ;;  %v1684_v21 = vmax.f32 %v1558_v29, 0.0  ;;  %3065 = vmatprep.mubr.bf16.mxu1 %v7238_v23 }
 0x1f9   : > { %v8211_v15 = vrot.slane %v2282_v7, %v7859_v18  ;;  %v8214_v62 = vrot.slane %v2283_v16, %v7859_v18  ;;  %v2155_v53 = vadd.f32 %v2154_v46, %v1667_v28  ;;  %v2197_v9 = vadd.f32 %v2196_v0, %v1669_v41  ;;  %v1450_v52 = vpop.f32.mrb[104].mxu0  ;;  %v1563_v35 = vpop.f32.mrb[104].mxu1  ;;  %v8226_v16 = vld [vmem:[%s7377_s13 + $0x68] sm:$0xff]  }
 0x1fa   : > { %v2135_v14 = vadd.f32 %v2134_v6, %v1682_v61  ;;  %v2177_v49 = vadd.f32 %v2176_v12, %v1684_v21  ;;  %v1447_v24 = vadd.f32 %v1446_v30, %v8158_v22  ;;  %v1560_v17 = vadd.f32 %v1559_v44, %v8163_v42  ;;  %v1452_v11 = vpop.f32.mrb[105].mxu0  ;;  %v1565_v50 = vpop.f32.mrb[105].mxu1 }
 0x1fb   : > { %v2314_v51 = vcombine.low %v8211_v15, %v8214_v62  ;;  %v1451_v36 = vadd.f32 %v1450_v52, %v8146_v45  ;;  %v1564_v19 = vadd.f32 %v1563_v35, %v8151_v43  ;;  %v1453_v46 = vadd.f32 %v1452_v11, %v8158_v22  ;;  %v1454_v0 = vpop.f32.mrb[106].mxu0  ;;  %v1567_v39 = vpop.f32.mrb[106].mxu1 }
 0x1fc   : > { %v1683_v37 = vmax.f32 %v1447_v24, 0.0  ;;  %v1685_v56 = vmax.f32 %v1560_v17, 0.0  ;;  %v1566_v30 = vadd.f32 %v1565_v50, %v8163_v42  ;;  %v1455_v44 = vadd.f32 %v1454_v0, %v8146_v45  ;;  %v1456_v58 = vpop.f32.mrb[107].mxu0  ;;  %v1569_v20 = vpop.f32.mrb[107].mxu1 }
 0x1fd   : > { %v1698_v13 = vmax.f32 %v1451_v36, 0.0  ;;  %v1700_v5 = vmax.f32 %v1564_v19, 0.0  ;;  %v1699_v40 = vmax.f32 %v1453_v46, 0.0  ;;  %v1568_v6 = vadd.f32 %v1567_v39, %v8151_v43 }
 0x1fe   : > { %v2156_v55 = vadd.f32 %v2155_v53, %v1683_v37  ;;  %v2198_v57 = vadd.f32 %v2197_v9, %v1685_v56  ;;  %v1701_v29 = vmax.f32 %v1566_v30, 0.0  ;;  %v1714_v7 = vmax.f32 %v1455_v44, 0.0  ;;  %6351 = vmatmul.mubr.msk.bf16.gmra.mrb[212].mxu0 %vm644_vm1, %v8226_v16 }
 0x1ff   : > { %v2136_v28 = vadd.f32 %v2135_v14, %v1698_v13  ;;  %v2178_v41 = vadd.f32 %v2177_v49, %v1700_v5  ;;  %v1457_v12 = vadd.f32 %v1456_v58, %v8158_v22  ;;  %6360 = vmatmul.mubr.msk.bf16.gmra.mrb[212].mxu1 %vm644_vm1, %v8226_v16  ;;  %v1570_v53 = vadd.f32 %v1569_v20, %v8163_v42 }
 0x200   : > { %v2157_v61 = vadd.f32 %v2156_v55, %v1699_v40  ;;  %v2199_v21 = vadd.f32 %v2198_v57, %v1701_v29  ;;  %2962 = vmatprep.mubr.bf16.mxu0 %v7238_v23  ;;  %3075 = vmatprep.mubr.bf16.mxu1 %v7238_v23  ;;  %v1716_v52 = vmax.f32 %v1568_v6, 0.0 }
 0x201   : > { %v2137_v9 = vadd.f32 %v2136_v28, %v1714_v7  ;;  %v1715_v35 = vmax.f32 %v1457_v12, 0.0  ;;  %v1460_v14 = vpop.f32.mrb[108].mxu0  ;;  %v1573_v49 = vpop.f32.mrb[108].mxu1  ;;  %v1717_v24 = vmax.f32 %v1570_v53, 0.0  ;;  %v8246_v12 = vld [vmem:[%s7377_s13 + $0x70] sm:$0xff]  }
 0x202   : > { %v1461_v17 = vadd.f32 %v1460_v14, %v8146_v45  ;;  %v1574_v11 = vadd.f32 %v1573_v49, %v8151_v43  ;;  %v1462_v50 = vpop.f32.mrb[109].mxu0  ;;  %v1575_v36 = vpop.f32.mrb[109].mxu1  ;;  %v2179_v19 = vadd.f32 %v2178_v41, %v1716_v52 }
 0x203   : > { %v2158_v46 = vadd.f32 %v2157_v61, %v1715_v35  ;;  %v1463_v0 = vadd.f32 %v1462_v50, %v8158_v22  ;;  %v1576_v39 = vadd.f32 %v1575_v36, %v8163_v42  ;;  %v1464_v37 = vpop.f32.mrb[110].mxu0  ;;  %v1577_v56 = vpop.f32.mrb[110].mxu1  ;;  %v2200_v30 = vadd.f32 %v2199_v21, %v1717_v24 }
 0x204   : > { %v1730_v44 = vmax.f32 %v1461_v17, 0.0  ;;  %v1732_v58 = vmax.f32 %v1574_v11, 0.0  ;;  %v1465_v20 = vadd.f32 %v1464_v37, %v8146_v45  ;;  %v1466_v13 = vpop.f32.mrb[111].mxu0  ;;  %v1579_v5 = vpop.f32.mrb[111].mxu1  ;;  %v1578_v57 = vadd.f32 %v1577_v56, %v8151_v43 }
 0x205   : > { %v1731_v40 = vmax.f32 %v1463_v0, 0.0  ;;  %v1733_v55 = vmax.f32 %v1576_v39, 0.0  ;;  %v1467_v29 = vadd.f32 %v1466_v13, %v8158_v22  ;;  %v1580_v6 = vadd.f32 %v1579_v5, %v8163_v42 }
 0x206   : > { %v2138_v7 = vadd.f32 %v2137_v9, %v1730_v44  ;;  %v2180_v28 = vadd.f32 %v2179_v19, %v1732_v58  ;;  %v1746_v41 = vmax.f32 %v1465_v20, 0.0  ;;  %6352 = vmatmul.mubr.msk.bf16.gmra.mrb[216].mxu0 %vm644_vm1, %v8246_v12  ;;  %v1748_v53 = vmax.f32 %v1578_v57, 0.0 }
 0x207   : > { %v2159_v61 = vadd.f32 %v2158_v46, %v1731_v40  ;;  %v2201_v21 = vadd.f32 %v2200_v30, %v1733_v55  ;;  %v1747_v52 = vmax.f32 %v1467_v29, 0.0  ;;  %6361 = vmatmul.mubr.msk.bf16.gmra.mrb[216].mxu1 %vm644_vm1, %v8246_v12  ;;  %2972 = vmatprep.mubr.bf16.mxu0 %v7238_v23  ;;  %v1749_v9 = vmax.f32 %v1580_v6, 0.0 }
 0x208   : > { %v2139_v35 = vadd.f32 %v2138_v7, %v1746_v41  ;;  %3085 = vmatprep.mubr.bf16.mxu1 %v7238_v23  ;;  %v2181_v14 = vadd.f32 %v2180_v28, %v1748_v53 }
 0x209   : > { %v2160_v49 = vadd.f32 %v2159_v61, %v1747_v52  ;;  %v1470_v24 = vpop.f32.mrb[112].mxu0  ;;  %v1583_v17 = vpop.f32.mrb[112].mxu1  ;;  %v2202_v11 = vadd.f32 %v2201_v21, %v1749_v9  ;;  %v8263_v61 = vld [vmem:[%s7377_s13 + $0x78] sm:$0xff]  }
 0x20a   : > { %v1471_v50 = vadd.f32 %v1470_v24, %v8146_v45  ;;  %v1584_v36 = vadd.f32 %v1583_v17, %v8151_v43  ;;  %v1472_v19 = vpop.f32.mrb[113].mxu0  ;;  %v1585_v46 = vpop.f32.mrb[113].mxu1 }
 0x20b   : > { %v1473_v0 = vadd.f32 %v1472_v19, %v8158_v22  ;;  %v1586_v39 = vadd.f32 %v1585_v46, %v8163_v42  ;;  %v1474_v37 = vpop.f32.mrb[114].mxu0  ;;  %v1587_v56 = vpop.f32.mrb[114].mxu1 }
 0x20c   : > { %v1762_v30 = vmax.f32 %v1471_v50, 0.0  ;;  %v1764_v44 = vmax.f32 %v1584_v36, 0.0  ;;  %v1475_v58 = vadd.f32 %v1474_v37, %v8146_v45  ;;  %v1588_v20 = vadd.f32 %v1587_v56, %v8151_v43  ;;  %v1476_v13 = vpop.f32.mrb[115].mxu0  ;;  %v1589_v5 = vpop.f32.mrb[115].mxu1 }
 0x20d   : > { %v1763_v40 = vmax.f32 %v1473_v0, 0.0  ;;  %v1765_v55 = vmax.f32 %v1586_v39, 0.0  ;;  %v1477_v57 = vadd.f32 %v1476_v13, %v8158_v22  ;;  %v1590_v29 = vadd.f32 %v1589_v5, %v8163_v42 }
 0x20e   : > { %v2140_v7 = vadd.f32 %v2139_v35, %v1762_v30  ;;  %v2182_v28 = vadd.f32 %v2181_v14, %v1764_v44  ;;  %v1778_v41 = vmax.f32 %v1475_v58, 0.0  ;;  %v1780_v6 = vmax.f32 %v1588_v20, 0.0  ;;  %6353 = vmatmul.mubr.msk.bf16.gmra.mrb[220].mxu0 %vm644_vm1, %v8263_v61 }
 0x20f   : > { %v2161_v21 = vadd.f32 %v2160_v49, %v1763_v40  ;;  %v2203_v53 = vadd.f32 %v2202_v11, %v1765_v55  ;;  %v1779_v52 = vmax.f32 %v1477_v57, 0.0  ;;  %v1781_v9 = vmax.f32 %v1590_v29, 0.0  ;;  %6362 = vmatmul.mubr.msk.bf16.gmra.mrb[220].mxu1 %vm644_vm1, %v8263_v61  ;;  %3128 = vmatprep.mubr.bf16.mxu0 %v7238_v23 }
 0x210   : > { %v2141_v24 = vadd.f32 %v2140_v7, %v1778_v41  ;;  %v2183_v17 = vadd.f32 %v2182_v28, %v1780_v6  ;;  %3241 = vmatprep.mubr.bf16.mxu1 %v7238_v23 }
 0x211   : > { %v2162_v35 = vadd.f32 %v2161_v21, %v1779_v52  ;;  %v2204_v14 = vadd.f32 %v2203_v53, %v1781_v9  ;;  %v1480_v50 = vpop.f32.mrb[116].mxu0  ;;  %v1593_v36 = vpop.f32.mrb[116].mxu1 }
 0x212   : > { %v1481_v19 = vadd.f32 %v1480_v50, %v8146_v45  ;;  %v1594_v49 = vadd.f32 %v1593_v36, %v8151_v43  ;;  %v1482_v11 = vpop.f32.mrb[117].mxu0  ;;  %v1595_v46 = vpop.f32.mrb[117].mxu1 }
 0x213   : > { %v1483_v0 = vadd.f32 %v1482_v11, %v8158_v22  ;;  %v1596_v39 = vadd.f32 %v1595_v46, %v8163_v42  ;;  %v1484_v37 = vpop.f32.mrb[118].mxu0  ;;  %v1597_v56 = vpop.f32.mrb[118].mxu1 }
 0x214   : > { %v1794_v30 = vmax.f32 %v1481_v19, 0.0  ;;  %v1796_v44 = vmax.f32 %v1594_v49, 0.0  ;;  %v1485_v58 = vadd.f32 %v1484_v37, %v8146_v45  ;;  %v1598_v20 = vadd.f32 %v1597_v56, %v8151_v43  ;;  %v1486_v13 = vpop.f32.mrb[119].mxu0  ;;  %v1599_v5 = vpop.f32.mrb[119].mxu1 }
 0x215   : > { %v1795_v40 = vmax.f32 %v1483_v0, 0.0  ;;  %v1797_v55 = vmax.f32 %v1596_v39, 0.0  ;;  %v1487_v57 = vadd.f32 %v1486_v13, %v8158_v22  ;;  %v1600_v29 = vadd.f32 %v1599_v5, %v8163_v42 }
 0x216   : > { %v2142_v7 = vadd.f32 %v2141_v24, %v1794_v30  ;;  %v2184_v28 = vadd.f32 %v2183_v17, %v1796_v44  ;;  %v1810_v41 = vmax.f32 %v1485_v58, 0.0  ;;  %v1812_v6 = vmax.f32 %v1598_v20, 0.0  ;;  %6364 = vmatmul.mubr.msk.bf16.vlgmr.msra.gmra.mrb[224].mxu0 %vm644_vm1, %v8114_v10 }
 0x217   : > { %v2163_v21 = vadd.f32 %v2162_v35, %v1795_v40  ;;  %v2205_v53 = vadd.f32 %v2204_v14, %v1797_v55  ;;  %v1811_v52 = vmax.f32 %v1487_v57, 0.0  ;;  %v1813_v9 = vmax.f32 %v1600_v29, 0.0  ;;  %6373 = vmatmul.mubr.msk.bf16.vlgmr.msra.gmra.mrb[224].mxu1 %vm644_vm1, %v8114_v10  ;;  %3138 = vmatprep.mubr.bf16.mxu0 %v7238_v23 }
 0x218   : > { %v2143_v50 = vadd.f32 %v2142_v7, %v1810_v41  ;;  %v2185_v36 = vadd.f32 %v2184_v28, %v1812_v6  ;;  %3251 = vmatprep.mubr.bf16.mxu1 %v7238_v23 }
 0x219   : > { %v2164_v24 = vadd.f32 %v2163_v21, %v1811_v52  ;;  %v2206_v17 = vadd.f32 %v2205_v53, %v1813_v9  ;;  %v1490_v19 = vpop.f32.mrb[120].mxu0  ;;  %v1603_v49 = vpop.f32.mrb[120].mxu1 }
 0x21a   : > { %v1491_v11 = vadd.f32 %v1490_v19, %v8146_v45  ;;  %v1604_v35 = vadd.f32 %v1603_v49, %v8151_v43  ;;  %v1492_v14 = vpop.f32.mrb[121].mxu0  ;;  %v1605_v46 = vpop.f32.mrb[121].mxu1 }
 0x21b   : > { %v1493_v0 = vadd.f32 %v1492_v14, %v8158_v22  ;;  %v1606_v10 = vadd.f32 %v1605_v46, %v8163_v42  ;;  %v1494_v39 = vpop.f32.mrb[122].mxu0  ;;  %v1607_v37 = vpop.f32.mrb[122].mxu1 }
 0x21c   : > { %v1826_v56 = vmax.f32 %v1491_v11, 0.0  ;;  %v1828_v30 = vmax.f32 %v1604_v35, 0.0  ;;  %v1495_v44 = vadd.f32 %v1494_v39, %v8146_v45  ;;  %v1608_v58 = vadd.f32 %v1607_v37, %v8151_v43  ;;  %v1496_v20 = vpop.f32.mrb[123].mxu0  ;;  %v1609_v13 = vpop.f32.mrb[123].mxu1 }
 0x21d   : > { %v1827_v5 = vmax.f32 %v1493_v0, 0.0  ;;  %v1829_v40 = vmax.f32 %v1606_v10, 0.0  ;;  %v1497_v55 = vadd.f32 %v1496_v20, %v8158_v22  ;;  %v1610_v57 = vadd.f32 %v1609_v13, %v8163_v42 }
 0x21e   : > { %v2144_v29 = vadd.f32 %v2143_v50, %v1826_v56  ;;  %v2186_v7 = vadd.f32 %v2185_v36, %v1828_v30  ;;  %v1842_v28 = vmax.f32 %v1495_v44, 0.0  ;;  %v1844_v41 = vmax.f32 %v1608_v58, 0.0  ;;  %6365 = vmatmul.mubr.msk.bf16.gmra.mrb[228].mxu0 %vm644_vm1, %v8133_v34 }
 0x21f   : > { %v2165_v6 = vadd.f32 %v2164_v24, %v1827_v5  ;;  %v2207_v21 = vadd.f32 %v2206_v17, %v1829_v40  ;;  %v1843_v53 = vmax.f32 %v1497_v55, 0.0  ;;  %v1845_v52 = vmax.f32 %v1610_v57, 0.0  ;;  %6374 = vmatmul.mubr.msk.bf16.gmra.mrb[228].mxu1 %vm644_vm1, %v8133_v34  ;;  %3148 = vmatprep.mubr.bf16.mxu0 %v7238_v23 }
 0x220   : > { %v2145_v9 = vadd.f32 %v2144_v29, %v1842_v28  ;;  %v2187_v19 = vadd.f32 %v2186_v7, %v1844_v41  ;;  %3261 = vmatprep.mubr.bf16.mxu1 %v7238_v23 }
 0x221   : > { %v2166_v50 = vadd.f32 %v2165_v6, %v1843_v53  ;;  %v2208_v36 = vadd.f32 %v2207_v21, %v1845_v52  ;;  %v1500_v49 = vpop.f32.mrb[124].mxu0  ;;  %v1613_v11 = vpop.f32.mrb[124].mxu1 }
 0x222   : > { %v1501_v35 = vadd.f32 %v1500_v49, %v8146_v45  ;;  %v1614_v24 = vadd.f32 %v1613_v11, %v8151_v43  ;;  %v1502_v17 = vpop.f32.mrb[125].mxu0  ;;  %v1615_v14 = vpop.f32.mrb[125].mxu1 }
 0x223   : > { %v1503_v46 = vadd.f32 %v1502_v17, %v8158_v22  ;;  %v1616_v34 = vadd.f32 %v1615_v14, %v8163_v42  ;;  %v1504_v0 = vpop.f32.mrb[126].mxu0  ;;  %v1617_v10 = vpop.f32.mrb[126].mxu1 }
 0x224   : > { %v1858_v39 = vmax.f32 %v1501_v35, 0.0  ;;  %v1860_v37 = vmax.f32 %v1614_v24, 0.0  ;;  %v1505_v56 = vadd.f32 %v1504_v0, %v8146_v45  ;;  %v1618_v30 = vadd.f32 %v1617_v10, %v8151_v43  ;;  %v1506_v44 = vpop.f32.mrb[127].mxu0  ;;  %v1619_v58 = vpop.f32.mrb[127].mxu1 }
 0x225   : > { %v1859_v20 = vmax.f32 %v1503_v46, 0.0  ;;  %v1861_v13 = vmax.f32 %v1616_v34, 0.0  ;;  %v1507_v5 = vadd.f32 %v1506_v44, %v8158_v22  ;;  %v1620_v40 = vadd.f32 %v1619_v58, %v8163_v42 }
 0x226   : > { %v2146_v55 = vadd.f32 %v2145_v9, %v1858_v39  ;;  %v2188_v57 = vadd.f32 %v2187_v19, %v1860_v37  ;;  %v1874_v29 = vmax.f32 %v1505_v56, 0.0  ;;  %v1876_v7 = vmax.f32 %v1618_v30, 0.0  ;;  %6366 = vmatmul.mubr.msk.bf16.gmra.mrb[232].mxu0 %vm644_vm1, %v8170_v26 }
 0x227   : > { %v2167_v28 = vadd.f32 %v2166_v50, %v1859_v20  ;;  %v2209_v41 = vadd.f32 %v2208_v36, %v1861_v13  ;;  %v1875_v6 = vmax.f32 %v1507_v5, 0.0  ;;  %v1877_v21 = vmax.f32 %v1620_v40, 0.0  ;;  %6375 = vmatmul.mubr.msk.bf16.gmra.mrb[232].mxu1 %vm644_vm1, %v8170_v26  ;;  %3158 = vmatprep.mubr.bf16.mxu0 %v7238_v23 }
 0x228   : > { %v2147_v53 = vadd.f32 %v2146_v55, %v1874_v29  ;;  %v2189_v52 = vadd.f32 %v2188_v57, %v1876_v7  ;;  %3271 = vmatprep.mubr.bf16.mxu1 %v7238_v23  ;;  %v8317_v9 = vrot.slane %v2314_v51, %v7859_v18 }
 0x229   : > { %v2168_v19 = vadd.f32 %v2167_v28, %v1875_v6  ;;  %v2210_v50 = vadd.f32 %v2209_v41, %v1877_v21  ;;  %v2452_v36 = vpop.f32.mrb[128].mxu0  ;;  %v2565_v49 = vpop.f32.mrb[128].mxu1 }
 0x22a   : > { %v2148_v11 = vrot.slane %v2147_v53, 4  ;;  %v2190_v35 = vrot.slane %v2189_v52, 4  ;;  %v2453_v26 = vadd.f32 %v2452_v36, %v7686_v1  ;;  %v2566_v24 = vadd.f32 %v2565_v49, %v7691_v2  ;;  %v2454_v17 = vpop.f32.mrb[129].mxu0  ;;  %v2567_v14 = vpop.f32.mrb[129].mxu1 }
 0x22b   : > { %v2169_v46 = vrot.slane %v2168_v19, 4  ;;  %v2211_v34 = vrot.slane %v2210_v50, 4  ;;  %v2455_v0 = vadd.f32 %v2454_v17, %v7695_v3  ;;  %v2568_v15 = vadd.f32 %v2567_v14, %v7700_v4  ;;  %v2456_v62 = vpop.f32.mrb[130].mxu0  ;;  %v2569_v51 = vpop.f32.mrb[130].mxu1 }
 0x22c   : > { %v2149_v10 = vadd.f32 %v2148_v11, %v2147_v53  ;;  %v2191_v39 = vadd.f32 %v2190_v35, %v2189_v52  ;;  %v3322_v37 = vmax.f32 %v2453_v26, 0.0  ;;  %v3324_v56 = vmax.f32 %v2566_v24, 0.0  ;;  %v2458_v30 = vpop.f32.mrb[131].mxu0  ;;  %v2571_v44 = vpop.f32.mrb[131].mxu1 }
 0x22d   : > { %v2170_v58 = vadd.f32 %v2169_v46, %v2168_v19  ;;  %v2212_v20 = vadd.f32 %v2211_v34, %v2210_v50  ;;  %v3323_v13 = vmax.f32 %v2455_v0, 0.0  ;;  %v3325_v5 = vmax.f32 %v2568_v15, 0.0 }
 0x22e   : > { %v2150_v40 = vrot.slane %v2149_v10, 2  ;;  %v2192_v55 = vrot.slane %v2191_v39, 2  ;;  %v2457_v57 = vadd.f32 %v2456_v62, %v7686_v1  ;;  %v2570_v29 = vadd.f32 %v2569_v51, %v7691_v2  ;;  %6367 = vmatmul.mubr.msk.bf16.gmra.mrb[236].mxu0 %vm644_vm1, %v8185_v48 }
 0x22f   : > { %v2171_v7 = vrot.slane %v2170_v58, 2  ;;  %v2213_v28 = vrot.slane %v2212_v20, 2  ;;  %v2459_v41 = vadd.f32 %v2458_v30, %v7695_v3  ;;  %v2572_v6 = vadd.f32 %v2571_v44, %v7700_v4  ;;  %6376 = vmatmul.mubr.msk.bf16.gmra.mrb[236].mxu1 %vm644_vm1, %v8185_v48  ;;  %3168 = vmatprep.mubr.bf16.mxu0 %v7238_v23 }
 0x230   : > { %v2151_v21 = vadd.f32 %v2150_v40, %v2149_v10  ;;  %v2193_v53 = vadd.f32 %v2192_v55, %v2191_v39  ;;  %v3338_v52 = vmax.f32 %v2457_v57, 0.0  ;;  %v3340_v19 = vmax.f32 %v2570_v29, 0.0  ;;  %3281 = vmatprep.mubr.bf16.mxu1 %v7238_v23 }
 0x231   : > { %v2172_v50 = vadd.f32 %v2171_v7, %v2170_v58  ;;  %v2214_v36 = vadd.f32 %v2213_v28, %v2212_v20  ;;  %v3339_v49 = vmax.f32 %v2459_v41, 0.0  ;;  %v3341_v11 = vmax.f32 %v2572_v6, 0.0  ;;  %v2462_v35 = vpop.f32.mrb[132].mxu0  ;;  %v2575_v26 = vpop.f32.mrb[132].mxu1 }
 0x232   : > { %v2152_v24 = vrot.slane %v2151_v21, 1  ;;  %v2194_v17 = vrot.slane %v2193_v53, 1  ;;  %v3582_v14 = vadd.f32 %v3338_v52, %v3322_v37  ;;  %v3624_v46 = vadd.f32 %v3340_v19, %v3324_v56  ;;  %v2464_v34 = vpop.f32.mrb[133].mxu0  ;;  %v2577_v48 = vpop.f32.mrb[133].mxu1 }
 0x233   : > { %v2173_v0 = vrot.slane %v2172_v50, 1  ;;  %v2215_v15 = vrot.slane %v2214_v36, 1  ;;  %v3603_v62 = vadd.f32 %v3339_v49, %v3323_v13  ;;  %v3645_v51 = vadd.f32 %v3341_v11, %v3325_v5  ;;  %v2466_v10 = vpop.f32.mrb[134].mxu0  ;;  %v2579_v39 = vpop.f32.mrb[134].mxu1 }
 0x234   : > { %v2153_v30 = vadd.f32 %v2152_v24, %v2151_v21  ;;  %v2195_v44 = vadd.f32 %v2194_v17, %v2193_v53  ;;  %v2463_v58 = vadd.f32 %v2462_v35, %v7686_v1  ;;  %v2576_v20 = vadd.f32 %v2575_v26, %v7691_v2  ;;  %v2468_v40 = vpop.f32.mrb[135].mxu0  ;;  %v2581_v55 = vpop.f32.mrb[135].mxu1 }
 0x235   : > { %v2174_v57 = vadd.f32 %v2173_v0, %v2172_v50  ;;  %v2216_v29 = vadd.f32 %v2215_v15, %v2214_v36  ;;  %v2465_v37 = vadd.f32 %v2464_v34, %v7695_v3  ;;  %v2578_v56 = vadd.f32 %v2577_v48, %v7700_v4 }
 0x236   : > { %v3354_v7 = vmax.f32 %v2463_v58, 0.0  ;;  %v3356_v28 = vmax.f32 %v2576_v20, 0.0  ;;  %v2467_v13 = vadd.f32 %v2466_v10, %v7686_v1  ;;  %v2580_v5 = vadd.f32 %v2579_v39, %v7691_v2  ;;  %6368 = vmatmul.mubr.msk.bf16.gmra.mrb[240].mxu0 %vm644_vm1, %v8202_v27 }
 0x237   : > { %v2284_v41 = vcombine.low %v2153_v30, %v2174_v57  ;;  %v2285_v6 = vcombine.low %v2195_v44, %v2216_v29  ;;  %v3355_v21 = vmax.f32 %v2465_v37, 0.0  ;;  %v3357_v53 = vmax.f32 %v2578_v56, 0.0  ;;  %6377 = vmatmul.mubr.msk.bf16.gmra.mrb[240].mxu1 %vm644_vm1, %v8202_v27  ;;  %3178 = vmatprep.mubr.bf16.mxu0 %v7238_v23 }
 0x238   : > { %v3583_v52 = vadd.f32 %v3582_v14, %v3354_v7  ;;  %v3625_v19 = vadd.f32 %v3624_v46, %v3356_v28  ;;  %v3370_v50 = vmax.f32 %v2467_v13, 0.0  ;;  %v3372_v36 = vmax.f32 %v2580_v5, 0.0  ;;  %3291 = vmatprep.mubr.bf16.mxu1 %v7238_v23  ;;  %v1880_v28 = vld [vmem:[#allocation2 + $0x10] ss:$2 sm:$0xff] }
 0x239   : > { %v2306_v49 = vrot.slane %v2284_v41, %v7859_v18  ;;  %v2313_v11 = vrot.slane %v2285_v6, %v7859_v18  ;;  %v3604_v35 = vadd.f32 %v3603_v62, %v3355_v21  ;;  %v3646_v26 = vadd.f32 %v3645_v51, %v3357_v53  ;;  %v2472_v24 = vpop.f32.mrb[136].mxu0  ;;  %v2585_v17 = vpop.f32.mrb[136].mxu1 }
 0x23a   : > { %v3584_v34 = vadd.f32 %v3583_v52, %v3370_v50  ;;  %v3626_v48 = vadd.f32 %v3625_v19, %v3372_v36  ;;  %v2469_v27 = vadd.f32 %v2468_v40, %v7695_v3  ;;  %v2582_v0 = vadd.f32 %v2581_v55, %v7700_v4  ;;  %v2474_v14 = vpop.f32.mrb[137].mxu0  ;;  %v2587_v46 = vpop.f32.mrb[137].mxu1 }
 0x23b   : > { %v2315_v15 = vcombine.low %v2306_v49, %v2313_v11  ;;  %v2473_v10 = vadd.f32 %v2472_v24, %v7686_v1  ;;  %v2586_v39 = vadd.f32 %v2585_v17, %v7691_v2  ;;  %v2475_v30 = vadd.f32 %v2474_v14, %v7695_v3  ;;  %v2476_v44 = vpop.f32.mrb[138].mxu0  ;;  %v2589_v62 = vpop.f32.mrb[138].mxu1 }
 0x23c   : > { %v3371_v51 = vmax.f32 %v2469_v27, 0.0  ;;  %v3373_v58 = vmax.f32 %v2582_v0, 0.0  ;;  %v2588_v20 = vadd.f32 %v2587_v46, %v7700_v4  ;;  %v2477_v57 = vadd.f32 %v2476_v44, %v7686_v1  ;;  %v2478_v40 = vpop.f32.mrb[139].mxu0  ;;  %v2591_v29 = vpop.f32.mrb[139].mxu1 }
 0x23d   : > { %v2329_v55 = vrot.slane %v2315_v15, %v7859_v18  ;;  %v3386_v37 = vmax.f32 %v2473_v10, 0.0  ;;  %v3388_v56 = vmax.f32 %v2586_v39, 0.0  ;;  %v3387_v7 = vmax.f32 %v2475_v30, 0.0 }
 0x23e   : > { %v3605_v13 = vadd.f32 %v3604_v35, %v3371_v51  ;;  %v3647_v5 = vadd.f32 %v3646_v26, %v3373_v58  ;;  %v3389_v41 = vmax.f32 %v2588_v20, 0.0  ;;  %v3402_v6 = vmax.f32 %v2477_v57, 0.0  ;;  %6369 = vmatmul.mubr.msk.bf16.gmra.mrb[244].mxu0 %vm644_vm1, %v8226_v16 }
 0x23f   : > { %v2330_v21 = vcombine.low %v8317_v9, %v2329_v55  ;;  %v3585_v53 = vadd.f32 %v3584_v34, %v3386_v37  ;;  %v3627_v52 = vadd.f32 %v3626_v48, %v3388_v56  ;;  %v2590_v19 = vadd.f32 %v2589_v62, %v7691_v2  ;;  %6378 = vmatmul.mubr.msk.bf16.gmra.mrb[244].mxu1 %vm644_vm1, %v8226_v16 }
 0x240   : > { %v3606_v50 = vadd.f32 %v3605_v13, %v3387_v7  ;;  %v3648_v36 = vadd.f32 %v3647_v5, %v3389_v41  ;;  %v2479_v49 = vadd.f32 %v2478_v40, %v7695_v3  ;;  %v2592_v11 = vadd.f32 %v2591_v29, %v7700_v4  ;;  %3188 = vmatprep.mubr.bf16.mxu0 %v7238_v23 }
 0x241   : > { %v2334_v35 = vadd.f32 %v2330_v21, %v1880_v28  ;;  %v3586_v26 = vadd.f32 %v3585_v53, %v3402_v6  ;;  %v3404_v24 = vmax.f32 %v2590_v19, 0.0  ;;  %v2482_v17 = vpop.f32.mrb[140].mxu0  ;;  %v2595_v9 = vpop.f32.mrb[140].mxu1  ;;  %3301 = vmatprep.mubr.bf16.mxu1 %v7238_v23 }
 0x242   : > { %v3403_v34 = vmax.f32 %v2479_v49, 0.0  ;;  %v3405_v48 = vmax.f32 %v2592_v11, 0.0  ;;  %v2483_v27 = vadd.f32 %v2482_v17, %v7686_v1  ;;  %v2596_v16 = vadd.f32 %v2595_v9, %v7691_v2  ;;  %v2484_v0 = vpop.f32.mrb[141].mxu0  ;;  %v2597_v14 = vpop.f32.mrb[141].mxu1 }
 0x243   : > { %2336 = vst [vmem:[#allocation2 + $0x10] ss:$2 sm:$0xff] %v2334_v35  ;;  %v3628_v46 = vadd.f32 %v3627_v52, %v3404_v24  ;;  %v2485_v15 = vadd.f32 %v2484_v0, %v7695_v3  ;;  %v2598_v10 = vadd.f32 %v2597_v14, %v7700_v4  ;;  %v2486_v39 = vpop.f32.mrb[142].mxu0  ;;  %v2599_v30 = vpop.f32.mrb[142].mxu1 }
 0x244   : > { %v3607_v44 = vadd.f32 %v3606_v50, %v3403_v34  ;;  %v3649_v62 = vadd.f32 %v3648_v36, %v3405_v48  ;;  %v3418_v51 = vmax.f32 %v2483_v27, 0.0  ;;  %v3420_v58 = vmax.f32 %v2596_v16, 0.0  ;;  %v2488_v20 = vpop.f32.mrb[143].mxu0  ;;  %v2601_v57 = vpop.f32.mrb[143].mxu1 }
 0x245   : > { %v3419_v40 = vmax.f32 %v2485_v15, 0.0  ;;  %v3421_v29 = vmax.f32 %v2598_v10, 0.0  ;;  %v2487_v55 = vadd.f32 %v2486_v39, %v7686_v1  ;;  %v2600_v37 = vadd.f32 %v2599_v30, %v7691_v2 }
 0x246   : > { %v3587_v56 = vadd.f32 %v3586_v26, %v3418_v51  ;;  %v3629_v7 = vadd.f32 %v3628_v46, %v3420_v58  ;;  %v2489_v28 = vadd.f32 %v2488_v20, %v7695_v3  ;;  %v2602_v13 = vadd.f32 %v2601_v57, %v7700_v4  ;;  %6370 = vmatmul.mubr.msk.bf16.gmra.mrb[248].mxu0 %vm644_vm1, %v8246_v12 }
 0x247   : > { %v3608_v5 = vadd.f32 %v3607_v44, %v3419_v40  ;;  %v3650_v41 = vadd.f32 %v3649_v62, %v3421_v29  ;;  %v3434_v6 = vmax.f32 %v2487_v55, 0.0  ;;  %v3436_v21 = vmax.f32 %v2600_v37, 0.0  ;;  %6379 = vmatmul.mubr.msk.bf16.gmra.mrb[248].mxu1 %vm644_vm1, %v8246_v12  ;;  %3198 = vmatprep.mubr.bf16.mxu0 %v7238_v23 }
 0x248   : > { %v3435_v53 = vmax.f32 %v2489_v28, 0.0  ;;  %v3437_v52 = vmax.f32 %v2602_v13, 0.0  ;;  %3311 = vmatprep.mubr.bf16.mxu1 %v7238_v23 }
 0x249   : > { %v3588_v19 = vadd.f32 %v3587_v56, %v3434_v6  ;;  %v3630_v50 = vadd.f32 %v3629_v7, %v3436_v21  ;;  %v2492_v36 = vpop.f32.mrb[144].mxu0  ;;  %v2605_v49 = vpop.f32.mrb[144].mxu1 }
 0x24a   : > { %v3609_v11 = vadd.f32 %v3608_v5, %v3435_v53  ;;  %v3651_v35 = vadd.f32 %v3650_v41, %v3437_v52  ;;  %v2493_v26 = vadd.f32 %v2492_v36, %v7686_v1  ;;  %v2606_v24 = vadd.f32 %v2605_v49, %v7691_v2  ;;  %v2494_v17 = vpop.f32.mrb[145].mxu0  ;;  %v2607_v9 = vpop.f32.mrb[145].mxu1 }
 0x24b   : > { %v2495_v12 = vadd.f32 %v2494_v17, %v7695_v3  ;;  %v2608_v34 = vadd.f32 %v2607_v9, %v7700_v4  ;;  %v2496_v48 = vpop.f32.mrb[146].mxu0  ;;  %v2609_v27 = vpop.f32.mrb[146].mxu1 }
 0x24c   : > { %v3450_v16 = vmax.f32 %v2493_v26, 0.0  ;;  %v3452_v23 = vmax.f32 %v2606_v24, 0.0  ;;  %v2497_v0 = vadd.f32 %v2496_v48, %v7686_v1  ;;  %v2610_v14 = vadd.f32 %v2609_v27, %v7691_v2  ;;  %v2498_v46 = vpop.f32.mrb[147].mxu0  ;;  %v2611_v15 = vpop.f32.mrb[147].mxu1 }
 0x24d   : > { %v3451_v10 = vmax.f32 %v2495_v12, 0.0  ;;  %v3453_v39 = vmax.f32 %v2608_v34, 0.0  ;;  %v2499_v30 = vadd.f32 %v2498_v46, %v7695_v3  ;;  %v2612_v44 = vadd.f32 %v2611_v15, %v7700_v4 }
 0x24e   : > { %v3589_v62 = vadd.f32 %v3588_v19, %v3450_v16  ;;  %v3631_v51 = vadd.f32 %v3630_v50, %v3452_v23  ;;  %v3466_v58 = vmax.f32 %v2497_v0, 0.0  ;;  %v3468_v20 = vmax.f32 %v2610_v14, 0.0  ;;  %6371 = vmatmul.mubr.msk.bf16.gmra.mrb[252].mxu0 %vm644_vm1, %v8263_v61 }
 0x24f   : > { %v3610_v57 = vadd.f32 %v3609_v11, %v3451_v10  ;;  %v3652_v40 = vadd.f32 %v3651_v35, %v3453_v39  ;;  %v3467_v29 = vmax.f32 %v2499_v30, 0.0  ;;  %v3469_v55 = vmax.f32 %v2612_v44, 0.0  ;;  %6380 = vmatmul.mubr.msk.bf16.gmra.mrb[252].mxu1 %vm644_vm1, %v8263_v61 }
 0x250   : > { %v3590_v37 = vadd.f32 %v3589_v62, %v3466_v58  ;;  %v3632_v56 = vadd.f32 %v3631_v51, %v3468_v20 }
 0x251   : > { %v3611_v7 = vadd.f32 %v3610_v57, %v3467_v29  ;;  %v3653_v28 = vadd.f32 %v3652_v40, %v3469_v55  ;;  %v2502_v13 = vpop.f32.mrb[148].mxu0  ;;  %v2615_v5 = vpop.f32.mrb[148].mxu1 }
 0x252   : > { %v2503_v41 = vadd.f32 %v2502_v13, %v7686_v1  ;;  %v2616_v6 = vadd.f32 %v2615_v5, %v7691_v2  ;;  %v2504_v21 = vpop.f32.mrb[149].mxu0  ;;  %v2617_v53 = vpop.f32.mrb[149].mxu1 }
 0x253   : > { %v2505_v52 = vadd.f32 %v2504_v21, %v7695_v3  ;;  %v2618_v19 = vadd.f32 %v2617_v53, %v7700_v4  ;;  %v2506_v50 = vpop.f32.mrb[150].mxu0  ;;  %v2619_v36 = vpop.f32.mrb[150].mxu1 }
 0x254   : > { %v3482_v49 = vmax.f32 %v2503_v41, 0.0  ;;  %v3484_v61 = vmax.f32 %v2616_v6, 0.0  ;;  %v2507_v11 = vadd.f32 %v2506_v50, %v7686_v1  ;;  %v2620_v35 = vadd.f32 %v2619_v36, %v7691_v2  ;;  %v2508_v26 = vpop.f32.mrb[151].mxu0  ;;  %v2621_v24 = vpop.f32.mrb[151].mxu1 }
 0x255   : > { %v3483_v17 = vmax.f32 %v2505_v52, 0.0  ;;  %v3485_v9 = vmax.f32 %v2618_v19, 0.0  ;;  %v2509_v12 = vadd.f32 %v2508_v26, %v7695_v3  ;;  %v2622_v34 = vadd.f32 %v2621_v24, %v7700_v4 }
 0x256   : > { %v3591_v48 = vadd.f32 %v3590_v37, %v3482_v49  ;;  %v3633_v27 = vadd.f32 %v3632_v56, %v3484_v61  ;;  %v3498_v16 = vmax.f32 %v2507_v11, 0.0  ;;  %v3500_v23 = vmax.f32 %v2620_v35, 0.0 }
 0x257   : > { %v3612_v0 = vadd.f32 %v3611_v7, %v3483_v17  ;;  %v3654_v14 = vadd.f32 %v3653_v28, %v3485_v9  ;;  %v3499_v46 = vmax.f32 %v2509_v12, 0.0  ;;  %v3501_v15 = vmax.f32 %v2622_v34, 0.0 }
 0x258   : > { %v3592_v10 = vadd.f32 %v3591_v48, %v3498_v16  ;;  %v3634_v39 = vadd.f32 %v3633_v27, %v3500_v23 }
 0x259   : > { %v3613_v30 = vadd.f32 %v3612_v0, %v3499_v46  ;;  %v3655_v44 = vadd.f32 %v3654_v14, %v3501_v15  ;;  %v2512_v62 = vpop.f32.mrb[152].mxu0  ;;  %v2625_v51 = vpop.f32.mrb[152].mxu1 }
 0x25a   : > { %v2513_v58 = vadd.f32 %v2512_v62, %v7686_v1  ;;  %v2626_v20 = vadd.f32 %v2625_v51, %v7691_v2  ;;  %v2514_v57 = vpop.f32.mrb[153].mxu0  ;;  %v2627_v40 = vpop.f32.mrb[153].mxu1 }
 0x25b   : > { %v2515_v29 = vadd.f32 %v2514_v57, %v7695_v3  ;;  %v2628_v55 = vadd.f32 %v2627_v40, %v7700_v4  ;;  %v2516_v37 = vpop.f32.mrb[154].mxu0  ;;  %v2629_v56 = vpop.f32.mrb[154].mxu1 }
 0x25c   : > { %v3514_v7 = vmax.f32 %v2513_v58, 0.0  ;;  %v3516_v28 = vmax.f32 %v2626_v20, 0.0  ;;  %v2517_v13 = vadd.f32 %v2516_v37, %v7686_v1  ;;  %v2630_v5 = vadd.f32 %v2629_v56, %v7691_v2  ;;  %v2518_v41 = vpop.f32.mrb[155].mxu0  ;;  %v2631_v6 = vpop.f32.mrb[155].mxu1 }
 0x25d   : > { %v3515_v21 = vmax.f32 %v2515_v29, 0.0  ;;  %v3517_v53 = vmax.f32 %v2628_v55, 0.0  ;;  %v2519_v52 = vadd.f32 %v2518_v41, %v7695_v3  ;;  %v2632_v19 = vadd.f32 %v2631_v6, %v7700_v4 }
 0x25e   : > { %v3593_v50 = vadd.f32 %v3592_v10, %v3514_v7  ;;  %v3635_v36 = vadd.f32 %v3634_v39, %v3516_v28  ;;  %v3530_v49 = vmax.f32 %v2517_v13, 0.0  ;;  %v3532_v61 = vmax.f32 %v2630_v5, 0.0 }
 0x25f   : > { %v3614_v11 = vadd.f32 %v3613_v30, %v3515_v21  ;;  %v3656_v35 = vadd.f32 %v3655_v44, %v3517_v53  ;;  %v3531_v26 = vmax.f32 %v2519_v52, 0.0  ;;  %v3533_v24 = vmax.f32 %v2632_v19, 0.0 }
 0x260   : > { %v3594_v17 = vadd.f32 %v3593_v50, %v3530_v49  ;;  %v3636_v9 = vadd.f32 %v3635_v36, %v3532_v61 }
 0x261   : > { %v3615_v12 = vadd.f32 %v3614_v11, %v3531_v26  ;;  %v3657_v34 = vadd.f32 %v3656_v35, %v3533_v24  ;;  %v2522_v48 = vpop.f32.mrb[156].mxu0  ;;  %v2635_v27 = vpop.f32.mrb[156].mxu1 }
 0x262   : > { %v2523_v16 = vadd.f32 %v2522_v48, %v7686_v1  ;;  %v2636_v23 = vadd.f32 %v2635_v27, %v7691_v2  ;;  %v2524_v0 = vpop.f32.mrb[157].mxu0  ;;  %v2637_v14 = vpop.f32.mrb[157].mxu1 }
 0x263   : > { %v2525_v46 = vadd.f32 %v2524_v0, %v7695_v3  ;;  %v2638_v15 = vadd.f32 %v2637_v14, %v7700_v4  ;;  %v2526_v10 = vpop.f32.mrb[158].mxu0  ;;  %v2639_v39 = vpop.f32.mrb[158].mxu1 }
 0x264   : > { %v3546_v30 = vmax.f32 %v2523_v16, 0.0  ;;  %v3548_v44 = vmax.f32 %v2636_v23, 0.0  ;;  %v2527_v62 = vadd.f32 %v2526_v10, %v7686_v1  ;;  %v2640_v51 = vadd.f32 %v2639_v39, %v7691_v2  ;;  %v2528_v58 = vpop.f32.mrb[159].mxu0  ;;  %v2641_v20 = vpop.f32.mrb[159].mxu1 }
 0x265   : > { %v3547_v57 = vmax.f32 %v2525_v46, 0.0  ;;  %v3549_v40 = vmax.f32 %v2638_v15, 0.0  ;;  %v2529_v29 = vadd.f32 %v2528_v58, %v7695_v3  ;;  %v2642_v55 = vadd.f32 %v2641_v20, %v7700_v4 }
 0x266   : > { %v3595_v37 = vadd.f32 %v3594_v17, %v3546_v30  ;;  %v3637_v56 = vadd.f32 %v3636_v9, %v3548_v44  ;;  %v3562_v7 = vmax.f32 %v2527_v62, 0.0  ;;  %v3564_v28 = vmax.f32 %v2640_v51, 0.0 }
 0x267   : > { %v3616_v13 = vadd.f32 %v3615_v12, %v3547_v57  ;;  %v3658_v5 = vadd.f32 %v3657_v34, %v3549_v40  ;;  %v3563_v41 = vmax.f32 %v2529_v29, 0.0  ;;  %v3565_v6 = vmax.f32 %v2642_v55, 0.0 }
 0x268   : > { %v3596_v21 = vadd.f32 %v3595_v37, %v3562_v7  ;;  %v3638_v1 = vadd.f32 %v3637_v56, %v3564_v28 }
 0x269   : > { %v3617_v53 = vadd.f32 %v3616_v13, %v3563_v41  ;;  %v3659_v2 = vadd.f32 %v3658_v5, %v3565_v6  ;;  %v2678_v52 = vpop.f32.mrb[160].mxu0  ;;  %v2791_v19 = vpop.f32.mrb[160].mxu1 }
 0x26a   : > { %v3597_v50 = vrot.slane %v3596_v21, 4  ;;  %v3639_v36 = vrot.slane %v3638_v1, 4  ;;  %v2679_v3 = vadd.f32 %v2678_v52, %v7823_v25  ;;  %v2792_v4 = vadd.f32 %v2791_v19, %v7833_v31  ;;  %v2680_v49 = vpop.f32.mrb[161].mxu0  ;;  %v2793_v61 = vpop.f32.mrb[161].mxu1 }
 0x26b   : > { %v3618_v11 = vrot.slane %v3617_v53, 4  ;;  %v3660_v35 = vrot.slane %v3659_v2, 4  ;;  %v2681_v26 = vadd.f32 %v2680_v49, %v7838_v33  ;;  %v2794_v24 = vadd.f32 %v2793_v61, %v7846_v38  ;;  %v2682_v17 = vpop.f32.mrb[162].mxu0  ;;  %v2795_v9 = vpop.f32.mrb[162].mxu1 }
 0x26c   : > { %v3598_v12 = vadd.f32 %v3597_v50, %v3596_v21  ;;  %v3640_v34 = vadd.f32 %v3639_v36, %v3638_v1  ;;  %v3326_v48 = vmax.f32 %v2679_v3, 0.0  ;;  %v3328_v27 = vmax.f32 %v2792_v4, 0.0  ;;  %v2684_v16 = vpop.f32.mrb[163].mxu0  ;;  %v2797_v23 = vpop.f32.mrb[163].mxu1 }
 0x26d   : > { %v3619_v0 = vadd.f32 %v3618_v11, %v3617_v53  ;;  %v3661_v14 = vadd.f32 %v3660_v35, %v3659_v2  ;;  %v3327_v46 = vmax.f32 %v2681_v26, 0.0  ;;  %v3329_v15 = vmax.f32 %v2794_v24, 0.0 }
 0x26e   : > { %v3599_v10 = vrot.slane %v3598_v12, 2  ;;  %v3641_v39 = vrot.slane %v3640_v34, 2  ;;  %v2683_v30 = vadd.f32 %v2682_v17, %v7823_v25  ;;  %v2796_v44 = vadd.f32 %v2795_v9, %v7833_v31 }
 0x26f   : > { %v3620_v62 = vrot.slane %v3619_v0, 2  ;;  %v3662_v51 = vrot.slane %v3661_v14, 2  ;;  %v2685_v58 = vadd.f32 %v2684_v16, %v7838_v33  ;;  %v2798_v20 = vadd.f32 %v2797_v23, %v7846_v38 }
 0x270   : > { %v3600_v57 = vadd.f32 %v3599_v10, %v3598_v12  ;;  %v3642_v40 = vadd.f32 %v3641_v39, %v3640_v34  ;;  %v3342_v29 = vmax.f32 %v2683_v30, 0.0  ;;  %v3344_v55 = vmax.f32 %v2796_v44, 0.0 }
 0x271   : > { %v3621_v37 = vadd.f32 %v3620_v62, %v3619_v0  ;;  %v3663_v56 = vadd.f32 %v3662_v51, %v3661_v14  ;;  %v3343_v7 = vmax.f32 %v2685_v58, 0.0  ;;  %v3345_v28 = vmax.f32 %v2798_v20, 0.0  ;;  %v2688_v13 = vpop.f32.mrb[164].mxu0  ;;  %v2801_v5 = vpop.f32.mrb[164].mxu1 }
 0x272   : > { %v3601_v41 = vrot.slane %v3600_v57, 1  ;;  %v3643_v6 = vrot.slane %v3642_v40, 1  ;;  %v3666_v21 = vadd.f32 %v3342_v29, %v3326_v48  ;;  %v3708_v1 = vadd.f32 %v3344_v55, %v3328_v27  ;;  %v2690_v53 = vpop.f32.mrb[165].mxu0  ;;  %v2803_v2 = vpop.f32.mrb[165].mxu1 }
 0x273   : > { %v3622_v52 = vrot.slane %v3621_v37, 1  ;;  %v3664_v19 = vrot.slane %v3663_v56, 1  ;;  %v3687_v50 = vadd.f32 %v3343_v7, %v3327_v46  ;;  %v3729_v36 = vadd.f32 %v3345_v28, %v3329_v15  ;;  %v2692_v3 = vpop.f32.mrb[166].mxu0  ;;  %v2805_v4 = vpop.f32.mrb[166].mxu1 }
 0x274   : > { %v3602_v49 = vadd.f32 %v3601_v41, %v3600_v57  ;;  %v3644_v61 = vadd.f32 %v3643_v6, %v3642_v40  ;;  %v2689_v11 = vadd.f32 %v2688_v13, %v7823_v25  ;;  %v2802_v35 = vadd.f32 %v2801_v5, %v7833_v31  ;;  %v2694_v26 = vpop.f32.mrb[167].mxu0  ;;  %v2807_v24 = vpop.f32.mrb[167].mxu1 }
 0x275   : > { %v3623_v17 = vadd.f32 %v3622_v52, %v3621_v37  ;;  %v3665_v9 = vadd.f32 %v3664_v19, %v3663_v56  ;;  %v2691_v12 = vadd.f32 %v2690_v53, %v7838_v33  ;;  %v2804_v34 = vadd.f32 %v2803_v2, %v7846_v38 }
 0x276   : > { %v3358_v48 = vmax.f32 %v2689_v11, 0.0  ;;  %v3360_v27 = vmax.f32 %v2802_v35, 0.0  ;;  %v2693_v16 = vadd.f32 %v2692_v3, %v7823_v25  ;;  %v2806_v23 = vadd.f32 %v2805_v4, %v7833_v31 }
 0x277   : > { %v3934_v0 = vcombine.low %v3602_v49, %v3623_v17  ;;  %v3935_v14 = vcombine.low %v3644_v61, %v3665_v9  ;;  %v3359_v46 = vmax.f32 %v2691_v12, 0.0  ;;  %v3361_v15 = vmax.f32 %v2804_v34, 0.0 }
 0x278   : > { %v3667_v10 = vadd.f32 %v3666_v21, %v3358_v48  ;;  %v3709_v39 = vadd.f32 %v3708_v1, %v3360_v27  ;;  %v3374_v30 = vmax.f32 %v2693_v16, 0.0  ;;  %v3376_v44 = vmax.f32 %v2806_v23, 0.0 }
 0x279   : > { %v8430_v62 = vrot.slane %v3934_v0, %v7859_v18  ;;  %v8433_v51 = vrot.slane %v3935_v14, %v7859_v18  ;;  %v3688_v58 = vadd.f32 %v3687_v50, %v3359_v46  ;;  %v3730_v20 = vadd.f32 %v3729_v36, %v3361_v15  ;;  %v2698_v57 = vpop.f32.mrb[168].mxu0  ;;  %v2811_v40 = vpop.f32.mrb[168].mxu1 }
 0x27a   : > { %v3668_v29 = vadd.f32 %v3667_v10, %v3374_v30  ;;  %v3710_v55 = vadd.f32 %v3709_v39, %v3376_v44  ;;  %v2695_v37 = vadd.f32 %v2694_v26, %v7838_v33  ;;  %v2808_v56 = vadd.f32 %v2807_v24, %v7846_v38  ;;  %v2700_v7 = vpop.f32.mrb[169].mxu0  ;;  %v2813_v28 = vpop.f32.mrb[169].mxu1 }
 0x27b   : > { %v3966_v13 = vcombine.low %v8430_v62, %v8433_v51  ;;  %v2699_v5 = vadd.f32 %v2698_v57, %v7823_v25  ;;  %v2812_v41 = vadd.f32 %v2811_v40, %v7833_v31  ;;  %v2701_v6 = vadd.f32 %v2700_v7, %v7838_v33  ;;  %v2702_v21 = vpop.f32.mrb[170].mxu0  ;;  %v2815_v1 = vpop.f32.mrb[170].mxu1 }
 0x27c   : > { %v3375_v53 = vmax.f32 %v2695_v37, 0.0  ;;  %v3377_v2 = vmax.f32 %v2808_v56, 0.0  ;;  %v2814_v52 = vadd.f32 %v2813_v28, %v7846_v38  ;;  %v2703_v19 = vadd.f32 %v2702_v21, %v7823_v25  ;;  %v2704_v50 = vpop.f32.mrb[171].mxu0  ;;  %v2817_v36 = vpop.f32.mrb[171].mxu1 }
 0x27d   : > { %v3390_v3 = vmax.f32 %v2699_v5, 0.0  ;;  %v3392_v4 = vmax.f32 %v2812_v41, 0.0  ;;  %v3391_v49 = vmax.f32 %v2701_v6, 0.0  ;;  %v2816_v9 = vadd.f32 %v2815_v1, %v7833_v31 }
 0x27e   : > { %v3689_v61 = vadd.f32 %v3688_v58, %v3375_v53  ;;  %v3731_v11 = vadd.f32 %v3730_v20, %v3377_v2  ;;  %v3393_v35 = vmax.f32 %v2814_v52, 0.0  ;;  %v3406_v26 = vmax.f32 %v2703_v19, 0.0 }
 0x27f   : > { %v3669_v24 = vadd.f32 %v3668_v29, %v3390_v3  ;;  %v3711_v17 = vadd.f32 %v3710_v55, %v3392_v4  ;;  %v2705_v12 = vadd.f32 %v2704_v50, %v7838_v33  ;;  %v2818_v27 = vadd.f32 %v2817_v36, %v7846_v38 }
 0x280   : > { %v3690_v34 = vadd.f32 %v3689_v61, %v3391_v49  ;;  %v3732_v48 = vadd.f32 %v3731_v11, %v3393_v35  ;;  %v3408_v23 = vmax.f32 %v2816_v9, 0.0 }
 0x281   : > { %v3670_v16 = vadd.f32 %v3669_v24, %v3406_v26  ;;  %v3407_v0 = vmax.f32 %v2705_v12, 0.0  ;;  %v2708_v14 = vpop.f32.mrb[172].mxu0  ;;  %v2821_v46 = vpop.f32.mrb[172].mxu1  ;;  %v3409_v15 = vmax.f32 %v2818_v27, 0.0 }
 0x282   : > { %v2709_v10 = vadd.f32 %v2708_v14, %v7823_v25  ;;  %v2822_v39 = vadd.f32 %v2821_v46, %v7833_v31  ;;  %v2710_v30 = vpop.f32.mrb[173].mxu0  ;;  %v2823_v44 = vpop.f32.mrb[173].mxu1  ;;  %v3712_v58 = vadd.f32 %v3711_v17, %v3408_v23 }
 0x283   : > { %v3691_v20 = vadd.f32 %v3690_v34, %v3407_v0  ;;  %v2711_v57 = vadd.f32 %v2710_v30, %v7838_v33  ;;  %v2824_v40 = vadd.f32 %v2823_v44, %v7846_v38  ;;  %v2712_v29 = vpop.f32.mrb[174].mxu0  ;;  %v2825_v55 = vpop.f32.mrb[174].mxu1  ;;  %v3733_v37 = vadd.f32 %v3732_v48, %v3409_v15 }
 0x284   : > { %v3422_v56 = vmax.f32 %v2709_v10, 0.0  ;;  %v3424_v7 = vmax.f32 %v2822_v39, 0.0  ;;  %v2713_v28 = vadd.f32 %v2712_v29, %v7823_v25  ;;  %v2714_v5 = vpop.f32.mrb[175].mxu0  ;;  %v2827_v41 = vpop.f32.mrb[175].mxu1  ;;  %v2826_v1 = vadd.f32 %v2825_v55, %v7833_v31 }
 0x285   : > { %v3423_v6 = vmax.f32 %v2711_v57, 0.0  ;;  %v3425_v21 = vmax.f32 %v2824_v40, 0.0  ;;  %v2715_v53 = vadd.f32 %v2714_v5, %v7838_v33  ;;  %v2828_v50 = vadd.f32 %v2827_v41, %v7846_v38 }
 0x286   : > { %v3671_v2 = vadd.f32 %v3670_v16, %v3422_v56  ;;  %v3713_v52 = vadd.f32 %v3712_v58, %v3424_v7  ;;  %v3438_v19 = vmax.f32 %v2713_v28, 0.0  ;;  %v3440_v4 = vmax.f32 %v2826_v1, 0.0 }
 0x287   : > { %v3692_v36 = vadd.f32 %v3691_v20, %v3423_v6  ;;  %v3734_v3 = vadd.f32 %v3733_v37, %v3425_v21  ;;  %v3439_v49 = vmax.f32 %v2715_v53, 0.0  ;;  %v3441_v11 = vmax.f32 %v2828_v50, 0.0 }
 0x288   : > { %v3672_v61 = vadd.f32 %v3671_v2, %v3438_v19  ;;  %v3714_v35 = vadd.f32 %v3713_v52, %v3440_v4 }
 0x289   : > { %v3693_v26 = vadd.f32 %v3692_v36, %v3439_v49  ;;  %v2718_v24 = vpop.f32.mrb[176].mxu0  ;;  %v2831_v17 = vpop.f32.mrb[176].mxu1  ;;  %v3735_v9 = vadd.f32 %v3734_v3, %v3441_v11 }
 0x28a   : > { %v2719_v12 = vadd.f32 %v2718_v24, %v7823_v25  ;;  %v2832_v34 = vadd.f32 %v2831_v17, %v7833_v31  ;;  %v2720_v48 = vpop.f32.mrb[177].mxu0  ;;  %v2833_v27 = vpop.f32.mrb[177].mxu1 }
 0x28b   : > { %v2721_v16 = vadd.f32 %v2720_v48, %v7838_v33  ;;  %v2834_v23 = vadd.f32 %v2833_v27, %v7846_v38  ;;  %v2722_v0 = vpop.f32.mrb[178].mxu0  ;;  %v2835_v14 = vpop.f32.mrb[178].mxu1 }
 0x28c   : > { %v3454_v46 = vmax.f32 %v2719_v12, 0.0  ;;  %v3456_v15 = vmax.f32 %v2832_v34, 0.0  ;;  %v2723_v10 = vadd.f32 %v2722_v0, %v7823_v25  ;;  %v2836_v39 = vadd.f32 %v2835_v14, %v7833_v31  ;;  %v2724_v30 = vpop.f32.mrb[179].mxu0  ;;  %v2837_v44 = vpop.f32.mrb[179].mxu1 }
 0x28d   : > { %v3455_v58 = vmax.f32 %v2721_v16, 0.0  ;;  %v3457_v20 = vmax.f32 %v2834_v23, 0.0  ;;  %v2725_v57 = vadd.f32 %v2724_v30, %v7838_v33  ;;  %v2838_v40 = vadd.f32 %v2837_v44, %v7846_v38 }
 0x28e   : > { %v3673_v29 = vadd.f32 %v3672_v61, %v3454_v46  ;;  %v3715_v55 = vadd.f32 %v3714_v35, %v3456_v15  ;;  %v3470_v37 = vmax.f32 %v2723_v10, 0.0  ;;  %v3472_v56 = vmax.f32 %v2836_v39, 0.0 }
 0x28f   : > { %v3694_v7 = vadd.f32 %v3693_v26, %v3455_v58  ;;  %v3736_v28 = vadd.f32 %v3735_v9, %v3457_v20  ;;  %v3471_v5 = vmax.f32 %v2725_v57, 0.0  ;;  %v3473_v41 = vmax.f32 %v2838_v40, 0.0 }
 0x290   : > { %v3674_v6 = vadd.f32 %v3673_v29, %v3470_v37  ;;  %v3716_v21 = vadd.f32 %v3715_v55, %v3472_v56 }
 0x291   : > { %v3695_v1 = vadd.f32 %v3694_v7, %v3471_v5  ;;  %v3737_v53 = vadd.f32 %v3736_v28, %v3473_v41  ;;  %v2728_v2 = vpop.f32.mrb[180].mxu0  ;;  %v2841_v52 = vpop.f32.mrb[180].mxu1 }
 0x292   : > { %v2729_v19 = vadd.f32 %v2728_v2, %v7823_v25  ;;  %v2842_v50 = vadd.f32 %v2841_v52, %v7833_v31  ;;  %v2730_v36 = vpop.f32.mrb[181].mxu0  ;;  %v2843_v3 = vpop.f32.mrb[181].mxu1 }
 0x293   : > { %v2731_v4 = vadd.f32 %v2730_v36, %v7838_v33  ;;  %v2844_v49 = vadd.f32 %v2843_v3, %v7846_v38  ;;  %v2732_v61 = vpop.f32.mrb[182].mxu0  ;;  %v2845_v11 = vpop.f32.mrb[182].mxu1 }
 0x294   : > { %v3486_v35 = vmax.f32 %v2729_v19, 0.0  ;;  %v3488_v26 = vmax.f32 %v2842_v50, 0.0  ;;  %v2733_v24 = vadd.f32 %v2732_v61, %v7823_v25  ;;  %v2846_v17 = vadd.f32 %v2845_v11, %v7833_v31  ;;  %v2734_v9 = vpop.f32.mrb[183].mxu0  ;;  %v2847_v12 = vpop.f32.mrb[183].mxu1 }
 0x295   : > { %v3487_v34 = vmax.f32 %v2731_v4, 0.0  ;;  %v3489_v48 = vmax.f32 %v2844_v49, 0.0  ;;  %v2735_v27 = vadd.f32 %v2734_v9, %v7838_v33  ;;  %v2848_v16 = vadd.f32 %v2847_v12, %v7846_v38 }
 0x296   : > { %v3675_v23 = vadd.f32 %v3674_v6, %v3486_v35  ;;  %v3717_v0 = vadd.f32 %v3716_v21, %v3488_v26  ;;  %v3502_v14 = vmax.f32 %v2733_v24, 0.0  ;;  %v3504_v46 = vmax.f32 %v2846_v17, 0.0 }
 0x297   : > { %v3696_v15 = vadd.f32 %v3695_v1, %v3487_v34  ;;  %v3738_v10 = vadd.f32 %v3737_v53, %v3489_v48  ;;  %v3503_v39 = vmax.f32 %v2735_v27, 0.0  ;;  %v3505_v30 = vmax.f32 %v2848_v16, 0.0 }
 0x298   : > { %v3676_v44 = vadd.f32 %v3675_v23, %v3502_v14  ;;  %v3718_v58 = vadd.f32 %v3717_v0, %v3504_v46 }
 0x299   : > { %v3697_v20 = vadd.f32 %v3696_v15, %v3503_v39  ;;  %v3739_v57 = vadd.f32 %v3738_v10, %v3505_v30  ;;  %v2738_v40 = vpop.f32.mrb[184].mxu0 }
 0x29a   : > { %v2739_v29 = vadd.f32 %v2738_v40, %v7823_v25  ;;  %v2851_v55 = vpop.f32.mrb[184].mxu1  ;;  %v2740_v37 = vpop.f32.mrb[185].mxu0 }
 0x29b   : > { %v2852_v56 = vadd.f32 %v2851_v55, %v7833_v31  ;;  %v2741_v7 = vadd.f32 %v2740_v37, %v7838_v33  ;;  %v2853_v28 = vpop.f32.mrb[185].mxu1  ;;  %v2742_v5 = vpop.f32.mrb[186].mxu0 }
 0x29c   : > { %v3518_v41 = vmax.f32 %v2739_v29, 0.0  ;;  %v2854_v6 = vadd.f32 %v2853_v28, %v7846_v38  ;;  %v2743_v21 = vadd.f32 %v2742_v5, %v7823_v25  ;;  %v2855_v1 = vpop.f32.mrb[186].mxu1  ;;  %v2744_v53 = vpop.f32.mrb[187].mxu0 }
 0x29d   : > { %v3520_v2 = vmax.f32 %v2852_v56, 0.0  ;;  %v3519_v52 = vmax.f32 %v2741_v7, 0.0  ;;  %v2856_v19 = vadd.f32 %v2855_v1, %v7833_v31  ;;  %v2745_v50 = vadd.f32 %v2744_v53, %v7838_v33  ;;  %v2857_v36 = vpop.f32.mrb[187].mxu1 }
 0x29e   : > { %v3677_v3 = vadd.f32 %v3676_v44, %v3518_v41  ;;  %v3521_v4 = vmax.f32 %v2854_v6, 0.0  ;;  %v3534_v49 = vmax.f32 %v2743_v21, 0.0  ;;  %v2858_v61 = vadd.f32 %v2857_v36, %v7846_v38 }
 0x29f   : > { %v3719_v11 = vadd.f32 %v3718_v58, %v3520_v2  ;;  %v3698_v35 = vadd.f32 %v3697_v20, %v3519_v52  ;;  %v3536_v26 = vmax.f32 %v2856_v19, 0.0  ;;  %v3535_v24 = vmax.f32 %v2745_v50, 0.0 }
 0x2a0   : > { %v3740_v17 = vadd.f32 %v3739_v57, %v3521_v4  ;;  %v3678_v9 = vadd.f32 %v3677_v3, %v3534_v49  ;;  %v3537_v12 = vmax.f32 %v2858_v61, 0.0 }
 0x2a1   : > { %v3720_v34 = vadd.f32 %v3719_v11, %v3536_v26  ;;  %v3699_v48 = vadd.f32 %v3698_v35, %v3535_v24  ;;  %v2748_v27 = vpop.f32.mrb[188].mxu0 }
 0x2a2   : > { %v3741_v16 = vadd.f32 %v3740_v17, %v3537_v12  ;;  %v2749_v23 = vadd.f32 %v2748_v27, %v7823_v25  ;;  %v2861_v0 = vpop.f32.mrb[188].mxu1  ;;  %v2750_v14 = vpop.f32.mrb[189].mxu0 }
 0x2a3   : > { %v2862_v46 = vadd.f32 %v2861_v0, %v7833_v31  ;;  %v2751_v15 = vadd.f32 %v2750_v14, %v7838_v33  ;;  %v2863_v10 = vpop.f32.mrb[189].mxu1  ;;  %v2752_v39 = vpop.f32.mrb[190].mxu0 }
 0x2a4   : > { %v3550_v30 = vmax.f32 %v2749_v23, 0.0  ;;  %v2864_v44 = vadd.f32 %v2863_v10, %v7846_v38  ;;  %v2753_v58 = vadd.f32 %v2752_v39, %v7823_v25  ;;  %v2865_v20 = vpop.f32.mrb[190].mxu1  ;;  %v2754_v57 = vpop.f32.mrb[191].mxu0 }
 0x2a5   : > { %v3552_v40 = vmax.f32 %v2862_v46, 0.0  ;;  %v3551_v29 = vmax.f32 %v2751_v15, 0.0  ;;  %v2866_v55 = vadd.f32 %v2865_v20, %v7833_v31  ;;  %v2755_v37 = vadd.f32 %v2754_v57, %v7838_v33  ;;  %v2867_v56 = vpop.f32.mrb[191].mxu1 }
 0x2a6   : > { %v3679_v7 = vadd.f32 %v3678_v9, %v3550_v30  ;;  %v3553_v28 = vmax.f32 %v2864_v44, 0.0  ;;  %v3566_v5 = vmax.f32 %v2753_v58, 0.0  ;;  %v2868_v41 = vadd.f32 %v2867_v56, %v7846_v38 }
 0x2a7   : > { %v3721_v6 = vadd.f32 %v3720_v34, %v3552_v40  ;;  %v3700_v21 = vadd.f32 %v3699_v48, %v3551_v29  ;;  %v3568_v1 = vmax.f32 %v2866_v55, 0.0  ;;  %v3567_v53 = vmax.f32 %v2755_v37, 0.0 }
 0x2a8   : > { %v3742_v2 = vadd.f32 %v3741_v16, %v3553_v28  ;;  %v3680_v25 = vadd.f32 %v3679_v7, %v3566_v5  ;;  %v3569_v52 = vmax.f32 %v2868_v41, 0.0  ;;  %v8491_v31 = vrot.slane %v3966_v13, %v7859_v18 }
 0x2a9   : > { %v3722_v19 = vadd.f32 %v3721_v6, %v3568_v1  ;;  %v3701_v50 = vadd.f32 %v3700_v21, %v3567_v53  ;;  %v2904_v36 = vpop.f32.mrb[192].mxu0 }
 0x2aa   : > { %v3681_v33 = vrot.slane %v3680_v25, 4  ;;  %v3743_v3 = vadd.f32 %v3742_v2, %v3569_v52  ;;  %v2905_v38 = vadd.f32 %v2904_v36, %v7997_v32  ;;  %v3017_v4 = vpop.f32.mrb[192].mxu1  ;;  %v2906_v49 = vpop.f32.mrb[193].mxu0 }
 0x2ab   : > { %v3723_v61 = vrot.slane %v3722_v19, 4  ;;  %v3702_v11 = vrot.slane %v3701_v50, 4  ;;  %v3018_v35 = vadd.f32 %v3017_v4, %v8002_v54  ;;  %v2907_v26 = vadd.f32 %v2906_v49, %v8008_v47  ;;  %v3019_v24 = vpop.f32.mrb[193].mxu1  ;;  %v2908_v17 = vpop.f32.mrb[194].mxu0 }
 0x2ac   : > { %v3682_v9 = vadd.f32 %v3681_v33, %v3680_v25  ;;  %v3744_v12 = vrot.slane %v3743_v3, 4  ;;  %v3330_v34 = vmax.f32 %v2905_v38, 0.0  ;;  %v3020_v62 = vadd.f32 %v3019_v24, %v8013_v8  ;;  %v3021_v51 = vpop.f32.mrb[194].mxu1  ;;  %v2910_v13 = vpop.f32.mrb[195].mxu0 }
 0x2ad   : > { %v3724_v48 = vadd.f32 %v3723_v61, %v3722_v19  ;;  %v3703_v27 = vadd.f32 %v3702_v11, %v3701_v50  ;;  %v3332_v16 = vmax.f32 %v3018_v35, 0.0  ;;  %v3331_v23 = vmax.f32 %v2907_v26, 0.0  ;;  %v3023_v0 = vpop.f32.mrb[195].mxu1 }
 0x2ae   : > { %v3683_v14 = vrot.slane %v3682_v9, 2  ;;  %v3745_v46 = vadd.f32 %v3744_v12, %v3743_v3  ;;  %v3333_v15 = vmax.f32 %v3020_v62, 0.0  ;;  %v2909_v10 = vadd.f32 %v2908_v17, %v7997_v32 }
 0x2af   : > { %v3725_v39 = vrot.slane %v3724_v48, 2  ;;  %v3704_v30 = vrot.slane %v3703_v27, 2  ;;  %v3022_v44 = vadd.f32 %v3021_v51, %v8002_v54  ;;  %v2911_v58 = vadd.f32 %v2910_v13, %v8008_v47 }
 0x2b0   : > { %v3684_v20 = vadd.f32 %v3683_v14, %v3682_v9  ;;  %v3746_v57 = vrot.slane %v3745_v46, 2  ;;  %v3346_v40 = vmax.f32 %v2909_v10, 0.0  ;;  %v3024_v29 = vadd.f32 %v3023_v0, %v8013_v8 }
 0x2b1   : > { %v3726_v55 = vadd.f32 %v3725_v39, %v3724_v48  ;;  %v3705_v37 = vadd.f32 %v3704_v30, %v3703_v27  ;;  %v3348_v56 = vmax.f32 %v3022_v44, 0.0  ;;  %v3347_v7 = vmax.f32 %v2911_v58, 0.0  ;;  %v2914_v28 = vpop.f32.mrb[196].mxu0 }
 0x2b2   : > { %v3685_v5 = vrot.slane %v3684_v20, 1  ;;  %v3747_v41 = vadd.f32 %v3746_v57, %v3745_v46  ;;  %v3750_v6 = vadd.f32 %v3346_v40, %v3330_v34  ;;  %v3349_v21 = vmax.f32 %v3024_v29, 0.0  ;;  %v3027_v1 = vpop.f32.mrb[196].mxu1  ;;  %v2916_v53 = vpop.f32.mrb[197].mxu0 }
 0x2b3   : > { %v3727_v2 = vrot.slane %v3726_v55, 1  ;;  %v3706_v25 = vrot.slane %v3705_v37, 1  ;;  %v3792_v52 = vadd.f32 %v3348_v56, %v3332_v16  ;;  %v3771_v19 = vadd.f32 %v3347_v7, %v3331_v23  ;;  %v3029_v50 = vpop.f32.mrb[197].mxu1  ;;  %v2918_v36 = vpop.f32.mrb[198].mxu0 }
 0x2b4   : > { %v3686_v33 = vadd.f32 %v3685_v5, %v3684_v20  ;;  %v3748_v3 = vrot.slane %v3747_v41, 1  ;;  %v3813_v38 = vadd.f32 %v3349_v21, %v3333_v15  ;;  %v2915_v4 = vadd.f32 %v2914_v28, %v7997_v32  ;;  %v3031_v49 = vpop.f32.mrb[198].mxu1  ;;  %v2920_v61 = vpop.f32.mrb[199].mxu0 }
 0x2b5   : > { %v3728_v11 = vadd.f32 %v3727_v2, %v3726_v55  ;;  %v3707_v35 = vadd.f32 %v3706_v25, %v3705_v37  ;;  %v3028_v26 = vadd.f32 %v3027_v1, %v8002_v54  ;;  %v2917_v24 = vadd.f32 %v2916_v53, %v8008_v47  ;;  %v3033_v17 = vpop.f32.mrb[199].mxu1 }
 0x2b6   : > { %v3749_v9 = vadd.f32 %v3748_v3, %v3747_v41  ;;  %v3362_v12 = vmax.f32 %v2915_v4, 0.0  ;;  %v3030_v34 = vadd.f32 %v3029_v50, %v8013_v8  ;;  %v2919_v62 = vadd.f32 %v2918_v36, %v7997_v32 }
 0x2b7   : > { %v3936_v51 = vcombine.low %v3686_v33, %v3707_v35  ;;  %v3364_v13 = vmax.f32 %v3028_v26, 0.0  ;;  %v3363_v48 = vmax.f32 %v2917_v24, 0.0  ;;  %v3032_v27 = vadd.f32 %v3031_v49, %v8002_v54  ;;  %v3579_v49 = vld [vmem:[#allocation2 + $0x1] ss:$2 sm:$0xff] }
 0x2b8   : > { %v3937_v16 = vcombine.low %v3728_v11, %v3749_v9  ;;  %v3751_v23 = vadd.f32 %v3750_v6, %v3362_v12  ;;  %v3365_v0 = vmax.f32 %v3030_v34, 0.0  ;;  %v3378_v14 = vmax.f32 %v2919_v62, 0.0 }
 0x2b9   : > { %v3958_v46 = vrot.slane %v3936_v51, %v7859_v18  ;;  %v3793_v15 = vadd.f32 %v3792_v52, %v3364_v13  ;;  %v3772_v10 = vadd.f32 %v3771_v19, %v3363_v48  ;;  %v3380_v39 = vmax.f32 %v3032_v27, 0.0  ;;  %v2924_v30 = vpop.f32.mrb[200].mxu0 }
 0x2ba   : > { %v3965_v44 = vrot.slane %v3937_v16, %v7859_v18  ;;  %v3814_v58 = vadd.f32 %v3813_v38, %v3365_v0  ;;  %v3752_v20 = vadd.f32 %v3751_v23, %v3378_v14  ;;  %v2921_v57 = vadd.f32 %v2920_v61, %v8008_v47  ;;  %v3037_v40 = vpop.f32.mrb[200].mxu1  ;;  %v2926_v29 = vpop.f32.mrb[201].mxu0 }
 0x2bb   : > { %v3794_v55 = vadd.f32 %v3793_v15, %v3380_v39  ;;  %v3034_v37 = vadd.f32 %v3033_v17, %v8013_v8  ;;  %v2925_v56 = vadd.f32 %v2924_v30, %v7997_v32  ;;  %v3038_v7 = vadd.f32 %v3037_v40, %v8002_v54  ;;  %v3039_v28 = vpop.f32.mrb[201].mxu1  ;;  %v2928_v5 = vpop.f32.mrb[202].mxu0 }
 0x2bc   : > { %v3967_v41 = vcombine.low %v3958_v46, %v3965_v44  ;;  %v3379_v6 = vmax.f32 %v2921_v57, 0.0  ;;  %v2927_v21 = vadd.f32 %v2926_v29, %v8008_v47  ;;  %v3040_v1 = vadd.f32 %v3039_v28, %v8013_v8  ;;  %v3041_v53 = vpop.f32.mrb[202].mxu1  ;;  %v2930_v2 = vpop.f32.mrb[203].mxu0 }
 0x2bd   : > { %v3381_v25 = vmax.f32 %v3034_v37, 0.0  ;;  %v3394_v52 = vmax.f32 %v2925_v56, 0.0  ;;  %v3396_v19 = vmax.f32 %v3038_v7, 0.0  ;;  %v2929_v50 = vadd.f32 %v2928_v5, %v7997_v32  ;;  %v3043_v36 = vpop.f32.mrb[203].mxu1 }
 0x2be   : > { %v3981_v33 = vrot.slane %v3967_v41, %v7859_v18  ;;  %v3773_v3 = vadd.f32 %v3772_v10, %v3379_v6  ;;  %v3395_v38 = vmax.f32 %v2927_v21, 0.0  ;;  %v3397_v4 = vmax.f32 %v3040_v1, 0.0 }
 0x2bf   : > { %v3815_v61 = vadd.f32 %v3814_v58, %v3381_v25  ;;  %v3753_v11 = vadd.f32 %v3752_v20, %v3394_v52  ;;  %v3795_v35 = vadd.f32 %v3794_v55, %v3396_v19  ;;  %v3410_v26 = vmax.f32 %v2929_v50, 0.0 }
 0x2c0   : > { %v3982_v24 = vcombine.low %v8491_v31, %v3981_v33  ;;  %v3774_v17 = vadd.f32 %v3773_v3, %v3395_v38  ;;  %v3042_v9 = vadd.f32 %v3041_v53, %v8002_v54  ;;  %v2931_v12 = vadd.f32 %v2930_v2, %v8008_v47 }
 0x2c1   : > { %v3816_v34 = vadd.f32 %v3815_v61, %v3397_v4  ;;  %v3754_v62 = vadd.f32 %v3753_v11, %v3410_v26  ;;  %v3044_v51 = vadd.f32 %v3043_v36, %v8013_v8  ;;  %v2934_v13 = vpop.f32.mrb[204].mxu0 }
 0x2c2   : > { %v4034_v48 = vadd.f32 %v3982_v24, %v3579_v49  ;;  %v3412_v27 = vmax.f32 %v3042_v9, 0.0  ;;  %v3411_v16 = vmax.f32 %v2931_v12, 0.0  ;;  %v2935_v23 = vadd.f32 %v2934_v13, %v7997_v32  ;;  %v3047_v0 = vpop.f32.mrb[204].mxu1  ;;  %v2936_v14 = vpop.f32.mrb[205].mxu0 }
 0x2c3   : > { %v3413_v46 = vmax.f32 %v3044_v51, 0.0  ;;  %v3048_v31 = vadd.f32 %v3047_v0, %v8002_v54  ;;  %v2937_v15 = vadd.f32 %v2936_v14, %v8008_v47  ;;  %v3049_v10 = vpop.f32.mrb[205].mxu1  ;;  %v2938_v39 = vpop.f32.mrb[206].mxu0 }
 0x2c4   : > { %4036 = vst [vmem:[#allocation2 + $0x1] ss:$2 sm:$0xff] %v4034_v48  ;;  %v3796_v30 = vadd.f32 %v3795_v35, %v3412_v27  ;;  %v3775_v44 = vadd.f32 %v3774_v17, %v3411_v16  ;;  %v3426_v58 = vmax.f32 %v2935_v23, 0.0  ;;  %v3050_v20 = vadd.f32 %v3049_v10, %v8013_v8  ;;  %v3051_v57 = vpop.f32.mrb[206].mxu1  ;;  %v2940_v40 = vpop.f32.mrb[207].mxu0 }
 0x2c5   : > { %v3817_v29 = vadd.f32 %v3816_v34, %v3413_v46  ;;  %v3428_v55 = vmax.f32 %v3048_v31, 0.0  ;;  %v3427_v37 = vmax.f32 %v2937_v15, 0.0  ;;  %v2939_v56 = vadd.f32 %v2938_v39, %v7997_v32  ;;  %v3053_v7 = vpop.f32.mrb[207].mxu1 }
 0x2c6   : > { %v3755_v28 = vadd.f32 %v3754_v62, %v3426_v58  ;;  %v3429_v5 = vmax.f32 %v3050_v20, 0.0  ;;  %v3052_v41 = vadd.f32 %v3051_v57, %v8002_v54  ;;  %v2941_v6 = vadd.f32 %v2940_v40, %v8008_v47 }
 0x2c7   : > { %v3797_v21 = vadd.f32 %v3796_v30, %v3428_v55  ;;  %v3776_v1 = vadd.f32 %v3775_v44, %v3427_v37  ;;  %v3442_v53 = vmax.f32 %v2939_v56, 0.0  ;;  %v3054_v2 = vadd.f32 %v3053_v7, %v8013_v8 }
 0x2c8   : > { %v3818_v25 = vadd.f32 %v3817_v29, %v3429_v5  ;;  %v3444_v52 = vmax.f32 %v3052_v41, 0.0  ;;  %v3443_v19 = vmax.f32 %v2941_v6, 0.0 }
 0x2c9   : > { %v3756_v50 = vadd.f32 %v3755_v28, %v3442_v53  ;;  %v3445_v36 = vmax.f32 %v3054_v2, 0.0  ;;  %v2944_v33 = vpop.f32.mrb[208].mxu0 }
 0x2ca   : > { %v3798_v3 = vadd.f32 %v3797_v21, %v3444_v52  ;;  %v3777_v38 = vadd.f32 %v3776_v1, %v3443_v19  ;;  %v2945_v4 = vadd.f32 %v2944_v33, %v7997_v32  ;;  %v3057_v49 = vpop.f32.mrb[208].mxu1  ;;  %v2946_v61 = vpop.f32.mrb[209].mxu0 }
 0x2cb   : > { %v3819_v11 = vadd.f32 %v3818_v25, %v3445_v36  ;;  %v3058_v35 = vadd.f32 %v3057_v49, %v8002_v54  ;;  %v2947_v26 = vadd.f32 %v2946_v61, %v8008_v47  ;;  %v3059_v24 = vpop.f32.mrb[209].mxu1  ;;  %v2948_v17 = vpop.f32.mrb[210].mxu0 }
 0x2cc   : > { %v3458_v9 = vmax.f32 %v2945_v4, 0.0  ;;  %v3060_v12 = vadd.f32 %v3059_v24, %v8013_v8  ;;  %v2949_v34 = vadd.f32 %v2948_v17, %v7997_v32  ;;  %v3061_v62 = vpop.f32.mrb[210].mxu1  ;;  %v2950_v51 = vpop.f32.mrb[211].mxu0 }
 0x2cd   : > { %v3460_v13 = vmax.f32 %v3058_v35, 0.0  ;;  %v3459_v48 = vmax.f32 %v2947_v26, 0.0  ;;  %v3062_v27 = vadd.f32 %v3061_v62, %v8002_v54  ;;  %v2951_v16 = vadd.f32 %v2950_v51, %v8008_v47  ;;  %v3063_v23 = vpop.f32.mrb[211].mxu1 }
 0x2ce   : > { %v3757_v0 = vadd.f32 %v3756_v50, %v3458_v9  ;;  %v3461_v14 = vmax.f32 %v3060_v12, 0.0  ;;  %v3474_v46 = vmax.f32 %v2949_v34, 0.0  ;;  %v3064_v31 = vadd.f32 %v3063_v23, %v8013_v8 }
 0x2cf   : > { %v3799_v15 = vadd.f32 %v3798_v3, %v3460_v13  ;;  %v3778_v10 = vadd.f32 %v3777_v38, %v3459_v48  ;;  %v3476_v39 = vmax.f32 %v3062_v27, 0.0  ;;  %v3475_v30 = vmax.f32 %v2951_v16, 0.0 }
 0x2d0   : > { %v3820_v44 = vadd.f32 %v3819_v11, %v3461_v14  ;;  %v3758_v58 = vadd.f32 %v3757_v0, %v3474_v46  ;;  %v3477_v20 = vmax.f32 %v3064_v31, 0.0 }
 0x2d1   : > { %v3800_v57 = vadd.f32 %v3799_v15, %v3476_v39  ;;  %v3779_v40 = vadd.f32 %v3778_v10, %v3475_v30  ;;  %v2954_v29 = vpop.f32.mrb[212].mxu0 }
 0x2d2   : > { %v3821_v55 = vadd.f32 %v3820_v44, %v3477_v20  ;;  %v2955_v37 = vadd.f32 %v2954_v29, %v7997_v32  ;;  %v3067_v56 = vpop.f32.mrb[212].mxu1  ;;  %v2956_v7 = vpop.f32.mrb[213].mxu0 }
 0x2d3   : > { %v3068_v28 = vadd.f32 %v3067_v56, %v8002_v54  ;;  %v2957_v5 = vadd.f32 %v2956_v7, %v8008_v47  ;;  %v3069_v41 = vpop.f32.mrb[213].mxu1  ;;  %v2958_v6 = vpop.f32.mrb[214].mxu0 }
 0x2d4   : > { %v3490_v21 = vmax.f32 %v2955_v37, 0.0  ;;  %v3070_v1 = vadd.f32 %v3069_v41, %v8013_v8  ;;  %v2959_v53 = vadd.f32 %v2958_v6, %v7997_v32  ;;  %v3071_v2 = vpop.f32.mrb[214].mxu1  ;;  %v2960_v25 = vpop.f32.mrb[215].mxu0 }
 0x2d5   : > { %v3492_v52 = vmax.f32 %v3068_v28, 0.0  ;;  %v3491_v19 = vmax.f32 %v2957_v5, 0.0  ;;  %v3072_v50 = vadd.f32 %v3071_v2, %v8002_v54  ;;  %v2961_v36 = vadd.f32 %v2960_v25, %v8008_v47  ;;  %v3073_v33 = vpop.f32.mrb[215].mxu1 }
 0x2d6   : > { %v3759_v3 = vadd.f32 %v3758_v58, %v3490_v21  ;;  %v3493_v38 = vmax.f32 %v3070_v1, 0.0  ;;  %v3506_v4 = vmax.f32 %v2959_v53, 0.0  ;;  %v3074_v49 = vadd.f32 %v3073_v33, %v8013_v8 }
 0x2d7   : > { %v3801_v61 = vadd.f32 %v3800_v57, %v3492_v52  ;;  %v3780_v11 = vadd.f32 %v3779_v40, %v3491_v19  ;;  %v3508_v35 = vmax.f32 %v3072_v50, 0.0  ;;  %v3507_v26 = vmax.f32 %v2961_v36, 0.0 }
 0x2d8   : > { %v3822_v24 = vadd.f32 %v3821_v55, %v3493_v38  ;;  %v3760_v17 = vadd.f32 %v3759_v3, %v3506_v4  ;;  %v3509_v9 = vmax.f32 %v3074_v49, 0.0 }
 0x2d9   : > { %v3802_v12 = vadd.f32 %v3801_v61, %v3508_v35  ;;  %v3781_v34 = vadd.f32 %v3780_v11, %v3507_v26  ;;  %v2964_v62 = vpop.f32.mrb[216].mxu0 }
 0x2da   : > { %v3823_v51 = vadd.f32 %v3822_v24, %v3509_v9  ;;  %v2965_v13 = vadd.f32 %v2964_v62, %v7997_v32  ;;  %v3077_v48 = vpop.f32.mrb[216].mxu1  ;;  %v2966_v27 = vpop.f32.mrb[217].mxu0 }
 0x2db   : > { %v3078_v16 = vadd.f32 %v3077_v48, %v8002_v54  ;;  %v2967_v23 = vadd.f32 %v2966_v27, %v8008_v47  ;;  %v3079_v0 = vpop.f32.mrb[217].mxu1  ;;  %v2968_v14 = vpop.f32.mrb[218].mxu0 }
 0x2dc   : > { %v3522_v46 = vmax.f32 %v2965_v13, 0.0  ;;  %v3080_v31 = vadd.f32 %v3079_v0, %v8013_v8  ;;  %v2969_v15 = vadd.f32 %v2968_v14, %v7997_v32  ;;  %v3081_v10 = vpop.f32.mrb[218].mxu1  ;;  %v2970_v39 = vpop.f32.mrb[219].mxu0 }
 0x2dd   : > { %v3524_v30 = vmax.f32 %v3078_v16, 0.0  ;;  %v3523_v44 = vmax.f32 %v2967_v23, 0.0  ;;  %v3082_v58 = vadd.f32 %v3081_v10, %v8002_v54  ;;  %v2971_v20 = vadd.f32 %v2970_v39, %v8008_v47  ;;  %v3083_v57 = vpop.f32.mrb[219].mxu1 }
 0x2de   : > { %v3761_v40 = vadd.f32 %v3760_v17, %v3522_v46  ;;  %v3525_v29 = vmax.f32 %v3080_v31, 0.0  ;;  %v3538_v55 = vmax.f32 %v2969_v15, 0.0  ;;  %v3084_v37 = vadd.f32 %v3083_v57, %v8013_v8 }
 0x2df   : > { %v3803_v56 = vadd.f32 %v3802_v12, %v3524_v30  ;;  %v3782_v7 = vadd.f32 %v3781_v34, %v3523_v44  ;;  %v3540_v28 = vmax.f32 %v3082_v58, 0.0  ;;  %v3539_v5 = vmax.f32 %v2971_v20, 0.0 }
 0x2e0   : > { %v3824_v41 = vadd.f32 %v3823_v51, %v3525_v29  ;;  %v3762_v6 = vadd.f32 %v3761_v40, %v3538_v55  ;;  %v3541_v21 = vmax.f32 %v3084_v37, 0.0 }
 0x2e1   : > { %v3804_v1 = vadd.f32 %v3803_v56, %v3540_v28  ;;  %v3783_v53 = vadd.f32 %v3782_v7, %v3539_v5  ;;  %v2974_v2 = vpop.f32.mrb[220].mxu0 }
 0x2e2   : > { %v3825_v25 = vadd.f32 %v3824_v41, %v3541_v21  ;;  %v2975_v52 = vadd.f32 %v2974_v2, %v7997_v32  ;;  %v3087_v19 = vpop.f32.mrb[220].mxu1  ;;  %v2976_v50 = vpop.f32.mrb[221].mxu0 }
 0x2e3   : > { %v3088_v36 = vadd.f32 %v3087_v19, %v8002_v54  ;;  %v2977_v33 = vadd.f32 %v2976_v50, %v8008_v47  ;;  %v3089_v3 = vpop.f32.mrb[221].mxu1  ;;  %v2978_v38 = vpop.f32.mrb[222].mxu0 }
 0x2e4   : > { %v3554_v4 = vmax.f32 %v2975_v52, 0.0  ;;  %v3090_v49 = vadd.f32 %v3089_v3, %v8013_v8  ;;  %v2979_v61 = vadd.f32 %v2978_v38, %v7997_v32  ;;  %v3091_v11 = vpop.f32.mrb[222].mxu1  ;;  %v2980_v35 = vpop.f32.mrb[223].mxu0 }
 0x2e5   : > { %v3556_v26 = vmax.f32 %v3088_v36, 0.0  ;;  %v3555_v24 = vmax.f32 %v2977_v33, 0.0  ;;  %v3092_v17 = vadd.f32 %v3091_v11, %v8002_v54  ;;  %v2981_v9 = vadd.f32 %v2980_v35, %v8008_v47  ;;  %v3093_v12 = vpop.f32.mrb[223].mxu1 }
 0x2e6   : > { %v3763_v34 = vadd.f32 %v3762_v6, %v3554_v4  ;;  %v3557_v62 = vmax.f32 %v3090_v49, 0.0  ;;  %v3570_v51 = vmax.f32 %v2979_v61, 0.0  ;;  %v3094_v13 = vadd.f32 %v3093_v12, %v8013_v8 }
 0x2e7   : > { %v3805_v48 = vadd.f32 %v3804_v1, %v3556_v26  ;;  %v3784_v27 = vadd.f32 %v3783_v53, %v3555_v24  ;;  %v3572_v16 = vmax.f32 %v3092_v17, 0.0  ;;  %v3571_v23 = vmax.f32 %v2981_v9, 0.0 }
 0x2e8   : > { %v3826_v0 = vadd.f32 %v3825_v25, %v3557_v62  ;;  %v3764_v32 = vadd.f32 %v3763_v34, %v3570_v51  ;;  %v3573_v14 = vmax.f32 %v3094_v13, 0.0 }
 0x2e9   : > { %v3806_v46 = vadd.f32 %v3805_v48, %v3572_v16  ;;  %v3785_v31 = vadd.f32 %v3784_v27, %v3571_v23  ;;  %v3130_v15 = vpop.f32.mrb[224].mxu0 }
 0x2ea   : > { %v3765_v10 = vrot.slane %v3764_v32, 4  ;;  %v3827_v54 = vadd.f32 %v3826_v0, %v3573_v14  ;;  %v3131_v47 = vadd.f32 %v3130_v15, %v8146_v45  ;;  %v3243_v39 = vpop.f32.mrb[224].mxu1  ;;  %v3132_v30 = vpop.f32.mrb[225].mxu0 }
 0x2eb   : > { %v3807_v44 = vrot.slane %v3806_v46, 4  ;;  %v3786_v58 = vrot.slane %v3785_v31, 4  ;;  %v3244_v8 = vadd.f32 %v3243_v39, %v8151_v43  ;;  %v3133_v20 = vadd.f32 %v3132_v30, %v8158_v22  ;;  %v3245_v57 = vpop.f32.mrb[225].mxu1  ;;  %v3134_v40 = vpop.f32.mrb[226].mxu0 }
 0x2ec   : > { %v3766_v29 = vadd.f32 %v3765_v10, %v3764_v32  ;;  %v3828_v55 = vrot.slane %v3827_v54, 4  ;;  %v3334_v37 = vmax.f32 %v3131_v47, 0.0  ;;  %v3246_v56 = vadd.f32 %v3245_v57, %v8163_v42  ;;  %v3247_v7 = vpop.f32.mrb[226].mxu1  ;;  %v3136_v28 = vpop.f32.mrb[227].mxu0 }
 0x2ed   : > { %v3808_v5 = vadd.f32 %v3807_v44, %v3806_v46  ;;  %v3787_v41 = vadd.f32 %v3786_v58, %v3785_v31  ;;  %v3336_v6 = vmax.f32 %v3244_v8, 0.0  ;;  %v3335_v21 = vmax.f32 %v3133_v20, 0.0  ;;  %v3249_v1 = vpop.f32.mrb[227].mxu1 }
 0x2ee   : > { %v3767_v53 = vrot.slane %v3766_v29, 2  ;;  %v3829_v2 = vadd.f32 %v3828_v55, %v3827_v54  ;;  %v3337_v25 = vmax.f32 %v3246_v56, 0.0  ;;  %v3135_v52 = vadd.f32 %v3134_v40, %v8146_v45 }
 0x2ef   : > { %v3809_v19 = vrot.slane %v3808_v5, 2  ;;  %v3788_v50 = vrot.slane %v3787_v41, 2  ;;  %v3248_v36 = vadd.f32 %v3247_v7, %v8151_v43  ;;  %v3137_v33 = vadd.f32 %v3136_v28, %v8158_v22 }
 0x2f0   : > { %v3768_v3 = vadd.f32 %v3767_v53, %v3766_v29  ;;  %v3830_v38 = vrot.slane %v3829_v2, 2  ;;  %v3350_v4 = vmax.f32 %v3135_v52, 0.0  ;;  %v3250_v49 = vadd.f32 %v3249_v1, %v8163_v42 }
 0x2f1   : > { %v3810_v61 = vadd.f32 %v3809_v19, %v3808_v5  ;;  %v3789_v11 = vadd.f32 %v3788_v50, %v3787_v41  ;;  %v3352_v35 = vmax.f32 %v3248_v36, 0.0  ;;  %v3351_v26 = vmax.f32 %v3137_v33, 0.0  ;;  %v3140_v24 = vpop.f32.mrb[228].mxu0 }
 0x2f2   : > { %v3769_v17 = vrot.slane %v3768_v3, 1  ;;  %v3831_v9 = vadd.f32 %v3830_v38, %v3829_v2  ;;  %v3834_v12 = vadd.f32 %v3350_v4, %v3334_v37  ;;  %v3353_v34 = vmax.f32 %v3250_v49, 0.0  ;;  %v3253_v62 = vpop.f32.mrb[228].mxu1  ;;  %v3142_v51 = vpop.f32.mrb[229].mxu0 }
 0x2f3   : > { %v3811_v13 = vrot.slane %v3810_v61, 1  ;;  %v3790_v48 = vrot.slane %v3789_v11, 1  ;;  %v3876_v27 = vadd.f32 %v3352_v35, %v3336_v6  ;;  %v3855_v16 = vadd.f32 %v3351_v26, %v3335_v21  ;;  %v3255_v23 = vpop.f32.mrb[229].mxu1  ;;  %v3144_v0 = vpop.f32.mrb[230].mxu0 }
 0x2f4   : > { %v3770_v32 = vadd.f32 %v3769_v17, %v3768_v3  ;;  %v3832_v14 = vrot.slane %v3831_v9, 1  ;;  %v3897_v46 = vadd.f32 %v3353_v34, %v3337_v25  ;;  %v3141_v31 = vadd.f32 %v3140_v24, %v8146_v45  ;;  %v3257_v15 = vpop.f32.mrb[230].mxu1  ;;  %v3146_v10 = vpop.f32.mrb[231].mxu0 }
 0x2f5   : > { %v3812_v54 = vadd.f32 %v3811_v13, %v3810_v61  ;;  %v3791_v47 = vadd.f32 %v3790_v48, %v3789_v11  ;;  %v3254_v39 = vadd.f32 %v3253_v62, %v8151_v43  ;;  %v3143_v30 = vadd.f32 %v3142_v51, %v8158_v22  ;;  %v3259_v44 = vpop.f32.mrb[231].mxu1 }
 0x2f6   : > { %v3833_v58 = vadd.f32 %v3832_v14, %v3831_v9  ;;  %v3366_v8 = vmax.f32 %v3141_v31, 0.0  ;;  %v3256_v20 = vadd.f32 %v3255_v23, %v8163_v42  ;;  %v3145_v57 = vadd.f32 %v3144_v0, %v8146_v45 }
 0x2f7   : > { %v3983_v40 = vcombine.low %v3770_v32, %v3791_v47  ;;  %v3368_v29 = vmax.f32 %v3254_v39, 0.0  ;;  %v3367_v55 = vmax.f32 %v3143_v30, 0.0  ;;  %v3258_v37 = vadd.f32 %v3257_v15, %v8151_v43 }
 0x2f8   : > { %v3984_v56 = vcombine.low %v3812_v54, %v3833_v58  ;;  %v3835_v7 = vadd.f32 %v3834_v12, %v3366_v8  ;;  %v3369_v28 = vmax.f32 %v3256_v20, 0.0  ;;  %v3382_v5 = vmax.f32 %v3145_v57, 0.0 }
 0x2f9   : > { %v8576_v41 = vrot.slane %v3983_v40, %v7859_v18  ;;  %v3877_v6 = vadd.f32 %v3876_v27, %v3368_v29  ;;  %v3856_v21 = vadd.f32 %v3855_v16, %v3367_v55  ;;  %v3384_v1 = vmax.f32 %v3258_v37, 0.0  ;;  %v3150_v53 = vpop.f32.mrb[232].mxu0 }
 0x2fa   : > { %v8579_v2 = vrot.slane %v3984_v56, %v7859_v18  ;;  %v3898_v25 = vadd.f32 %v3897_v46, %v3369_v28  ;;  %v3836_v52 = vadd.f32 %v3835_v7, %v3382_v5  ;;  %v3147_v19 = vadd.f32 %v3146_v10, %v8158_v22  ;;  %v3263_v50 = vpop.f32.mrb[232].mxu1  ;;  %v3152_v36 = vpop.f32.mrb[233].mxu0 }
 0x2fb   : > { %v3878_v33 = vadd.f32 %v3877_v6, %v3384_v1  ;;  %v3260_v3 = vadd.f32 %v3259_v44, %v8163_v42  ;;  %v3151_v38 = vadd.f32 %v3150_v53, %v8146_v45  ;;  %v3264_v4 = vadd.f32 %v3263_v50, %v8151_v43  ;;  %v3265_v49 = vpop.f32.mrb[233].mxu1  ;;  %v3154_v61 = vpop.f32.mrb[234].mxu0 }
 0x2fc   : > { %v4015_v11 = vcombine.low %v8576_v41, %v8579_v2  ;;  %v3383_v35 = vmax.f32 %v3147_v19, 0.0  ;;  %v3153_v26 = vadd.f32 %v3152_v36, %v8158_v22  ;;  %v3266_v24 = vadd.f32 %v3265_v49, %v8163_v42  ;;  %v3267_v17 = vpop.f32.mrb[234].mxu1  ;;  %v3156_v9 = vpop.f32.mrb[235].mxu0  ;;  %v6768_v41 = vld [vmem:[#allocation4 + $0x414] ss:$8 sps:$4 sm:$0xff] (!%p6381_p10)  }
 0x2fd   : > { %v3385_v12 = vmax.f32 %v3260_v3, 0.0  ;;  %v3398_v34 = vmax.f32 %v3151_v38, 0.0  ;;  %v3400_v62 = vmax.f32 %v3264_v4, 0.0  ;;  %v3155_v51 = vadd.f32 %v3154_v61, %v8146_v45  ;;  %v3269_v13 = vpop.f32.mrb[235].mxu1  ;;  %v6770_v2 = vld [vmem:[#allocation4 + $0x10] ss:$8 sps:$4 sm:$0xff] (!%p6381_p10)  }
 0x2fe   : > { %v3857_v48 = vadd.f32 %v3856_v21, %v3383_v35  ;;  %v3399_v27 = vmax.f32 %v3153_v26, 0.0  ;;  %v3401_v16 = vmax.f32 %v3266_v24, 0.0  ;;  %v3268_v31 = vadd.f32 %v3267_v17, %v8151_v43 }
 0x2ff   : > { %v3899_v23 = vadd.f32 %v3898_v25, %v3385_v12  ;;  %v3837_v0 = vadd.f32 %v3836_v52, %v3398_v34  ;;  %v3879_v32 = vadd.f32 %v3878_v33, %v3400_v62  ;;  %v3414_v14 = vmax.f32 %v3155_v51, 0.0 }
 0x300   : > { %v3858_v46 = vadd.f32 %v3857_v48, %v3399_v27  ;;  %v3157_v15 = vadd.f32 %v3156_v9, %v8158_v22  ;;  %v3270_v10 = vadd.f32 %v3269_v13, %v8163_v42  ;;  %v3416_v30 = vmax.f32 %v3268_v31, 0.0 }
 0x301   : > { %v3900_v54 = vadd.f32 %v3899_v23, %v3401_v16  ;;  %v3838_v47 = vadd.f32 %v3837_v0, %v3414_v14  ;;  %v3160_v39 = vpop.f32.mrb[236].mxu0 }
 0x302   : > { %v3415_v44 = vmax.f32 %v3157_v15, 0.0  ;;  %v3417_v58 = vmax.f32 %v3270_v10, 0.0  ;;  %v3161_v8 = vadd.f32 %v3160_v39, %v8146_v45  ;;  %v3273_v20 = vpop.f32.mrb[236].mxu1  ;;  %v3162_v57 = vpop.f32.mrb[237].mxu0  ;;  %v3880_v56 = vadd.f32 %v3879_v32, %v3416_v30 }
 0x303   : > { %v3274_v40 = vadd.f32 %v3273_v20, %v8151_v43  ;;  %v3163_v29 = vadd.f32 %v3162_v57, %v8158_v22  ;;  %v3275_v55 = vpop.f32.mrb[237].mxu1  ;;  %v3164_v37 = vpop.f32.mrb[238].mxu0 }
 0x304   : > { %v3859_v7 = vadd.f32 %v3858_v46, %v3415_v44  ;;  %v3901_v28 = vadd.f32 %v3900_v54, %v3417_v58  ;;  %v3430_v5 = vmax.f32 %v3161_v8, 0.0  ;;  %v3277_v6 = vpop.f32.mrb[238].mxu1  ;;  %v3166_v21 = vpop.f32.mrb[239].mxu0  ;;  %v3276_v25 = vadd.f32 %v3275_v55, %v8163_v42 }
 0x305   : > { %v3432_v1 = vmax.f32 %v3274_v40, 0.0  ;;  %v3431_v53 = vmax.f32 %v3163_v29, 0.0  ;;  %v3165_v52 = vadd.f32 %v3164_v37, %v8146_v45  ;;  %v3279_v19 = vpop.f32.mrb[239].mxu1  ;;  %v3278_v36 = vadd.f32 %v3277_v6, %v8151_v43 }
 0x306   : > { %v3839_v50 = vadd.f32 %v3838_v47, %v3430_v5  ;;  %v3167_v33 = vadd.f32 %v3166_v21, %v8158_v22  ;;  %v3280_v3 = vadd.f32 %v3279_v19, %v8163_v42  ;;  %v3433_v49 = vmax.f32 %v3276_v25, 0.0 }
 0x307   : > { %v3881_v38 = vadd.f32 %v3880_v56, %v3432_v1  ;;  %v3860_v4 = vadd.f32 %v3859_v7, %v3431_v53  ;;  %v3446_v61 = vmax.f32 %v3165_v52, 0.0  ;;  %v3448_v35 = vmax.f32 %v3278_v36, 0.0 }
 0x308   : > { %v3447_v26 = vmax.f32 %v3167_v33, 0.0  ;;  %v3449_v24 = vmax.f32 %v3280_v3, 0.0  ;;  %v3902_v17 = vadd.f32 %v3901_v28, %v3433_v49 }
 0x309   : > { %v3840_v9 = vadd.f32 %v3839_v50, %v3446_v61  ;;  %v3170_v12 = vpop.f32.mrb[240].mxu0  ;;  %v3882_v34 = vadd.f32 %v3881_v38, %v3448_v35 }
 0x30a   : > { %v3861_v62 = vadd.f32 %v3860_v4, %v3447_v26  ;;  %v3171_v51 = vadd.f32 %v3170_v12, %v8146_v45  ;;  %v3283_v13 = vpop.f32.mrb[240].mxu1  ;;  %v3172_v48 = vpop.f32.mrb[241].mxu0  ;;  %v3903_v27 = vadd.f32 %v3902_v17, %v3449_v24 }
 0x30b   : > { %v3284_v16 = vadd.f32 %v3283_v13, %v8151_v43  ;;  %v3173_v23 = vadd.f32 %v3172_v48, %v8158_v22  ;;  %v3285_v0 = vpop.f32.mrb[241].mxu1  ;;  %v3174_v32 = vpop.f32.mrb[242].mxu0 }
 0x30c   : > { %v3462_v14 = vmax.f32 %v3171_v51, 0.0  ;;  %v3286_v46 = vadd.f32 %v3285_v0, %v8163_v42  ;;  %v3175_v31 = vadd.f32 %v3174_v32, %v8146_v45  ;;  %v3287_v15 = vpop.f32.mrb[242].mxu1  ;;  %v3176_v10 = vpop.f32.mrb[243].mxu0 }
 0x30d   : > { %v3464_v54 = vmax.f32 %v3284_v16, 0.0  ;;  %v3463_v47 = vmax.f32 %v3173_v23, 0.0  ;;  %v3288_v39 = vadd.f32 %v3287_v15, %v8151_v43  ;;  %v3177_v30 = vadd.f32 %v3176_v10, %v8158_v22  ;;  %v3289_v44 = vpop.f32.mrb[243].mxu1 }
 0x30e   : > { %v3841_v58 = vadd.f32 %v3840_v9, %v3462_v14  ;;  %v3465_v8 = vmax.f32 %v3286_v46, 0.0  ;;  %v3478_v20 = vmax.f32 %v3175_v31, 0.0  ;;  %v3290_v57 = vadd.f32 %v3289_v44, %v8163_v42 }
 0x30f   : > { %v3883_v40 = vadd.f32 %v3882_v34, %v3464_v54  ;;  %v3862_v29 = vadd.f32 %v3861_v62, %v3463_v47  ;;  %v3480_v55 = vmax.f32 %v3288_v39, 0.0  ;;  %v3479_v37 = vmax.f32 %v3177_v30, 0.0 }
 0x310   : > { %v3904_v56 = vadd.f32 %v3903_v27, %v3465_v8  ;;  %v3842_v7 = vadd.f32 %v3841_v58, %v3478_v20  ;;  %v3481_v28 = vmax.f32 %v3290_v57, 0.0 }
 0x311   : > { %v3884_v5 = vadd.f32 %v3883_v40, %v3480_v55  ;;  %v3863_v6 = vadd.f32 %v3862_v29, %v3479_v37  ;;  %v3180_v21 = vpop.f32.mrb[244].mxu0 }
 0x312   : > { %v3905_v1 = vadd.f32 %v3904_v56, %v3481_v28  ;;  %v3181_v53 = vadd.f32 %v3180_v21, %v8146_v45  ;;  %v3293_v25 = vpop.f32.mrb[244].mxu1  ;;  %v3182_v52 = vpop.f32.mrb[245].mxu0 }
 0x313   : > { %v3294_v19 = vadd.f32 %v3293_v25, %v8151_v43  ;;  %v3183_v50 = vadd.f32 %v3182_v52, %v8158_v22  ;;  %v3295_v36 = vpop.f32.mrb[245].mxu1  ;;  %v3184_v33 = vpop.f32.mrb[246].mxu0 }
 0x314   : > { %v3494_v3 = vmax.f32 %v3181_v53, 0.0  ;;  %v3296_v38 = vadd.f32 %v3295_v36, %v8163_v42  ;;  %v3185_v4 = vadd.f32 %v3184_v33, %v8146_v45  ;;  %v3297_v49 = vpop.f32.mrb[246].mxu1  ;;  %v3186_v61 = vpop.f32.mrb[247].mxu0 }
 0x315   : > { %v3496_v35 = vmax.f32 %v3294_v19, 0.0  ;;  %v3495_v26 = vmax.f32 %v3183_v50, 0.0  ;;  %v3298_v24 = vadd.f32 %v3297_v49, %v8151_v43  ;;  %v3187_v17 = vadd.f32 %v3186_v61, %v8158_v22  ;;  %v3299_v9 = vpop.f32.mrb[247].mxu1 }
 0x316   : > { %v3843_v12 = vadd.f32 %v3842_v7, %v3494_v3  ;;  %v3497_v34 = vmax.f32 %v3296_v38, 0.0  ;;  %v3510_v62 = vmax.f32 %v3185_v4, 0.0  ;;  %v3300_v51 = vadd.f32 %v3299_v9, %v8163_v42 }
 0x317   : > { %v3885_v13 = vadd.f32 %v3884_v5, %v3496_v35  ;;  %v3864_v48 = vadd.f32 %v3863_v6, %v3495_v26  ;;  %v3512_v27 = vmax.f32 %v3298_v24, 0.0  ;;  %v3511_v16 = vmax.f32 %v3187_v17, 0.0 }
 0x318   : > { %v3906_v23 = vadd.f32 %v3905_v1, %v3497_v34  ;;  %v3844_v0 = vadd.f32 %v3843_v12, %v3510_v62  ;;  %v3513_v32 = vmax.f32 %v3300_v51, 0.0 }
 0x319   : > { %v3886_v14 = vadd.f32 %v3885_v13, %v3512_v27  ;;  %v3865_v46 = vadd.f32 %v3864_v48, %v3511_v16  ;;  %v3190_v31 = vpop.f32.mrb[248].mxu0 }
 0x31a   : > { %v3907_v15 = vadd.f32 %v3906_v23, %v3513_v32  ;;  %v3191_v10 = vadd.f32 %v3190_v31, %v8146_v45  ;;  %v3303_v54 = vpop.f32.mrb[248].mxu1  ;;  %v3192_v47 = vpop.f32.mrb[249].mxu0 }
 0x31b   : > { %v3304_v39 = vadd.f32 %v3303_v54, %v8151_v43  ;;  %v3193_v30 = vadd.f32 %v3192_v47, %v8158_v22  ;;  %v3305_v44 = vpop.f32.mrb[249].mxu1  ;;  %v3194_v58 = vpop.f32.mrb[250].mxu0 }
 0x31c   : > { %v3526_v8 = vmax.f32 %v3191_v10, 0.0  ;;  %v3306_v20 = vadd.f32 %v3305_v44, %v8163_v42  ;;  %v3195_v57 = vadd.f32 %v3194_v58, %v8146_v45  ;;  %v3307_v40 = vpop.f32.mrb[250].mxu1  ;;  %v3196_v29 = vpop.f32.mrb[251].mxu0 }
 0x31d   : > { %v3528_v55 = vmax.f32 %v3304_v39, 0.0  ;;  %v3527_v37 = vmax.f32 %v3193_v30, 0.0  ;;  %v3308_v56 = vadd.f32 %v3307_v40, %v8151_v43  ;;  %v3197_v7 = vadd.f32 %v3196_v29, %v8158_v22  ;;  %v3309_v28 = vpop.f32.mrb[251].mxu1 }
 0x31e   : > { %v3845_v5 = vadd.f32 %v3844_v0, %v3526_v8  ;;  %v3529_v6 = vmax.f32 %v3306_v20, 0.0  ;;  %v3542_v21 = vmax.f32 %v3195_v57, 0.0  ;;  %v3310_v1 = vadd.f32 %v3309_v28, %v8163_v42 }
 0x31f   : > { %v3887_v53 = vadd.f32 %v3886_v14, %v3528_v55  ;;  %v3866_v25 = vadd.f32 %v3865_v46, %v3527_v37  ;;  %v3544_v52 = vmax.f32 %v3308_v56, 0.0  ;;  %v3543_v19 = vmax.f32 %v3197_v7, 0.0 }
 0x320   : > { %v3908_v50 = vadd.f32 %v3907_v15, %v3529_v6  ;;  %v3846_v36 = vadd.f32 %v3845_v5, %v3542_v21  ;;  %v3545_v33 = vmax.f32 %v3310_v1, 0.0 }
 0x321   : > { %v3888_v3 = vadd.f32 %v3887_v53, %v3544_v52  ;;  %v3867_v38 = vadd.f32 %v3866_v25, %v3543_v19  ;;  %v3200_v4 = vpop.f32.mrb[252].mxu0 }
 0x322   : > { %v3909_v49 = vadd.f32 %v3908_v50, %v3545_v33  ;;  %v3201_v61 = vadd.f32 %v3200_v4, %v8146_v45  ;;  %v3313_v35 = vpop.f32.mrb[252].mxu1  ;;  %v3202_v26 = vpop.f32.mrb[253].mxu0 }
 0x323   : > { %v3314_v24 = vadd.f32 %v3313_v35, %v8151_v43  ;;  %v3203_v17 = vadd.f32 %v3202_v26, %v8158_v22  ;;  %v3315_v9 = vpop.f32.mrb[253].mxu1  ;;  %v3204_v12 = vpop.f32.mrb[254].mxu0 }
 0x324   : > { %v3558_v34 = vmax.f32 %v3201_v61, 0.0  ;;  %v3316_v62 = vadd.f32 %v3315_v9, %v8163_v42  ;;  %v3205_v51 = vadd.f32 %v3204_v12, %v8146_v45  ;;  %v3317_v13 = vpop.f32.mrb[254].mxu1  ;;  %v3206_v48 = vpop.f32.mrb[255].mxu0  ;;  %v3581_v9 = vld [vmem:[#allocation2 + $0x11] ss:$2 sm:$0xff] }
 0x325   : > { %v3560_v27 = vmax.f32 %v3314_v24, 0.0  ;;  %v3559_v16 = vmax.f32 %v3203_v17, 0.0  ;;  %v3318_v23 = vadd.f32 %v3317_v13, %v8151_v43  ;;  %v3207_v0 = vadd.f32 %v3206_v48, %v8158_v22  ;;  %v3319_v32 = vpop.f32.mrb[255].mxu1  ;;  %v6764_v13 = vld [vmem:[#allocation4] ss:$8 sps:$4 sm:$0xff] (!%p6381_p10)  }
 0x326   : > { %v3847_v14 = vadd.f32 %v3846_v36, %v3558_v34  ;;  %v3561_v46 = vmax.f32 %v3316_v62, 0.0  ;;  %v3574_v31 = vmax.f32 %v3205_v51, 0.0  ;;  %v3320_v15 = vadd.f32 %v3319_v32, %v8163_v42  ;;  %v6760_v62 = vld [vmem:[#allocation4 + $0x4] ss:$8 sps:$4 sm:$0xff] (!%p6381_p10)   ;;  %v6765_v48 = vld [vmem:[#allocation4 + $0x400] ss:$8 sps:$4 sm:$0xff] (!%p6381_p10)  }
 0x327   : > { %v3889_v10 = vadd.f32 %v3888_v3, %v3560_v27  ;;  %v3868_v54 = vadd.f32 %v3867_v38, %v3559_v16  ;;  %v3576_v47 = vmax.f32 %v3318_v23, 0.0  ;;  %v3575_v39 = vmax.f32 %v3207_v0, 0.0  ;;  %v6762_v51 = vld [vmem:[#allocation4 + $0x404] ss:$8 sps:$4 sm:$0xff] (!%p6381_p10)   ;;  %5702 = vmatprep.subr.bf16.mxu1 (!%p6381_p10), %v6760_v62  ;;  %v6766_v27 = vld [vmem:[#allocation4 + $0x14] ss:$8 sps:$4 sm:$0xff] (!%p6381_p10)  }
 0x328   : > { %v3910_v30 = vadd.f32 %v3909_v49, %v3561_v46  ;;  %v3848_v45 = vadd.f32 %v3847_v14, %v3574_v31  ;;  %v3577_v44 = vmax.f32 %v3320_v15, 0.0  ;;  %v4023_v24 = vrot.slane %v4015_v11, %v7859_v18  ;;  %5866 = vmatprep.subr.bf16.mxu0 (!%p6381_p10), %v6762_v51  ;;  %5703 = vmatpush1.bf16.msra.mxu1 (!%p6381_p10), %v6764_v13  ;;  %v6772_v11 = vld [vmem:[#allocation4 + $0x24] ss:$8 sps:$4 sm:$0xff] (!%p6381_p10)   ;;  %v6776_v23 = vld [vmem:[#allocation4 + $0x20] ss:$8 sps:$4 sm:$0xff] (!%p6381_p10)  }
 0x329   : > { %v3890_v58 = vadd.f32 %v3889_v10, %v3576_v47  ;;  %v3869_v8 = vadd.f32 %v3868_v54, %v3575_v39  ;;  %5867 = vmatpush1.bf16.msra.mxu0 (!%p6381_p10), %v6765_v48  ;;  %5704 = vmatprep.subr.bf16.mxu1 (!%p6381_p10), %v6766_v27  ;;  %v6774_v16 = vld [vmem:[#allocation4 + $0x424] ss:$8 sps:$4 sm:$0xff] (!%p6381_p10)   ;;  %v6777_v0 = vld [vmem:[#allocation4 + $0x420] ss:$8 sps:$4 sm:$0xff] (!%p6381_p10)   ;;  %v6778_v32 = vld [vmem:[#allocation4 + $0x34] ss:$8 sps:$4 sm:$0xff] (!%p6381_p10)  }
 0x32a   : > { %v3849_v20 = vrot.slane %v3848_v45, 4  ;;  %v3911_v57 = vadd.f32 %v3910_v30, %v3577_v44  ;;  %5868 = vmatprep.subr.bf16.mxu0 (!%p6381_p10), %v6768_v41  ;;  %v6780_v14 = vld [vmem:[#allocation4 + $0x434] ss:$8 sps:$4 sm:$0xff] (!%p6381_p10)   ;;  %v6782_v46 = vld [vmem:[#allocation4 + $0x30] ss:$8 sps:$4 sm:$0xff] (!%p6381_p10)  }
 0x32b   : > { %v3891_v43 = vrot.slane %v3890_v58, 4  ;;  %v3870_v40 = vrot.slane %v3869_v8, 4  ;;  %v6783_v31 = vld [vmem:[#allocation4 + $0x430] ss:$8 sps:$4 sm:$0xff] (!%p6381_p10)   ;;  %v6784_v15 = vld [vmem:[#allocation4 + $0x44] ss:$8 sps:$4 sm:$0xff] (!%p6381_p10)  }
 0x32c   : > { %v3850_v22 = vadd.f32 %v3849_v20, %v3848_v45  ;;  %v3912_v29 = vrot.slane %v3911_v57, 4  ;;  %5705 = vmatpush1.bf16.msra.mxu1 (!%p6381_p10), %v6770_v2  ;;  %v6786_v10 = vld [vmem:[#allocation4 + $0x444] ss:$8 sps:$4 sm:$0xff] (!%p6381_p10)   ;;  %v6788_v54 = vld [vmem:[#allocation4 + $0x40] ss:$8 sps:$4 sm:$0xff] (!%p6381_p10)  }
 0x32d   : > { %v3892_v55 = vadd.f32 %v3891_v43, %v3890_v58  ;;  %v3871_v37 = vadd.f32 %v3870_v40, %v3869_v8  ;;  %5706 = vmatprep.subr.bf16.mxu1 (!%p6381_p10), %v6772_v11  ;;  %v6789_v47 = vld [vmem:[#allocation4 + $0x440] ss:$8 sps:$4 sm:$0xff] (!%p6381_p10)   ;;  %v6790_v39 = vld [vmem:[#allocation4 + $0x54] ss:$8 sps:$4 sm:$0xff] (!%p6381_p10)   ;;  %v6794_v45 = vld [vmem:[#allocation4 + $0x50] ss:$8 sps:$4 sm:$0xff] (!%p6381_p10)  }
 0x32e   : > { %v3851_v56 = vrot.slane %v3850_v22, 2  ;;  %v3913_v7 = vadd.f32 %v3912_v29, %v3911_v57  ;;  %v6792_v30 = vld [vmem:[#allocation4 + $0x454] ss:$8 sps:$4 sm:$0xff] (!%p6381_p10)   ;;  %v6795_v44 = vld [vmem:[#allocation4 + $0x450] ss:$8 sps:$4 sm:$0xff] (!%p6381_p10)  }
 0x32f   : > { %v3893_v42 = vrot.slane %v3892_v55, 2  ;;  %v3872_v28 = vrot.slane %v3871_v37, 2  ;;  %v6796_v58 = vld [vmem:[#allocation4 + $0x64] ss:$8 sps:$4 sm:$0xff] (!%p6381_p10)   ;;  %v6800_v20 = vld [vmem:[#allocation4 + $0x60] ss:$8 sps:$4 sm:$0xff] (!%p6381_p10)  }
 0x330   : > { %v3852_v5 = vadd.f32 %v3851_v56, %v3850_v22  ;;  %v3914_v6 = vrot.slane %v3913_v7, 2  ;;  %5707 = vmatpush1.bf16.msra.mxu1 (!%p6381_p10), %v6776_v23  ;;  %v6798_v8 = vld [vmem:[#allocation4 + $0x464] ss:$8 sps:$4 sm:$0xff] (!%p6381_p10)   ;;  %v6801_v57 = vld [vmem:[#allocation4 + $0x460] ss:$8 sps:$4 sm:$0xff] (!%p6381_p10)  }
 0x331   : > { %v3894_v21 = vadd.f32 %v3893_v42, %v3892_v55  ;;  %v3873_v1 = vadd.f32 %v3872_v28, %v3871_v37  ;;  %5708 = vmatprep.subr.bf16.mxu1 (!%p6381_p10), %v6778_v32  ;;  %v6802_v43 = vld [vmem:[#allocation4 + $0x74] ss:$8 sps:$4 sm:$0xff] (!%p6381_p10)   ;;  %v6806_v22 = vld [vmem:[#allocation4 + $0x70] ss:$8 sps:$4 sm:$0xff] (!%p6381_p10)   ;;  %v6808_v55 = vld [vmem:[#allocation4 + $0x84] ss:$8 sps:$4 sm:$0xff] (!%p6381_p10)  }
 0x332   : > { %v3853_v53 = vrot.slane %v3852_v5, 1  ;;  %v3915_v25 = vadd.f32 %v3914_v6, %v3913_v7  ;;  %v6804_v40 = vld [vmem:[#allocation4 + $0x474] ss:$8 sps:$4 sm:$0xff] (!%p6381_p10)   ;;  %v6807_v29 = vld [vmem:[#allocation4 + $0x470] ss:$8 sps:$4 sm:$0xff] (!%p6381_p10)  }
 0x333   : > { %v3895_v52 = vrot.slane %v3894_v21, 1  ;;  %v3874_v19 = vrot.slane %v3873_v1, 1  ;;  %v6810_v37 = vld [vmem:[#allocation4 + $0x484] ss:$8 sps:$4 sm:$0xff] (!%p6381_p10)   ;;  %v6812_v56 = vld [vmem:[#allocation4 + $0x80] ss:$8 sps:$4 sm:$0xff] (!%p6381_p10)  }
 0x334   : > { %v3854_v50 = vadd.f32 %v3853_v53, %v3852_v5  ;;  %v3916_v36 = vrot.slane %v3915_v25, 1  ;;  %5709 = vmatpush1.bf16.msra.mxu1 (!%p6381_p10), %v6782_v46  ;;  %v6813_v7 = vld [vmem:[#allocation4 + $0x480] ss:$8 sps:$4 sm:$0xff] (!%p6381_p10)   ;;  %v6814_v42 = vld [vmem:[#allocation4 + $0x94] ss:$8 sps:$4 sm:$0xff] (!%p6381_p10)  }
 0x335   : > { %v3896_v33 = vadd.f32 %v3895_v52, %v3894_v21  ;;  %v3875_v3 = vadd.f32 %v3874_v19, %v3873_v1  ;;  %5710 = vmatprep.subr.bf16.mxu1 (!%p6381_p10), %v6784_v15  ;;  %v6816_v28 = vld [vmem:[#allocation4 + $0x494] ss:$8 sps:$4 sm:$0xff] (!%p6381_p10)   ;;  %v7240_v5 = vmov (!%p6381_p10), 1983009808   ;;  %v6818_v21 = vld [vmem:[#allocation4 + $0x90] ss:$8 sps:$4 sm:$0xff] (!%p6381_p10)  }
 0x336   : > { %v3917_v38 = vadd.f32 %v3916_v36, %v3915_v25  ;;  %v4056_v6 = vunpack.c.l.s4 (!%p6381_p10), %v7240_v5  ;;  %v6819_v1 = vld [vmem:[#allocation4 + $0x490] ss:$8 sps:$4 sm:$0xff] (!%p6381_p10)   ;;  %v6820_v53 = vld [vmem:[#allocation4 + $0xa4] ss:$8 sps:$4 sm:$0xff] (!%p6381_p10)   ;;  %v6824_v19 = vld [vmem:[#allocation4 + $0xa0] ss:$8 sps:$4 sm:$0xff] (!%p6381_p10)  }
 0x337   : > { %v3985_v4 = vcombine.low %v3854_v50, %v3875_v3  ;;  %v6822_v25 = vld [vmem:[#allocation4 + $0x4a4] ss:$8 sps:$4 sm:$0xff] (!%p6381_p10)   ;;  %v6825_v50 = vld [vmem:[#allocation4 + $0x4a0] ss:$8 sps:$4 sm:$0xff] (!%p6381_p10)   ;;  %v6826_v36 = vld [vmem:[#allocation4 + $0xb4] ss:$8 sps:$4 sm:$0xff] (!%p6381_p10)  }
 0x338   : > { %v3986_v49 = vcombine.low %v3896_v33, %v3917_v38  ;;  %5711 = vmatpush1.bf16.msra.mxu1 (!%p6381_p10), %v6788_v54  ;;  %v4057_v52 = vunpack.c.0.s8 (!%p6381_p10), %v4056_v6  ;;  %v6828_v33 = vld [vmem:[#allocation4 + $0x4b4] ss:$8 sps:$4 sm:$0xff] (!%p6381_p10)   ;;  %v4042_v38 = vld [vmem:[#allocation2] sm:$0xff] (!%p6381_p10)  ;;  %v6842_v2 = vld [vmem:[#allocation4 + $0xd0] ss:$8 sps:$4 sm:$0xff] (!%p6381_p10)  }
 0x339   : > { %v4007_v61 = vrot.slane %v3985_v4, %v7859_v18  ;;  %5712 = vmatprep.subr.bf16.mxu1 (!%p6381_p10), %v6790_v39  ;;  %v6830_v4 = vld [vmem:[#allocation4 + $0xb0] ss:$8 sps:$4 sm:$0xff] (!%p6381_p10)   ;;  %v6837_v62 = vld [vmem:[#allocation4 + $0x4c0] ss:$8 sps:$4 sm:$0xff] (!%p6381_p10)   ;;  %v6838_v51 = vld [vmem:[#allocation4 + $0xd4] ss:$8 sps:$4 sm:$0xff] (!%p6381_p10)  }
 0x33a   : > { %v4014_v35 = vrot.slane %v3986_v49, %v7859_v18  ;;  %v8642_v3 = vsub.s32 (!%p6381_p10), %v4057_v52, %v7663_v59  ;;  %v4046_v49 = vmul.f32 (!%p6381_p10), 0.00390625, %v4042_v38  ;;  %v6836_v59 = vld [vmem:[#allocation4 + $0xc0] ss:$8 sps:$4 sm:$0xff] (!%p6381_p10)   ;;  %v6840_v13 = vld [vmem:[#allocation4 + $0x4d4] ss:$8 sps:$4 sm:$0xff] (!%p6381_p10)  }
 0x33b   : > { %v6844_v11 = vld [vmem:[#allocation4 + $0xe4] ss:$8 sps:$4 sm:$0xff] (!%p6381_p10)   ;;  %v6848_v32 = vld [vmem:[#allocation4 + $0xe0] ss:$8 sps:$4 sm:$0xff] (!%p6381_p10)   ;;  %v6850_v46 = vld [vmem:[#allocation4 + $0xf4] ss:$8 sps:$4 sm:$0xff] (!%p6381_p10)  }
 0x33c   : > { %v4016_v26 = vcombine.low %v4007_v61, %v4014_v35  ;;  %5713 = vmatpush1.bf16.msra.mxu1 (!%p6381_p10), %v6794_v45  ;;  %v6831_v61 = vld [vmem:[#allocation4 + $0x4b0] ss:$8 sps:$4 sm:$0xff] (!%p6381_p10)   ;;  %v4054_v23 = vcombine.high (!%p6381_p10), %v4046_v49, %v4046_v49  ;;  %v6858_v39 = vld [vmem:[#allocation4 + $0x104] ss:$8 sps:$4 sm:$0xff] (!%p6381_p10)   ;;  %v6876_v5 = vld [vmem:[#allocation4 + $0x134] ss:$8 sps:$4 sm:$0xff] (!%p6381_p10)  }
 0x33d   : > { %5714 = vmatprep.subr.bf16.mxu1 (!%p6381_p10), %v6796_v58  ;;  %v6854_v54 = vld [vmem:[#allocation4 + $0xf0] ss:$8 sps:$4 sm:$0xff] (!%p6381_p10)   ;;  %v6879_v6 = vld [vmem:[#allocation4 + $0x534] ss:$8 sps:$4 sm:$0xff] (!%p6381_p10)   ;;  %v6880_v52 = vld [vmem:[#allocation4 + $0x140] ss:$8 sps:$4 sm:$0xff] (!%p6381_p10)  }
 0x33e   : > { %v4030_v17 = vrot.slane %v4016_v26, %v7859_v18  ;;  %4041 = sbr.rel (%p6381_p10) target bundleno = 1353 (0x549), region = 101  ;;  %v6771_v18 = vld [vmem:[#allocation4 + $0x410] ss:$8 sps:$4 sm:$0xff] (!%p6381_p10)   ;;  %v6832_v26 = vld [vmem:[#allocation4 + $0xc4] ss:$8 sps:$4 sm:$0xff] (!%p6381_p10)   ;;  %v8647_v15 = vrot.slane (!%p6381_p10), %v4054_v23, %v8642_v3 }
 0x33f   : > { %5869 = vmatpush1.bf16.msra.mxu0 (!%p6381_p10), %v6771_v18  ;;  %v6843_v18 = vld [vmem:[#allocation4 + $0x4d0] ss:$8 sps:$4 sm:$0xff] (!%p6381_p10)   ;;  %v6927_v23 = vld [vmem:[#allocation4 + $0x5b4] ss:$8 sps:$4 sm:$0xff] (!%p6381_p10)  }
 0x340   : > { %v4031_v12 = vcombine.low %v4023_v24, %v4030_v17  ;;  %5870 = vmatprep.subr.bf16.mxu0 (!%p6381_p10), %v6774_v16  ;;  %5715 = vmatpush1.bf16.msra.mxu1 (!%p6381_p10), %v6800_v20  ;;  %v6834_v24 = vld [vmem:[#allocation4 + $0x4c4] ss:$8 sps:$4 sm:$0xff] (!%p6381_p10)   ;;  %v4061_v17 = vrot.slane (!%p6381_p10), %v4046_v49, %v8642_v3  ;;  %v4070_v45 = vcombine.high (!%p6381_p10), %v8647_v15, %v8647_v15  ;;  %v6856_v20 = vld [vmem:[#allocation4 + $0x100] ss:$8 sps:$4 sm:$0xff] (!%p6381_p10)   ;;  %v6889_v38 = vld [vmem:[#allocation4 + $0x550] ss:$8 sps:$4 sm:$0xff] (!%p6381_p10)  }
 0x341   : > { %5716 = vmatprep.subr.bf16.mxu1 (!%p6381_p10), %v6802_v43  ;;  %v6846_v16 = vld [vmem:[#allocation4 + $0x4e4] ss:$8 sps:$4 sm:$0xff] (!%p6381_p10)   ;;  %v6864_v43 = vld [vmem:[#allocation4 + $0x114] ss:$8 sps:$4 sm:$0xff] (!%p6381_p10)  }
 0x342   : > { %v4035_v34 = vadd.f32 %v4031_v12, %v3581_v9  ;;  %v4069_v12 = vcombine.high (!%p6381_p10), %v4061_v17, %v4061_v17  ;;  %v4138_v58 = vpack.c.bf16 (!%p6381_p10), %v4061_v17, %v4061_v17  ;;  %v6897_v49 = vld [vmem:[#allocation4 + $0x564] ss:$8 sps:$4 sm:$0xff] (!%p6381_p10)   ;;  %v6898_v17 = vld [vmem:[#allocation4 + $0x170] ss:$8 sps:$4 sm:$0xff] (!%p6381_p10)  }
 0x343   : > { %5871 = vmatpush1.bf16.msra.mxu0 (!%p6381_p10), %v6777_v0 }
 0x344   : > { %4037 = vst [vmem:[#allocation2 + $0x11] ss:$2 sm:$0xff] %v4035_v34  ;;  %5872 = vmatprep.subr.bf16.mxu0 (!%p6381_p10), %v6780_v14  ;;  %5717 = vmatpush1.bf16.msra.mxu1 (!%p6381_p10), %v6806_v22  ;;  %v4139_v48 = vpack.c.bf16 (!%p6381_p10), %v4069_v12, %v4069_v12  ;;  %v6849_v14 = vld [vmem:[#allocation4 + $0x4e0] ss:$8 sps:$4 sm:$0xff] (!%p6381_p10)   ;;  %v4141_v22 = vpack.c.bf16 (!%p6381_p10), %v4070_v45, %v4070_v45  ;;  %v6906_v12 = vld [vmem:[#allocation4 + $0x184] ss:$8 sps:$4 sm:$0xff] (!%p6381_p10)  }
 0x345   : > { %5718 = vmatprep.subr.bf16.mxu1 %v6808_v55  ;;  %v6862_v55 = vld [vmem:[#allocation4 + $0x110] ss:$8 sps:$4 sm:$0xff]  }
 0x346   : > { %5734 = vmatprep.mubr.bf16.mxu1 %v4139_v48  ;;  %v6910_v48 = vld [vmem:[#allocation4 + $0x190] ss:$8 sps:$4 sm:$0xff]  }
 0x347   : > { %5873 = vmatpush1.bf16.msra.mxu0 %v6783_v31  ;;  %v6852_v31 = vld [vmem:[#allocation4 + $0x4f4] ss:$8 sps:$4 sm:$0xff]   ;;  %v6937_v45 = vld [vmem:[#allocation4 + $0x5d0] ss:$8 sps:$4 sm:$0xff]  }
 0x348   : > { %5874 = vmatprep.subr.bf16.mxu0 %v6786_v10  ;;  %5719 = vmatpush1.bf16.msra.mxu1 %v6812_v56  ;;  %v6870_v56 = vld [vmem:[#allocation4 + $0x124] ss:$8 sps:$4 sm:$0xff]  }
 0x349   : > { %5720 = vmatprep.subr.bf16.mxu1 %v6814_v42  ;;  %v6868_v42 = vld [vmem:[#allocation4 + $0x120] ss:$8 sps:$4 sm:$0xff]  }
 0x34b   : > { %5875 = vmatpush1.bf16.msra.mxu0 %v6789_v47  ;;  %v4044_v35 = vld [vmem:[#allocation2 + $0x10] sm:$0xff] }
 0x34c   : > { %5876 = vmatprep.subr.bf16.mxu0 %v6792_v30  ;;  %5721 = vmatpush1.bf16.msra.mxu1 %v6818_v21  ;;  %v4048_v9 = vmul.f32 0.00390625, %v4044_v35  ;;  %v6855_v47 = vld [vmem:[#allocation4 + $0x4f0] ss:$8 sps:$4 sm:$0xff]   ;;  %v6861_v30 = vld [vmem:[#allocation4 + $0x504] ss:$8 sps:$4 sm:$0xff]  }
 0x34d   : > { %5722 = vmatprep.subr.bf16.mxu1 %v6820_v53  ;;  %v6874_v21 = vld [vmem:[#allocation4 + $0x130] ss:$8 sps:$4 sm:$0xff]   ;;  %v6882_v53 = vld [vmem:[#allocation4 + $0x144] ss:$8 sps:$4 sm:$0xff]   ;;  %v6895_v35 = vld [vmem:[#allocation4 + $0x560] ss:$8 sps:$4 sm:$0xff]  }
 0x34e   : > { %v4095_v34 = vrot.slane %v4048_v9, %v8642_v3  ;;  %v4088_v0 = vcombine.high %v4048_v9, %v4048_v9  ;;  %v6901_v9 = vld [vmem:[#allocation4 + $0x570] ss:$8 sps:$4 sm:$0xff]  }
 0x34f   : > { %5877 = vmatpush1.bf16.msra.mxu0 %v6795_v44 }
 0x350   : > { %5878 = vmatprep.subr.bf16.mxu0 %v6798_v8  ;;  %5723 = vmatpush1.bf16.msra.mxu1 %v6824_v19  ;;  %v4103_v27 = vcombine.high %v4095_v34, %v4095_v34  ;;  %v8650_v10 = vrot.slane %v4088_v0, %v8642_v3  ;;  %v4146_v8 = vpack.c.bf16 %v4095_v34, %v4095_v34  ;;  %v6883_v19 = vld [vmem:[#allocation4 + $0x540] ss:$8 sps:$4 sm:$0xff]   ;;  %v6909_v34 = vld [vmem:[#allocation4 + $0x584] ss:$8 sps:$4 sm:$0xff]   ;;  %v6922_v0 = vld [vmem:[#allocation4 + $0x1b0] ss:$8 sps:$4 sm:$0xff]  }
 0x351   : > { %5724 = vmatprep.subr.bf16.mxu1 %v6826_v36  ;;  %v6891_v36 = vld [vmem:[#allocation4 + $0x554] ss:$8 sps:$4 sm:$0xff]  }
 0x352   : > { %v4147_v41 = vpack.c.bf16 %v4103_v27, %v4103_v27  ;;  %v4104_v44 = vcombine.high %v8650_v10, %v8650_v10  ;;  %v6913_v27 = vld [vmem:[#allocation4 + $0x590] ss:$8 sps:$4 sm:$0xff]  }
 0x353   : > { %5879 = vmatpush1.bf16.msra.mxu0 %v6801_v57  ;;  %v6859_v57 = vld [vmem:[#allocation4 + $0x500] ss:$8 sps:$4 sm:$0xff]  }
 0x354   : > { %5880 = vmatprep.subr.bf16.mxu0 %v6804_v40  ;;  %5725 = vmatpush1.bf16.msra.mxu1 %v6830_v4  ;;  %v6867_v40 = vld [vmem:[#allocation4 + $0x514] ss:$8 sps:$4 sm:$0xff]   ;;  %v6894_v4 = vld [vmem:[#allocation4 + $0x164] ss:$8 sps:$4 sm:$0xff]  }
 0x355   : > { %5726 = vmatprep.subr.bf16.mxu1 %v6832_v26  ;;  %5898 = vmatprep.mubr.bf16.mxu0 %v4147_v41  ;;  %v6900_v26 = vld [vmem:[#allocation4 + $0x174] ss:$8 sps:$4 sm:$0xff]   ;;  %v6918_v41 = vld [vmem:[#allocation4 + $0x1a4] ss:$8 sps:$4 sm:$0xff]  }
 0x357   : > { %5881 = vmatpush1.bf16.msra.mxu0 %v6807_v29  ;;  %v4149_v29 = vpack.c.bf16 %v4104_v44, %v4104_v44  ;;  %v6942_v44 = vld [vmem:[#allocation4 + $0x1e4] ss:$8 sps:$4 sm:$0xff]  }
 0x358   : > { %5882 = vmatprep.subr.bf16.mxu0 %v6810_v37  ;;  %5727 = vmatpush1.bf16.msra.mxu1 %v6836_v59  ;;  %v6865_v37 = vld [vmem:[#allocation4 + $0x510] ss:$8 sps:$4 sm:$0xff]   ;;  %v6904_v59 = vld [vmem:[#allocation4 + $0x180] ss:$8 sps:$4 sm:$0xff]  }
 0x359   : > { %5728 = vmatprep.subr.bf16.mxu1 %v6838_v51  ;;  %v6912_v51 = vld [vmem:[#allocation4 + $0x194] ss:$8 sps:$4 sm:$0xff]  }
 0x35b   : > { %5883 = vmatpush1.bf16.msra.mxu0 %v6813_v7  ;;  %v6873_v7 = vld [vmem:[#allocation4 + $0x524] ss:$8 sps:$4 sm:$0xff]  }
 0x35c   : > { %5884 = vmatprep.subr.bf16.mxu0 %v6816_v28  ;;  %5729 = vmatpush1.bf16.msra.mxu1 %v6842_v2  ;;  %v6871_v28 = vld [vmem:[#allocation4 + $0x520] ss:$8 sps:$4 sm:$0xff]   ;;  %v6921_v2 = vld [vmem:[#allocation4 + $0x5a4] ss:$8 sps:$4 sm:$0xff]  }
 0x35d   : > { %5730 = vmatprep.subr.bf16.mxu1 %v6844_v11  ;;  %v6919_v11 = vld [vmem:[#allocation4 + $0x5a0] ss:$8 sps:$4 sm:$0xff]  }
 0x35f   : > { %5885 = vmatpush1.bf16.msra.mxu0 %v6819_v1  ;;  %v6877_v1 = vld [vmem:[#allocation4 + $0x530] ss:$8 sps:$4 sm:$0xff]  }
 0x360   : > { %5886 = vmatprep.subr.bf16.mxu0 %v6822_v25  ;;  %5731 = vmatpush1.bf16.msra.mxu1 %v6848_v32  ;;  %v6885_v25 = vld [vmem:[#allocation4 + $0x544] ss:$8 sps:$4 sm:$0xff]   ;;  %v6925_v32 = vld [vmem:[#allocation4 + $0x5b0] ss:$8 sps:$4 sm:$0xff]  }
 0x361   : > { %5732 = vmatprep.subr.bf16.mxu1 %v6850_v46  ;;  %v6933_v46 = vld [vmem:[#allocation4 + $0x5c4] ss:$8 sps:$4 sm:$0xff]  }
 0x363   : > { %5887 = vmatpush1.bf16.msra.mxu0 %v6825_v50  ;;  %v6888_v50 = vld [vmem:[#allocation4 + $0x154] ss:$8 sps:$4 sm:$0xff]  }
 0x364   : > { %5888 = vmatprep.subr.bf16.mxu0 %v6828_v33  ;;  %5733 = vmatpush1.bf16.msra.mxu1 %v6854_v54  ;;  %v6886_v33 = vld [vmem:[#allocation4 + $0x150] ss:$8 sps:$4 sm:$0xff]   ;;  %v6931_v54 = vld [vmem:[#allocation4 + $0x5c0] ss:$8 sps:$4 sm:$0xff]  }
 0x365   : > { %5743 = vmatprep.subr.bf16.mxu1 %v6858_v39  ;;  %v6939_v39 = vld [vmem:[#allocation4 + $0x5d4] ss:$8 sps:$4 sm:$0xff]  }
 0x367   : > { %5889 = vmatpush1.bf16.msra.mxu0 %v6831_v61  ;;  %5735 = vmatmul.mubr.bf16.vlgmr.msra.gmra.mrb[0].mxu1 %v4138_v58  ;;  %v6892_v61 = vld [vmem:[#allocation4 + $0x160] ss:$8 sps:$4 sm:$0xff]   ;;  %v6945_v58 = vld [vmem:[#allocation4 + $0x5e4] ss:$8 sps:$4 sm:$0xff]  }
 0x368   : > { %5890 = vmatprep.subr.bf16.mxu0 %v6834_v24  ;;  %5744 = vmatpush1.bf16.msra.mxu1 %v6856_v20  ;;  %v6903_v24 = vld [vmem:[#allocation4 + $0x574] ss:$8 sps:$4 sm:$0xff]   ;;  %v6943_v20 = vld [vmem:[#allocation4 + $0x5e0] ss:$8 sps:$4 sm:$0xff]  }
 0x369   : > { %5745 = vmatprep.subr.bf16.mxu1 %v6864_v43  ;;  %5775 = vmatprep.mubr.bf16.mxu1 %v4141_v22  ;;  %v6951_v43 = vld [vmem:[#allocation4 + $0x5f4] ss:$8 sps:$4 sm:$0xff]   ;;  %v6949_v22 = vld [vmem:[#allocation4 + $0x5f0] ss:$8 sps:$4 sm:$0xff]  }
 0x36b   : > { %5891 = vmatpush1.bf16.msra.mxu0 %v6837_v62  ;;  %v6907_v62 = vld [vmem:[#allocation4 + $0x580] ss:$8 sps:$4 sm:$0xff]  }
 0x36c   : > { %5892 = vmatprep.subr.bf16.mxu0 %v6840_v13  ;;  %5746 = vmatpush1.bf16.msra.mxu1 %v6862_v55  ;;  %v6915_v13 = vld [vmem:[#allocation4 + $0x594] ss:$8 sps:$4 sm:$0xff]   ;;  %v6957_v55 = vld [vmem:[#allocation4 + $0x604] ss:$8 sps:$4 sm:$0xff]  }
 0x36d   : > { %5747 = vmatprep.subr.bf16.mxu1 %v6870_v56  ;;  %v4140_v56 = vpack.c.bf16 %v8647_v15, %v8647_v15 }
 0x36f   : > { %5893 = vmatpush1.bf16.msra.mxu0 %v6843_v18  ;;  %v6916_v18 = vld [vmem:[#allocation4 + $0x1a0] ss:$8 sps:$4 sm:$0xff]  }
 0x370   : > { %5894 = vmatprep.subr.bf16.mxu0 %v6846_v16  ;;  %5748 = vmatpush1.bf16.msra.mxu1 %v6868_v42  ;;  %v6924_v16 = vld [vmem:[#allocation4 + $0x1b4] ss:$8 sps:$4 sm:$0xff]   ;;  %v6955_v42 = vld [vmem:[#allocation4 + $0x600] ss:$8 sps:$4 sm:$0xff]  }
 0x371   : > { %5749 = vmatprep.subr.bf16.mxu1 %v6876_v5  ;;  %v4043_v5 = vld [vmem:[#allocation2 + $0x8] sm:$0xff] }
 0x373   : > { %5895 = vmatpush1.bf16.msra.mxu0 %v6849_v14  ;;  %v6930_v14 = vld [vmem:[#allocation4 + $0x1c4] ss:$8 sps:$4 sm:$0xff]  }
 0x374   : > { %5896 = vmatprep.subr.bf16.mxu0 %v6852_v31  ;;  %5750 = vmatpush1.bf16.msra.mxu1 %v6874_v21  ;;  %v6928_v31 = vld [vmem:[#allocation4 + $0x1c0] ss:$8 sps:$4 sm:$0xff]   ;;  %v8660_v21 = vmul.f32 0.00390625, %v4043_v5  ;;  %v7038_v5 = vld [vmem:[#allocation4 + $0x2e4] ss:$8 sps:$4 sm:$0xff]  }
 0x375   : > { %5751 = vmatprep.subr.bf16.mxu1 %v6882_v53  ;;  %v6958_v53 = vld [vmem:[#allocation4 + $0x210] ss:$8 sps:$4 sm:$0xff]  }
 0x376   : > { %v8664_v15 = vrot.slane %v8660_v21, %v8642_v3 }
 0x377   : > { %5897 = vmatpush1.bf16.msra.mxu0 %v6855_v47  ;;  %v6936_v47 = vld [vmem:[#allocation4 + $0x1d4] ss:$8 sps:$4 sm:$0xff]  }
 0x378   : > { %5907 = vmatprep.subr.bf16.mxu0 %v6861_v30  ;;  %5752 = vmatpush1.bf16.msra.mxu1 %v6880_v52  ;;  %v6934_v30 = vld [vmem:[#allocation4 + $0x1d0] ss:$8 sps:$4 sm:$0xff]   ;;  %v6966_v52 = vld [vmem:[#allocation4 + $0x224] ss:$8 sps:$4 sm:$0xff]  }
 0x379   : > { %5753 = vmatprep.subr.bf16.mxu1 %v6888_v50  ;;  %v4086_v50 = vcombine.high %v8664_v15, %v8664_v15 }
 0x37a   : > { %5899 = vmatmul.mubr.bf16.vlgmr.msra.gmra.mrb[0].mxu0 %v4146_v8  ;;  %v6940_v8 = vld [vmem:[#allocation4 + $0x1e0] ss:$8 sps:$4 sm:$0xff]  }
 0x37b   : > { %5908 = vmatpush1.bf16.msra.mxu0 %v6859_v57  ;;  %5939 = vmatprep.mubr.bf16.mxu0 %v4149_v29  ;;  %v6948_v57 = vld [vmem:[#allocation4 + $0x1f4] ss:$8 sps:$4 sm:$0xff]   ;;  %v6954_v29 = vld [vmem:[#allocation4 + $0x204] ss:$8 sps:$4 sm:$0xff]  }
 0x37c   : > { %5909 = vmatprep.subr.bf16.mxu0 %v6867_v40  ;;  %5754 = vmatpush1.bf16.msra.mxu1 %v6886_v33  ;;  %v6946_v40 = vld [vmem:[#allocation4 + $0x1f0] ss:$8 sps:$4 sm:$0xff]   ;;  %v6964_v33 = vld [vmem:[#allocation4 + $0x220] ss:$8 sps:$4 sm:$0xff]  }
 0x37d   : > { %5755 = vmatprep.subr.bf16.mxu1 %v6894_v4  ;;  %v4143_v4 = vpack.c.bf16 %v4086_v50, %v4086_v50  ;;  %v7047_v50 = vld [vmem:[#allocation4 + $0x6f4] ss:$8 sps:$4 sm:$0xff]  }
 0x37f   : > { %5910 = vmatpush1.bf16.msra.mxu0 %v6865_v37  ;;  %v6952_v37 = vld [vmem:[#allocation4 + $0x200] ss:$8 sps:$4 sm:$0xff]  }
 0x380   : > { %5911 = vmatprep.subr.bf16.mxu0 %v6873_v7  ;;  %5756 = vmatpush1.bf16.msra.mxu1 %v6892_v61  ;;  %v4148_v7 = vpack.c.bf16 %v8650_v10, %v8650_v10  ;;  %v6972_v61 = vld [vmem:[#allocation4 + $0x234] ss:$8 sps:$4 sm:$0xff]  }
 0x381   : > { %5757 = vmatprep.subr.bf16.mxu1 %v6900_v26 }
 0x383   : > { %5912 = vmatpush1.bf16.msra.mxu0 %v6871_v28  ;;  %v6960_v28 = vld [vmem:[#allocation4 + $0x214] ss:$8 sps:$4 sm:$0xff]  }
 0x384   : > { %5913 = vmatprep.subr.bf16.mxu0 %v6879_v6  ;;  %5758 = vmatpush1.bf16.msra.mxu1 %v6898_v17  ;;  %v6963_v6 = vld [vmem:[#allocation4 + $0x614] ss:$8 sps:$4 sm:$0xff]   ;;  %v6973_v17 = vld [vmem:[#allocation4 + $0x630] ss:$8 sps:$4 sm:$0xff]  }
 0x385   : > { %5759 = vmatprep.subr.bf16.mxu1 %v6906_v12  ;;  %v6981_v12 = vld [vmem:[#allocation4 + $0x644] ss:$8 sps:$4 sm:$0xff]  }
 0x387   : > { %5914 = vmatpush1.bf16.msra.mxu0 %v6877_v1  ;;  %v4045_v1 = vld [vmem:[#allocation2 + $0x18] sm:$0xff] }
 0x388   : > { %5915 = vmatprep.subr.bf16.mxu0 %v6885_v25  ;;  %5760 = vmatpush1.bf16.msra.mxu1 %v6904_v59  ;;  %v6961_v25 = vld [vmem:[#allocation4 + $0x610] ss:$8 sps:$4 sm:$0xff]   ;;  %v8666_v10 = vmul.f32 0.00390625, %v4045_v1  ;;  %v6979_v59 = vld [vmem:[#allocation4 + $0x640] ss:$8 sps:$4 sm:$0xff]   ;;  %v4071_v1 = vcombine.high %v8660_v21, %v8660_v21 }
 0x389   : > { %5761 = vmatprep.subr.bf16.mxu1 %v6912_v51  ;;  %v6987_v51 = vld [vmem:[#allocation4 + $0x654] ss:$8 sps:$4 sm:$0xff]   ;;  %v7042_v21 = vld [vmem:[#allocation4 + $0x2f0] ss:$8 sps:$4 sm:$0xff]  }
 0x38b   : > { %5916 = vmatpush1.bf16.msra.mxu0 %v6883_v19  ;;  %v6969_v19 = vld [vmem:[#allocation4 + $0x624] ss:$8 sps:$4 sm:$0xff]  }
 0x38c   : > { %5917 = vmatprep.subr.bf16.mxu0 %v6891_v36  ;;  %5762 = vmatpush1.bf16.msra.mxu1 %v6910_v48  ;;  %v8672_v36 = vrot.slane %v8666_v10, %v8642_v3  ;;  %v6985_v48 = vld [vmem:[#allocation4 + $0x650] ss:$8 sps:$4 sm:$0xff]  }
 0x38d   : > { %5763 = vmatprep.subr.bf16.mxu1 %v6918_v41  ;;  %v6993_v41 = vld [vmem:[#allocation4 + $0x664] ss:$8 sps:$4 sm:$0xff]  }
 0x38f   : > { %5918 = vmatpush1.bf16.msra.mxu0 %v6889_v38  ;;  %v6967_v38 = vld [vmem:[#allocation4 + $0x620] ss:$8 sps:$4 sm:$0xff]  }
 0x390   : > { %5919 = vmatprep.subr.bf16.mxu0 %v6897_v49  ;;  %5764 = vmatpush1.bf16.msra.mxu1 %v6916_v18  ;;  %v4120_v49 = vcombine.high %v8672_v36, %v8672_v36  ;;  %v6991_v18 = vld [vmem:[#allocation4 + $0x660] ss:$8 sps:$4 sm:$0xff]  }
 0x391   : > { %5765 = vmatprep.subr.bf16.mxu1 %v6924_v16  ;;  %v6999_v16 = vld [vmem:[#allocation4 + $0x674] ss:$8 sps:$4 sm:$0xff]  }
 0x392   : > { %v4151_v26 = vpack.c.bf16 %v4120_v49, %v4120_v49  ;;  %v7053_v49 = vld [vmem:[#allocation4 + $0x704] ss:$8 sps:$4 sm:$0xff]  }
 0x393   : > { %5920 = vmatpush1.bf16.msra.mxu0 %v6895_v35  ;;  %v6975_v35 = vld [vmem:[#allocation4 + $0x634] ss:$8 sps:$4 sm:$0xff]  }
 0x394   : > { %5921 = vmatprep.subr.bf16.mxu0 %v6903_v24  ;;  %5766 = vmatpush1.bf16.msra.mxu1 %v6922_v0  ;;  %v6970_v24 = vld [vmem:[#allocation4 + $0x230] ss:$8 sps:$4 sm:$0xff]  }
 0x395   : > { %5767 = vmatprep.subr.bf16.mxu1 %v6930_v14  ;;  %v6997_v0 = vld [vmem:[#allocation4 + $0x670] ss:$8 sps:$4 sm:$0xff]   ;;  %v7005_v14 = vld [vmem:[#allocation4 + $0x684] ss:$8 sps:$4 sm:$0xff]  }
 0x397   : > { %5922 = vmatpush1.bf16.msra.mxu0 %v6901_v9  ;;  %v6978_v9 = vld [vmem:[#allocation4 + $0x244] ss:$8 sps:$4 sm:$0xff]  }
 0x398   : > { %5923 = vmatprep.subr.bf16.mxu0 %v6909_v34  ;;  %5768 = vmatpush1.bf16.msra.mxu1 %v6928_v31  ;;  %v6976_v34 = vld [vmem:[#allocation4 + $0x240] ss:$8 sps:$4 sm:$0xff]  }
 0x399   : > { %5769 = vmatprep.subr.bf16.mxu1 %v6936_v47  ;;  %v7003_v31 = vld [vmem:[#allocation4 + $0x680] ss:$8 sps:$4 sm:$0xff]   ;;  %v7011_v47 = vld [vmem:[#allocation4 + $0x694] ss:$8 sps:$4 sm:$0xff]  }
 0x39b   : > { %5924 = vmatpush1.bf16.msra.mxu0 %v6907_v62  ;;  %v6984_v62 = vld [vmem:[#allocation4 + $0x254] ss:$8 sps:$4 sm:$0xff]  }
 0x39c   : > { %5925 = vmatprep.subr.bf16.mxu0 %v6915_v13  ;;  %5770 = vmatpush1.bf16.msra.mxu1 %v6934_v30  ;;  %v6982_v13 = vld [vmem:[#allocation4 + $0x250] ss:$8 sps:$4 sm:$0xff]  }
 0x39d   : > { %5771 = vmatprep.subr.bf16.mxu1 %v6942_v44  ;;  %v7009_v30 = vld [vmem:[#allocation4 + $0x690] ss:$8 sps:$4 sm:$0xff]   ;;  %v7017_v44 = vld [vmem:[#allocation4 + $0x6a4] ss:$8 sps:$4 sm:$0xff]  }
 0x39f   : > { %5926 = vmatpush1.bf16.msra.mxu0 %v6913_v27  ;;  %v6990_v27 = vld [vmem:[#allocation4 + $0x264] ss:$8 sps:$4 sm:$0xff]  }
 0x3a0   : > { %5927 = vmatprep.subr.bf16.mxu0 %v6921_v2  ;;  %5772 = vmatpush1.bf16.msra.mxu1 %v6940_v8  ;;  %v6988_v2 = vld [vmem:[#allocation4 + $0x260] ss:$8 sps:$4 sm:$0xff]  }
 0x3a1   : > { %5773 = vmatprep.subr.bf16.mxu1 %v6948_v57  ;;  %v7015_v8 = vld [vmem:[#allocation4 + $0x6a0] ss:$8 sps:$4 sm:$0xff]   ;;  %v7023_v57 = vld [vmem:[#allocation4 + $0x6b4] ss:$8 sps:$4 sm:$0xff]  }
 0x3a3   : > { %5928 = vmatpush1.bf16.msra.mxu0 %v6919_v11  ;;  %v6996_v11 = vld [vmem:[#allocation4 + $0x274] ss:$8 sps:$4 sm:$0xff]  }
 0x3a4   : > { %5929 = vmatprep.subr.bf16.mxu0 %v6927_v23  ;;  %5774 = vmatpush1.bf16.msra.mxu1 %v6946_v40  ;;  %v6994_v23 = vld [vmem:[#allocation4 + $0x270] ss:$8 sps:$4 sm:$0xff]  }
 0x3a5   : > { %5784 = vmatprep.subr.bf16.mxu1 %v6954_v29  ;;  %v7021_v40 = vld [vmem:[#allocation4 + $0x6b0] ss:$8 sps:$4 sm:$0xff]   ;;  %v7029_v29 = vld [vmem:[#allocation4 + $0x6c4] ss:$8 sps:$4 sm:$0xff]  }
 0x3a7   : > { %5930 = vmatpush1.bf16.msra.mxu0 %v6925_v32  ;;  %5776 = vmatmul.mubr.bf16.vlgmr.msra.gmra.mrb[0].mxu1 %v4140_v56  ;;  %v7002_v32 = vld [vmem:[#allocation4 + $0x284] ss:$8 sps:$4 sm:$0xff]   ;;  %v7032_v56 = vld [vmem:[#allocation4 + $0x2d4] ss:$8 sps:$4 sm:$0xff]  }
 0x3a8   : > { %5931 = vmatprep.subr.bf16.mxu0 %v6933_v46  ;;  %5785 = vmatpush1.bf16.msra.mxu1 %v6952_v37  ;;  %v7000_v46 = vld [vmem:[#allocation4 + $0x280] ss:$8 sps:$4 sm:$0xff]  }
 0x3a9   : > { %5786 = vmatprep.subr.bf16.mxu1 %v6960_v28  ;;  %5816 = vmatprep.mubr.bf16.mxu1 %v4143_v4  ;;  %v7027_v37 = vld [vmem:[#allocation4 + $0x6c0] ss:$8 sps:$4 sm:$0xff]   ;;  %v7033_v28 = vld [vmem:[#allocation4 + $0x6d0] ss:$8 sps:$4 sm:$0xff]  }
 0x3aa   : > { %v7045_v4 = vld [vmem:[#allocation4 + $0x6f0] ss:$8 sps:$4 sm:$0xff]  }
 0x3ab   : > { %5932 = vmatpush1.bf16.msra.mxu0 %v6931_v54  ;;  %v7008_v54 = vld [vmem:[#allocation4 + $0x294] ss:$8 sps:$4 sm:$0xff]  }
 0x3ac   : > { %5933 = vmatprep.subr.bf16.mxu0 %v6939_v39  ;;  %5787 = vmatpush1.bf16.msra.mxu1 %v6958_v53  ;;  %v7006_v39 = vld [vmem:[#allocation4 + $0x290] ss:$8 sps:$4 sm:$0xff]   ;;  %v4105_v53 = vcombine.high %v8666_v10, %v8666_v10  ;;  %v7050_v10 = vld [vmem:[#allocation4 + $0x304] ss:$8 sps:$4 sm:$0xff]  }
 0x3ad   : > { %5788 = vmatprep.subr.bf16.mxu1 %v6966_v52  ;;  %v7039_v52 = vld [vmem:[#allocation4 + $0x6e0] ss:$8 sps:$4 sm:$0xff]  }
 0x3af   : > { %5934 = vmatpush1.bf16.msra.mxu0 %v6937_v45  ;;  %v7014_v45 = vld [vmem:[#allocation4 + $0x2a4] ss:$8 sps:$4 sm:$0xff]  }
 0x3b0   : > { %5935 = vmatprep.subr.bf16.mxu0 %v6945_v58  ;;  %5789 = vmatpush1.bf16.msra.mxu1 %v6964_v33  ;;  %v7012_v58 = vld [vmem:[#allocation4 + $0x2a0] ss:$8 sps:$4 sm:$0xff]   ;;  %v8681_v33 = vrot.slane %v4071_v1, %v8642_v3  ;;  %v7114_v1 = vld [vmem:[#allocation4 + $0x3b0] ss:$8 sps:$4 sm:$0xff]  }
 0x3b1   : > { %5790 = vmatprep.subr.bf16.mxu1 %v6972_v61 }
 0x3b2   : > { %v4087_v61 = vcombine.high %v8681_v33, %v8681_v33 }
 0x3b3   : > { %5936 = vmatpush1.bf16.msra.mxu0 %v6943_v20  ;;  %v7020_v20 = vld [vmem:[#allocation4 + $0x2b4] ss:$8 sps:$4 sm:$0xff]  }
 0x3b4   : > { %5937 = vmatprep.subr.bf16.mxu0 %v6951_v43  ;;  %5791 = vmatpush1.bf16.msra.mxu1 %v6970_v24  ;;  %v7018_v43 = vld [vmem:[#allocation4 + $0x2b0] ss:$8 sps:$4 sm:$0xff]   ;;  %v7048_v24 = vld [vmem:[#allocation4 + $0x300] ss:$8 sps:$4 sm:$0xff]  }
 0x3b5   : > { %5792 = vmatprep.subr.bf16.mxu1 %v6978_v9  ;;  %v7056_v9 = vld [vmem:[#allocation4 + $0x314] ss:$8 sps:$4 sm:$0xff]  }
 0x3b7   : > { %5938 = vmatpush1.bf16.msra.mxu0 %v6949_v22  ;;  %v7026_v22 = vld [vmem:[#allocation4 + $0x2c4] ss:$8 sps:$4 sm:$0xff]  }
 0x3b8   : > { %5948 = vmatprep.subr.bf16.mxu0 %v6957_v55  ;;  %5793 = vmatpush1.bf16.msra.mxu1 %v6976_v34  ;;  %v7024_v55 = vld [vmem:[#allocation4 + $0x2c0] ss:$8 sps:$4 sm:$0xff]   ;;  %v4145_v34 = vpack.c.bf16 %v4087_v61, %v4087_v61  ;;  %v7134_v61 = vld [vmem:[#allocation4 + $0x3e4] ss:$8 sps:$4 sm:$0xff]  }
 0x3b9   : > { %5794 = vmatprep.subr.bf16.mxu1 %v6984_v62  ;;  %v7054_v62 = vld [vmem:[#allocation4 + $0x310] ss:$8 sps:$4 sm:$0xff]  }
 0x3ba   : > { %5940 = vmatmul.mubr.bf16.vlgmr.msra.gmra.mrb[0].mxu0 %v4148_v7  ;;  %v7035_v7 = vld [vmem:[#allocation4 + $0x6d4] ss:$8 sps:$4 sm:$0xff]  }
 0x3bb   : > { %5949 = vmatpush1.bf16.msra.mxu0 %v6955_v42  ;;  %5980 = vmatprep.mubr.bf16.mxu0 %v4151_v26  ;;  %v7030_v42 = vld [vmem:[#allocation4 + $0x2d0] ss:$8 sps:$4 sm:$0xff]   ;;  %v4142_v26 = vpack.c.bf16 %v8664_v15, %v8664_v15  ;;  %v7062_v15 = vld [vmem:[#allocation4 + $0x324] ss:$8 sps:$4 sm:$0xff]  }
 0x3bc   : > { %5950 = vmatprep.subr.bf16.mxu0 %v6963_v6  ;;  %5795 = vmatpush1.bf16.msra.mxu1 %v6982_v13  ;;  %v7041_v6 = vld [vmem:[#allocation4 + $0x6e4] ss:$8 sps:$4 sm:$0xff]   ;;  %v7060_v13 = vld [vmem:[#allocation4 + $0x320] ss:$8 sps:$4 sm:$0xff]  }
 0x3bd   : > { %5796 = vmatprep.subr.bf16.mxu1 %v6990_v27  ;;  %v7068_v27 = vld [vmem:[#allocation4 + $0x334] ss:$8 sps:$4 sm:$0xff]  }
 0x3bf   : > { %5951 = vmatpush1.bf16.msra.mxu0 %v6961_v25  ;;  %v7036_v25 = vld [vmem:[#allocation4 + $0x2e0] ss:$8 sps:$4 sm:$0xff]  }
 0x3c0   : > { %5952 = vmatprep.subr.bf16.mxu0 %v6969_v19  ;;  %5797 = vmatpush1.bf16.msra.mxu1 %v6988_v2  ;;  %v7044_v19 = vld [vmem:[#allocation4 + $0x2f4] ss:$8 sps:$4 sm:$0xff]   ;;  %v7066_v2 = vld [vmem:[#allocation4 + $0x330] ss:$8 sps:$4 sm:$0xff]  }
 0x3c1   : > { %5798 = vmatprep.subr.bf16.mxu1 %v6996_v11  ;;  %v7074_v11 = vld [vmem:[#allocation4 + $0x344] ss:$8 sps:$4 sm:$0xff]  }
 0x3c3   : > { %5953 = vmatpush1.bf16.msra.mxu0 %v6967_v38  ;;  %v8684_v38 = vrot.slane %v4105_v53, %v8642_v3  ;;  %v4150_v3 = vpack.c.bf16 %v8672_v36, %v8672_v36  ;;  %v7065_v36 = vld [vmem:[#allocation4 + $0x724] ss:$8 sps:$4 sm:$0xff]   ;;  %v7117_v53 = vld [vmem:[#allocation4 + $0x7b0] ss:$8 sps:$4 sm:$0xff]  }
 0x3c4   : > { %5954 = vmatprep.subr.bf16.mxu0 %v6975_v35  ;;  %5799 = vmatpush1.bf16.msra.mxu1 %v6994_v23  ;;  %v7072_v23 = vld [vmem:[#allocation4 + $0x340] ss:$8 sps:$4 sm:$0xff]  }
 0x3c5   : > { %5800 = vmatprep.subr.bf16.mxu1 %v7002_v32  ;;  %v4121_v35 = vcombine.high %v8684_v38, %v8684_v38  ;;  %v7080_v32 = vld [vmem:[#allocation4 + $0x354] ss:$8 sps:$4 sm:$0xff]  }
 0x3c7   : > { %5955 = vmatpush1.bf16.msra.mxu0 %v6973_v17  ;;  %v7051_v17 = vld [vmem:[#allocation4 + $0x700] ss:$8 sps:$4 sm:$0xff]  }
 0x3c8   : > { %5956 = vmatprep.subr.bf16.mxu0 %v6981_v12  ;;  %5801 = vmatpush1.bf16.msra.mxu1 %v7000_v46  ;;  %v7059_v12 = vld [vmem:[#allocation4 + $0x714] ss:$8 sps:$4 sm:$0xff]   ;;  %v7078_v46 = vld [vmem:[#allocation4 + $0x350] ss:$8 sps:$4 sm:$0xff]  }
 0x3c9   : > { %5802 = vmatprep.subr.bf16.mxu1 %v7008_v54  ;;  %v7086_v54 = vld [vmem:[#allocation4 + $0x364] ss:$8 sps:$4 sm:$0xff]  }
 0x3cb   : > { %5957 = vmatpush1.bf16.msra.mxu0 %v6979_v59  ;;  %v4153_v59 = vpack.c.bf16 %v4121_v35, %v4121_v35  ;;  %v7137_v35 = vld [vmem:[#allocation4 + $0x7e4] ss:$8 sps:$4 sm:$0xff]  }
 0x3cc   : > { %5958 = vmatprep.subr.bf16.mxu0 %v6987_v51  ;;  %5803 = vmatpush1.bf16.msra.mxu1 %v7006_v39  ;;  %v7057_v51 = vld [vmem:[#allocation4 + $0x710] ss:$8 sps:$4 sm:$0xff]   ;;  %v7084_v39 = vld [vmem:[#allocation4 + $0x360] ss:$8 sps:$4 sm:$0xff]  }
 0x3cd   : > { %5804 = vmatprep.subr.bf16.mxu1 %v7014_v45  ;;  %v7092_v45 = vld [vmem:[#allocation4 + $0x374] ss:$8 sps:$4 sm:$0xff]  }
 0x3cf   : > { %5959 = vmatpush1.bf16.msra.mxu0 %v6985_v48  ;;  %v7063_v48 = vld [vmem:[#allocation4 + $0x720] ss:$8 sps:$4 sm:$0xff]  }
 0x3d0   : > { %5960 = vmatprep.subr.bf16.mxu0 %v6993_v41  ;;  %5805 = vmatpush1.bf16.msra.mxu1 %v7012_v58  ;;  %v7071_v41 = vld [vmem:[#allocation4 + $0x734] ss:$8 sps:$4 sm:$0xff]   ;;  %v7090_v58 = vld [vmem:[#allocation4 + $0x370] ss:$8 sps:$4 sm:$0xff]  }
 0x3d1   : > { %5806 = vmatprep.subr.bf16.mxu1 %v7020_v20  ;;  %v7098_v20 = vld [vmem:[#allocation4 + $0x384] ss:$8 sps:$4 sm:$0xff]  }
 0x3d3   : > { %5961 = vmatpush1.bf16.msra.mxu0 %v6991_v18  ;;  %v7069_v18 = vld [vmem:[#allocation4 + $0x730] ss:$8 sps:$4 sm:$0xff]  }
 0x3d4   : > { %5962 = vmatprep.subr.bf16.mxu0 %v6999_v16  ;;  %5807 = vmatpush1.bf16.msra.mxu1 %v7018_v43  ;;  %v7077_v16 = vld [vmem:[#allocation4 + $0x744] ss:$8 sps:$4 sm:$0xff]   ;;  %v7096_v43 = vld [vmem:[#allocation4 + $0x380] ss:$8 sps:$4 sm:$0xff]  }
 0x3d5   : > { %5808 = vmatprep.subr.bf16.mxu1 %v7026_v22  ;;  %v7104_v22 = vld [vmem:[#allocation4 + $0x394] ss:$8 sps:$4 sm:$0xff]  }
 0x3d7   : > { %5963 = vmatpush1.bf16.msra.mxu0 %v6997_v0  ;;  %v7075_v0 = vld [vmem:[#allocation4 + $0x740] ss:$8 sps:$4 sm:$0xff]  }
 0x3d8   : > { %5964 = vmatprep.subr.bf16.mxu0 %v7005_v14  ;;  %5809 = vmatpush1.bf16.msra.mxu1 %v7024_v55  ;;  %v7083_v14 = vld [vmem:[#allocation4 + $0x754] ss:$8 sps:$4 sm:$0xff]   ;;  %v7102_v55 = vld [vmem:[#allocation4 + $0x390] ss:$8 sps:$4 sm:$0xff]  }
 0x3d9   : > { %5810 = vmatprep.subr.bf16.mxu1 %v7032_v56  ;;  %v7110_v56 = vld [vmem:[#allocation4 + $0x3a4] ss:$8 sps:$4 sm:$0xff]  }
 0x3db   : > { %5965 = vmatpush1.bf16.msra.mxu0 %v7003_v31  ;;  %v7081_v31 = vld [vmem:[#allocation4 + $0x750] ss:$8 sps:$4 sm:$0xff]  }
 0x3dc   : > { %5966 = vmatprep.subr.bf16.mxu0 %v7011_v47  ;;  %5811 = vmatpush1.bf16.msra.mxu1 %v7030_v42  ;;  %v7089_v47 = vld [vmem:[#allocation4 + $0x764] ss:$8 sps:$4 sm:$0xff]   ;;  %v7108_v42 = vld [vmem:[#allocation4 + $0x3a0] ss:$8 sps:$4 sm:$0xff]  }
 0x3dd   : > { %5812 = vmatprep.subr.bf16.mxu1 %v7038_v5  ;;  %v7116_v5 = vld [vmem:[#allocation4 + $0x3b4] ss:$8 sps:$4 sm:$0xff]  }
 0x3df   : > { %5967 = vmatpush1.bf16.msra.mxu0 %v7009_v30  ;;  %v7087_v30 = vld [vmem:[#allocation4 + $0x760] ss:$8 sps:$4 sm:$0xff]  }
 0x3e0   : > { %5968 = vmatprep.subr.bf16.mxu0 %v7017_v44  ;;  %5813 = vmatpush1.bf16.msra.mxu1 %v7036_v25  ;;  %v7095_v44 = vld [vmem:[#allocation4 + $0x774] ss:$8 sps:$4 sm:$0xff]   ;;  %v7122_v25 = vld [vmem:[#allocation4 + $0x3c4] ss:$8 sps:$4 sm:$0xff]  }
 0x3e1   : > { %5814 = vmatprep.subr.bf16.mxu1 %v7044_v19  ;;  %v7120_v19 = vld [vmem:[#allocation4 + $0x3c0] ss:$8 sps:$4 sm:$0xff]  }
 0x3e3   : > { %5969 = vmatpush1.bf16.msra.mxu0 %v7015_v8  ;;  %v7093_v8 = vld [vmem:[#allocation4 + $0x770] ss:$8 sps:$4 sm:$0xff]  }
 0x3e4   : > { %5970 = vmatprep.subr.bf16.mxu0 %v7023_v57  ;;  %5815 = vmatpush1.bf16.msra.mxu1 %v7042_v21  ;;  %v7101_v57 = vld [vmem:[#allocation4 + $0x784] ss:$8 sps:$4 sm:$0xff]   ;;  %v7128_v21 = vld [vmem:[#allocation4 + $0x3d4] ss:$8 sps:$4 sm:$0xff]  }
 0x3e5   : > { %5825 = vmatprep.subr.bf16.mxu1 %v7050_v10  ;;  %v7126_v10 = vld [vmem:[#allocation4 + $0x3d0] ss:$8 sps:$4 sm:$0xff]  }
 0x3e7   : > { %5971 = vmatpush1.bf16.msra.mxu0 %v7021_v40  ;;  %5817 = vmatmul.mubr.bf16.vlgmr.msra.gmra.mrb[0].mxu1 %v4142_v26  ;;  %v7099_v40 = vld [vmem:[#allocation4 + $0x780] ss:$8 sps:$4 sm:$0xff]  }
 0x3e8   : > { %5972 = vmatprep.subr.bf16.mxu0 %v7029_v29  ;;  %5826 = vmatpush1.bf16.msra.mxu1 %v7048_v24  ;;  %v7107_v29 = vld [vmem:[#allocation4 + $0x794] ss:$8 sps:$4 sm:$0xff]   ;;  %v7132_v26 = vld [vmem:[#allocation4 + $0x3e0] ss:$8 sps:$4 sm:$0xff]  }
 0x3e9   : > { %5827 = vmatprep.subr.bf16.mxu1 %v7056_v9  ;;  %5857 = vmatprep.mubr.bf16.mxu1 %v4145_v34  ;;  %v7140_v24 = vld [vmem:[#allocation4 + $0x3f4] ss:$8 sps:$4 sm:$0xff]   ;;  %v7138_v9 = vld [vmem:[#allocation4 + $0x3f0] ss:$8 sps:$4 sm:$0xff]   ;;  %v4144_v34 = vpack.c.bf16 %v8681_v33, %v8681_v33 }
 0x3eb   : > { %5973 = vmatpush1.bf16.msra.mxu0 %v7027_v37  ;;  %v7105_v37 = vld [vmem:[#allocation4 + $0x790] ss:$8 sps:$4 sm:$0xff]  }
 0x3ec   : > { %5974 = vmatprep.subr.bf16.mxu0 %v7035_v7  ;;  %5828 = vmatpush1.bf16.msra.mxu1 %v7054_v62  ;;  %v7113_v7 = vld [vmem:[#allocation4 + $0x7a4] ss:$8 sps:$4 sm:$0xff]   ;;  %v4410_v62 = vld [vmem:[%s8754_s4] sm:$0x3] }
 0x3ed   : > { %5829 = vmatprep.subr.bf16.mxu1 %v7062_v15  ;;  %v4419_v15 = vrot.slane %v4410_v62, %v7677_v63 }
 0x3ef   : > { %5975 = vmatpush1.bf16.msra.mxu0 %v7033_v28  ;;  %v7111_v28 = vld [vmem:[#allocation4 + $0x7a0] ss:$8 sps:$4 sm:$0xff]  }
 0x3f0   : > { %5976 = vmatprep.subr.bf16.mxu0 %v7041_v6  ;;  %5830 = vmatpush1.bf16.msra.mxu1 %v7060_v13  ;;  %v7119_v6 = vld [vmem:[#allocation4 + $0x7b4] ss:$8 sps:$4 sm:$0xff]  }
 0x3f1   : > { %5831 = vmatprep.subr.bf16.mxu1 %v7068_v27 }
 0x3f3   : > { %5977 = vmatpush1.bf16.msra.mxu0 %v7039_v52  ;;  %v7125_v52 = vld [vmem:[#allocation4 + $0x7c4] ss:$8 sps:$4 sm:$0xff]  }
 0x3f4   : > { %5978 = vmatprep.subr.bf16.mxu0 %v7047_v50  ;;  %5832 = vmatpush1.bf16.msra.mxu1 %v7066_v2  ;;  %v7123_v50 = vld [vmem:[#allocation4 + $0x7c0] ss:$8 sps:$4 sm:$0xff]  }
 0x3f5   : > { %5833 = vmatprep.subr.bf16.mxu1 %v7074_v11 }
 0x3f7   : > { %5979 = vmatpush1.bf16.msra.mxu0 %v7045_v4  ;;  %v7131_v4 = vld [vmem:[#allocation4 + $0x7d4] ss:$8 sps:$4 sm:$0xff]  }
 0x3f8   : > { %5989 = vmatprep.subr.bf16.mxu0 %v7053_v49  ;;  %5834 = vmatpush1.bf16.msra.mxu1 %v7072_v23  ;;  %v7129_v49 = vld [vmem:[#allocation4 + $0x7d0] ss:$8 sps:$4 sm:$0xff]  }
 0x3f9   : > { %5835 = vmatprep.subr.bf16.mxu1 %v7080_v32 }
 0x3fa   : > { %5981 = vmatmul.mubr.bf16.vlgmr.msra.gmra.mrb[0].mxu0 %v4150_v3  ;;  %v7135_v3 = vld [vmem:[#allocation4 + $0x7e0] ss:$8 sps:$4 sm:$0xff]  }
 0x3fb   : > { %5990 = vmatpush1.bf16.msra.mxu0 %v7051_v17  ;;  %6021 = vmatprep.mubr.bf16.mxu0 %v4153_v59  ;;  %v7143_v17 = vld [vmem:[#allocation4 + $0x7f4] ss:$8 sps:$4 sm:$0xff]   ;;  %v4152_v59 = vpack.c.bf16 %v8684_v38, %v8684_v38 }
 0x3fc   : > { %5991 = vmatprep.subr.bf16.mxu0 %v7059_v12  ;;  %5836 = vmatpush1.bf16.msra.mxu1 %v7078_v46  ;;  %v7141_v12 = vld [vmem:[#allocation4 + $0x7f0] ss:$8 sps:$4 sm:$0xff]  }
 0x3fd   : > { %5837 = vmatprep.subr.bf16.mxu1 %v7086_v54 }
 0x3ff   : > { %5992 = vmatpush1.bf16.msra.mxu0 %v7057_v51  ;;  %v4415_v51 = vrot.slane %v4410_v62, %v7668_v60 }
 0x400   : > { %5993 = vmatprep.subr.bf16.mxu0 %v7065_v36  ;;  %5838 = vmatpush1.bf16.msra.mxu1 %v7084_v39 }
 0x401   : > { %5839 = vmatprep.subr.bf16.mxu1 %v7092_v45 }
 0x403   : > { %5994 = vmatpush1.bf16.msra.mxu0 %v7063_v48 }
 0x404   : > { %5995 = vmatprep.subr.bf16.mxu0 %v7071_v41  ;;  %5840 = vmatpush1.bf16.msra.mxu1 %v7090_v58 }
 0x405   : > { %5841 = vmatprep.subr.bf16.mxu1 %v7098_v20 }
 0x407   : > { %5996 = vmatpush1.bf16.msra.mxu0 %v7069_v18 }
 0x408   : > { %5997 = vmatprep.subr.bf16.mxu0 %v7077_v16  ;;  %5842 = vmatpush1.bf16.msra.mxu1 %v7096_v43 }
 0x409   : > { %5843 = vmatprep.subr.bf16.mxu1 %v7104_v22 }
 0x40b   : > { %5998 = vmatpush1.bf16.msra.mxu0 %v7075_v0 }
 0x40c   : > { %5999 = vmatprep.subr.bf16.mxu0 %v7083_v14  ;;  %5844 = vmatpush1.bf16.msra.mxu1 %v7102_v55 }
 0x40d   : > { %5845 = vmatprep.subr.bf16.mxu1 %v7110_v56 }
 0x40f   : > { %6000 = vmatpush1.bf16.msra.mxu0 %v7081_v31 }
 0x410   : > { %6001 = vmatprep.subr.bf16.mxu0 %v7089_v47  ;;  %5846 = vmatpush1.bf16.msra.mxu1 %v7108_v42 }
 0x411   : > { %5847 = vmatprep.subr.bf16.mxu1 %v7116_v5 }
 0x413   : > { %6002 = vmatpush1.bf16.msra.mxu0 %v7087_v30 }
 0x414   : > { %6003 = vmatprep.subr.bf16.mxu0 %v7095_v44  ;;  %5848 = vmatpush1.bf16.msra.mxu1 %v7114_v1 }
 0x415   : > { %5849 = vmatprep.subr.bf16.mxu1 %v7122_v25 }
 0x417   : > { %6004 = vmatpush1.bf16.msra.mxu0 %v7093_v8 }
 0x418   : > { %6005 = vmatprep.subr.bf16.mxu0 %v7101_v57  ;;  %5850 = vmatpush1.bf16.msra.mxu1 %v7120_v19 }
 0x419   : > { %5851 = vmatprep.subr.bf16.mxu1 %v7128_v21 }
 0x41b   : > { %6006 = vmatpush1.bf16.msra.mxu0 %v7099_v40 }
 0x41c   : > { %6007 = vmatprep.subr.bf16.mxu0 %v7107_v29  ;;  %5852 = vmatpush1.bf16.msra.mxu1 %v7126_v10 }
 0x41d   : > { %5853 = vmatprep.subr.bf16.mxu1 %v7134_v61 }
 0x41f   : > { %6008 = vmatpush1.bf16.msra.mxu0 %v7105_v37 }
 0x420   : > { %6009 = vmatprep.subr.bf16.mxu0 %v7113_v7  ;;  %5854 = vmatpush1.bf16.msra.mxu1 %v7132_v26  ;;  %v6088_v26 = vld [vmem:[%s8756_s6] sm:$0x3] }
 0x421   : > { %5855 = vmatprep.subr.bf16.mxu1 %v7140_v24  ;;  %v6097_v62 = vrot.slane %v6088_v26, %v7677_v63 }
 0x423   : > { %6010 = vmatpush1.bf16.msra.mxu0 %v7111_v28 }
 0x424   : > { %6011 = vmatprep.subr.bf16.mxu0 %v7119_v6  ;;  %5856 = vmatpush1.bf16.msra.mxu1 %v7138_v9 }
 0x427   : > { %6012 = vmatpush1.bf16.msra.mxu0 %v7117_v53  ;;  %5858 = vmatmul.mubr.bf16.vlgmr.msra.gmra.mrb[0].mxu1 %v4144_v34  ;;  %v6093_v34 = vrot.slane %v6088_v26, %v7668_v60 }
 0x428   : > { %6013 = vmatprep.subr.bf16.mxu0 %v7125_v52 }
 0x42b   : > { %6014 = vmatpush1.bf16.msra.mxu0 %v7123_v50 }
 0x42c   : > { %6015 = vmatprep.subr.bf16.mxu0 %v7131_v4 }
 0x42f   : > { %6016 = vmatpush1.bf16.msra.mxu0 %v7129_v49 }
 0x430   : > { %6017 = vmatprep.subr.bf16.mxu0 %v7137_v35  ;;  %v6074_v35 = vld [vmem:[%s8755_s5] sm:$0x3] }
 0x433   : > { %6018 = vmatpush1.bf16.msra.mxu0 %v7135_v3  ;;  %v6079_v3 = vrot.slane %v6074_v35, %v7668_v60 }
 0x434   : > { %6019 = vmatprep.subr.bf16.mxu0 %v7143_v17  ;;  %v6083_v17 = vrot.slane %v6074_v35, %v7677_v63 }
 0x437   : > { %6020 = vmatpush1.bf16.msra.mxu0 %v7141_v12 }
 0x43a   : > { %6022 = vmatmul.mubr.bf16.vlgmr.msra.gmra.mrb[0].mxu0 %v4152_v59 }
 0x4fa   : > { %v5859_v36 = vpop.f32.mrb[0].mxu1 }
 0x4fb   : > { %v6644_v48 = vadd.f32 %v5859_v36, %v4415_v51  ;;  %v5861_v27 = vpop.f32.mrb[1].mxu1 }
 0x4fc   : > { %v6646_v41 = vadd.f32 %v5861_v27, %v4419_v15  ;;  %v5863_v38 = vpop.f32.mrb[2].mxu1 }
 0x4fd   : > { %v5864_v11 = vpop.f32.mrb[3].mxu1 }
 0x50d   : > { %v6023_v13 = vpop.f32.mrb[0].mxu0 }
 0x50e   : > { %v6025_v33 = vpop.f32.mrb[1].mxu0  ;;  %v6645_v18 = vadd.f32 %v6644_v48, %v6023_v13 }
 0x50f   : > { %v6027_v2 = vpop.f32.mrb[2].mxu0  ;;  %v6647_v23 = vadd.f32 %v6646_v41, %v6025_v33 }
 0x510   : > { %v6028_v16 = vpop.f32.mrb[3].mxu0  ;;  %v6031_v0 = vsel %vm6030_vm2, %v6645_v18, 0.0 }
 0x511   : > { %v6032_v32 = vrot.slane %v6031_v0, 4  ;;  %v6038_v14 = vsel %vm6030_vm2, %v6647_v23, 0.0 }
 0x512   : > { %v6039_v46 = vrot.slane %v6038_v14, 4 }
 0x513   : > { %v6033_v31 = vadd.f32 %v6032_v32, %v6031_v0 }
 0x514   : > { %v6040_v54 = vadd.f32 %v6039_v46, %v6038_v14 }
 0x515   : > { %v6034_v47 = vrot.slane %v6033_v31, 2 }
 0x516   : > { %v6041_v39 = vrot.slane %v6040_v54, 2 }
 0x517   : > { %v6035_v30 = vadd.f32 %v6034_v47, %v6033_v31 }
 0x518   : > { %v6042_v45 = vadd.f32 %v6041_v39, %v6040_v54 }
 0x519   : > { %v6036_v44 = vrot.slane %v6035_v30, 1 }
 0x51a   : > { %v6043_v58 = vrot.slane %v6042_v45, 1 }
 0x51b   : > { %v6037_v8 = vadd.f32 %v6036_v44, %v6035_v30 }
 0x51c   : > { %v6044_v20 = vadd.f32 %v6043_v58, %v6042_v45 }
 0x51d   : > { %v6046_v57 = vmul.f32 0.5, %v6037_v8 }
 0x51e   : > { %v6047_v43 = vmul.f32 0.5, %v6044_v20 }
 0x51f   : > { %v6048_v40 = vsub.f32 %v6645_v18, %v6046_v57 }
 0x520   : > { %v6049_v22 = vsub.f32 %v6647_v23, %v6047_v43 }
 0x521   : > { %v6050_v29 = vmul.f32 %v6048_v40, %v6048_v40 }
 0x522   : > { %v6051_v55 = vmul.f32 %v6049_v22, %v6049_v22 }
 0x523   : > { %v6052_v37 = vsel %vm6030_vm2, %v6050_v29, 0.0 }
 0x524   : > { %v6053_v56 = vrot.slane %v6052_v37, 4  ;;  %v6059_v7 = vsel %vm6030_vm2, %v6051_v55, 0.0 }
 0x525   : > { %v6060_v42 = vrot.slane %v6059_v7, 4 }
 0x526   : > { %v6054_v28 = vadd.f32 %v6053_v56, %v6052_v37 }
 0x527   : > { %v6061_v5 = vadd.f32 %v6060_v42, %v6059_v7 }
 0x528   : > { %v6055_v6 = vrot.slane %v6054_v28, 2 }
 0x529   : > { %v6062_v1 = vrot.slane %v6061_v5, 2 }
 0x52a   : > { %v6056_v53 = vadd.f32 %v6055_v6, %v6054_v28 }
 0x52b   : > { %v6063_v25 = vadd.f32 %v6062_v1, %v6061_v5 }
 0x52c   : > { %v6057_v52 = vrot.slane %v6056_v53, 1 }
 0x52d   : > { %v6064_v19 = vrot.slane %v6063_v25, 1 }
 0x52e   : > { %v6058_v50 = vadd.f32 %v6057_v52, %v6056_v53 }
 0x52f   : > { %v6065_v21 = vadd.f32 %v6064_v19, %v6063_v25 }
 0x530   : > { %v6066_v4 = vmul.f32 0.5, %v6058_v50 }
 0x531   : > { %v6067_v10 = vmul.f32 0.5, %v6065_v21 }
 0x532   : > { %v6068_v49 = vadd.f32 1e-05, %v6066_v4 }
 0x533   : > { %v6069_v61 = vadd.f32 1e-05, %v6067_v10 }
 0x534   : > { %7144 = vrsqrt.f32 %v6068_v49 }
 0x535   : > { %7146 = vrsqrt.f32 %v6069_v61 }
 0x53e   : > { %v7145_v24 = vpop.eup %7144 }
 0x53f   : > { %v7147_v9 = vpop.eup %7146  ;;  %v6072_v12 = vmul.f32 %v7145_v24, %v6048_v40 }
 0x540   : > { %v6073_v59 = vmul.f32 %v7147_v9, %v6049_v22 }
 0x541   : > { %v6086_v51 = vmul.f32 %v6079_v3, %v6072_v12 }
 0x542   : > { %v6087_v15 = vmul.f32 %v6083_v17, %v6073_v59 }
 0x543   : > { %v6100_v36 = vadd.f32 %v6093_v34, %v6086_v51 }
 0x544   : > { %v6101_v13 = vadd.f32 %v6097_v62, %v6087_v15 }
 0x546   : > { %v6104_v48 = vcombine.low %v6100_v36, %v6101_v13 }
 0x548   : > { %6638 = vst.sshfl [vmem:[#allocation7] sm:$0x33 pattern:$0x76325410] %v6104_v48 }
 0x549 PF: > { %p6686_p12 = scmp.eq.s32.totalorder %s7298_s27, 1  ;;  %s7241_s29 = smov [#allocation7]  }
 0x54a   : > { %s6121_s30 = sshll.u32 %s7241_s29, 4  ;;  %s6122_s30 = int_to_ptr.vmem [resolvable:$true] %s6121_s30 }
 0x54b   : > { %s7176_s11 = scalar_lea.vmem %s6122_s30, 64  ;;  %p7183_p3 = scmp.lt.s32.totalorder %s6122_s30, %s6122_s30 }
 0x54c   : > { %p7177_p0 = scmp.ne.s32.totalorder %s6122_s30, %s7176_s11  ;;  %p7184_p5 = scmp.lt.s32.totalorder %s7176_s11, %s7176_s11 }
 0x54e   : > { %p7178_p1 = pnand %p7177_p0, %p6686_p12  ;;  %p7185_p9 = por %p7184_p5, %p7183_p3 }
 0x550   : > { %p7179_p2 = pneg %p7178_p1 }
 0x552   : > { %p7186_p11 = pnand %p7185_p9, %p7179_p2 }
 0x554   : > { %7189 = shalt.err (!%p7186_p11)
}
 0x555   : > { %s7190_s16 = scalar_lea.hbm %s8757_s7, 64 }
 0x556   : > { %p7191_p13 = scmp.ne.s32.totalorder %s8757_s7, %s7190_s16  ;;  %p7196_p7 = scmp.lt.u32.totalorder %s7190_s16, %s8757_s7 }
 0x558   : > { %p7192_p4 = pnand %p7191_p13, %p6686_p12 }
 0x55a   : > { %p7193_p6 = pneg %p7192_p4 }
 0x55c   : > { %p7198_p8 = pnand %p7196_p7, %p7193_p6 }
 0x55e   : > { %7201 = shalt.err (!%p7198_p8)
}
 0x55f   : > { %6677 = dma.vmem_to_hbm [thread:$0]  (%p6686_p12), %s6122_s30, 64, %s8757_s7, [#allocation6]  }
 0x560   : > { %7219 = dma.done.wait (%p6686_p12), [#allocation6], 64  }
 0x561   : > { %7221 = vsyncadd (%p6686_p12), [#allocation6], 4294967232 }
 0x562 PF: > { %p16_p10 = scmp.ge.s32.totalorder %s7301_s28, 4   ;;  %s8770_s24 = smov %s7228_s25 }
 0x563   : > { %s8771_s25 = smov %s7311_s8  ;;  %s8772_s26 = smov %s7301_s28 }
 0x564   :  { %18 = sbr.rel (!%p16_p10) target bundleno = 3 (0x3), region = 138 }
 0x56b   :  { %6134 = vsyncpa [#allocation5], 1 }
 0x56c   :  { %6136 = vsyncpa [#allocation5 + $0x1], 1 }
 0x56d   :  { %6137 = vsyncpa [#allocation6], 1 }
 0x56e   :  { %6139 = vsyncpa [#allocation6 + $0x1], 1 }

</bundles_post_ra>
